<compile_context>
chip_gen: v7x
topology: tpu7x:2x2x1
jax: 0.10.0
libtpu: 0.0.40
codegen_flags: <defaults>
</compile_context>

<pallas_src>
import functools

import jax
import jax.numpy as jnp
from jax.experimental import pallas as pl
from jax.experimental.pallas import tpu as pltpu


def _pick_tile(n, candidates):
    for c in candidates:
        if c <= n and n % c == 0:
            return c
    return n


def _pick_tb(t):
    for tb in (8, 4, 2, 1):
        if t % tb == 0:
            return tb
    return 1


# ----------------------------------------------------------------------------
# Kernel 1: hoisted layer-0 input projection.
#   z0 = x2d @ W_ih0 + b0,  x2d: (M=B*T, D) bf16, W_ih0: (D, 4H) bf16, b0: (1, 4H) f32
# Grid = (M//tm "parallel", D//tk "arbitrary"); small per-M-tile f32 accumulator,
# bf16 output (halves z0 HBM traffic downstream).
# ----------------------------------------------------------------------------
def proj_kernel(x_ref, w_ref, b_ref, o_ref, acc_ref):
    k = pl.program_id(1)

    @pl.when(k == 0)
    def _():
        acc_ref[...] = jnp.zeros_like(acc_ref)

    acc_ref[...] += jnp.dot(x_ref[...], w_ref[...],
                            preferred_element_type=jnp.float32)

    @pl.when(k == pl.num_programs(1) - 1)
    def _():
        o_ref[...] = (acc_ref[...] + b_ref[...]).astype(o_ref.dtype)


def input_projection(x2d_bf16, w_ih0, b0):
    M, D = x2d_bf16.shape
    H4 = w_ih0.shape[1]
    tm = _pick_tile(M, (512, 256, 128, 64, 32, 16, 8))
    tk = _pick_tile(D, (1024, 512, 256, 128))
    return pl.pallas_call(
        proj_kernel,
        out_shape=jax.ShapeDtypeStruct((M, H4), jnp.bfloat16),
        grid_spec=pltpu.PrefetchScalarGridSpec(
            num_scalar_prefetch=0,
            grid=(M // tm, D // tk),
            in_specs=[
                pl.BlockSpec((tm, tk), lambda m, k: (m, k)),
                pl.BlockSpec((tk, H4), lambda m, k: (k, 0)),
                pl.BlockSpec((1, H4), lambda m, k: (0, 0)),
            ],
            out_specs=pl.BlockSpec((tm, H4), lambda m, k: (m, 0)),
            scratch_shapes=[pltpu.VMEM((tm, H4), jnp.float32)],
        ),
        compiler_params=pltpu.CompilerParams(
            dimension_semantics=("parallel", "arbitrary")),
    )(x2d_bf16, w_ih0, b0)


# ----------------------------------------------------------------------------
# Kernel 2: fused multi-layer LSTM recurrence + FC head epilogue.
#   z0_ref:    (T, B, 4H) bf16   hoisted layer-0 gate pre-activations (x@W_ih0+b0)
#   whh0_ref:  (H, 4H)    bf16   layer-0 hidden->gate weights (gates fused on lanes)
#   wcat_ref:  (L-1, 2H, 4H) bf16  layers>=1: rows [0:H]=W_ih (from layer below),
#                                   rows [H:2H]=W_hh -> one matmul per layer/step
#   brest_ref: (L-1, 1, 4H) f32  combined biases, layers 1..L-1
#   head:      w1 (H,128), s1/t1 (1,128), w2 (128,128), s2/t2 (1,128),
#              w3 (128,c_pad), b3 (1,c_pad)   (BN folded, fc2/fc3 zero-padded)
#   out_ref:   (B, c_pad) f32    sigmoid(fc3(...)) written only on the last step
#   hcat_sc:   (B, L*H)  bf16    per-layer hidden states, lane-concatenated
#   c_sc:      (L, B, H) f32     per-layer cell states
# Gate order matches nn.LSTM: [i, f, g, o].
# ----------------------------------------------------------------------------
def fused_lstm_head_kernel(z0_ref, whh0_ref, wcat_ref, brest_ref,
                           w1_ref, s1_ref, t1_ref, w2_ref, s2_ref, t2_ref,
                           w3_ref, b3_ref, out_ref, hcat_sc, c_sc,
                           *, num_layers, tb, hidden):
    H = hidden
    L = num_layers
    B = hcat_sc.shape[0]
    t_blk = pl.program_id(0)

    @pl.when(t_blk == 0)
    def _init():
        hcat_sc[...] = jnp.zeros_like(hcat_sc)
        c_sc[...] = jnp.zeros_like(c_sc)

    # Hoist the (1,4H) -> (B,4H) bias broadcasts out of the unrolled time loop
    # (JAX does not CSE broadcast_in_dim).
    b_bc = [jnp.broadcast_to(brest_ref[l], (B, 4 * H)) for l in range(L - 1)]

    def cell(pre, c_prev):
        i_g = jax.nn.sigmoid(pre[:, 0 * H:1 * H])
        f_g = jax.nn.sigmoid(pre[:, 1 * H:2 * H])
        g_g = jnp.tanh(pre[:, 2 * H:3 * H])
        o_g = jax.nn.sigmoid(pre[:, 3 * H:4 * H])
        c_new = f_g * c_prev + i_g * g_g
        h_new = o_g * jnp.tanh(c_new)
        return h_new, c_new

    @pl.loop(0, tb, unroll=True)
    def _time_step(local_t):
        # Layer 0: hoisted (x@W_ih0 + b0) + h0 @ W_hh0 -> one (B,H)x(H,4H) matmul.
        pre = (z0_ref[local_t].astype(jnp.float32)
               + jnp.dot(hcat_sc[:, 0:H], whh0_ref[...],
                         preferred_element_type=jnp.float32))
        h_new, c_new = cell(pre, c_sc[0])
        c_sc[0] = c_new
        hcat_sc[:, 0:H] = h_new.astype(jnp.bfloat16)
        # Layers 1..L-1: one fused (B,2H)x(2H,4H) matmul per layer. Because the
        # layers are updated bottom-up in place, hcat_sc[:, (l-1)H:(l+1)H] is
        # exactly [h_{l-1}^new | h_l^old] as one contiguous lane slice.
        for l in range(1, L):
            cat = hcat_sc[:, (l - 1) * H:(l + 1) * H]
            pre = (jnp.dot(cat, wcat_ref[l - 1],
                           preferred_element_type=jnp.float32) + b_bc[l - 1])
            h_new, c_new = cell(pre, c_sc[l])
            c_sc[l] = c_new
            hcat_sc[:, l * H:(l + 1) * H] = h_new.astype(jnp.bfloat16)

    # FC/BN/ReLU/sigmoid head fused as the epilogue of the last time block
    # (dropout is identity in eval; BN folded into scale/shift).
    @pl.when(t_blk == pl.num_programs(0) - 1)
    def _head():
        h_last = hcat_sc[:, (L - 1) * H:L * H]            # (B, H) bf16
        x = jnp.dot(h_last, w1_ref[...], preferred_element_type=jnp.float32)
        x = jnp.maximum(x * s1_ref[...] + t1_ref[...], 0.0)
        x = jnp.dot(x.astype(jnp.bfloat16), w2_ref[...],
                    preferred_element_type=jnp.float32)
        x = jnp.maximum(x * s2_ref[...] + t2_ref[...], 0.0)
        x = jnp.dot(x.astype(jnp.bfloat16), w3_ref[...],
                    preferred_element_type=jnp.float32) + b3_ref[...]
        out_ref[...] = jax.nn.sigmoid(x).astype(out_ref.dtype)


def fused_lstm_head(z0, whh0, wcat_rest, b_rest, head, num_layers):
    T, B, H4 = z0.shape
    H = H4 // 4
    tb = _pick_tb(T)
    w1, s1, t1, w2, s2, t2, w3, b3 = head
    c_pad = w3.shape[1]

    kernel = functools.partial(fused_lstm_head_kernel,
                               num_layers=num_layers, tb=tb, hidden=H)

    def const2(shape):
        return pl.BlockSpec(shape, lambda t: (0,) * len(shape))

    return pl.pallas_call(
        kernel,
        out_shape=jax.ShapeDtypeStruct((B, c_pad), jnp.float32),
        grid_spec=pltpu.PrefetchScalarGridSpec(
            num_scalar_prefetch=0,
            grid=(T // tb,),
            in_specs=[
                pl.BlockSpec((tb, B, H4), lambda t: (t, 0, 0)),
                const2(whh0.shape),
                const2(wcat_rest.shape),
                const2(b_rest.shape),
                const2(w1.shape), const2(s1.shape), const2(t1.shape),
                const2(w2.shape), const2(s2.shape), const2(t2.shape),
                const2(w3.shape), const2(b3.shape),
            ],
            out_specs=pl.BlockSpec((B, c_pad), lambda t: (0, 0)),
            scratch_shapes=[
                pltpu.VMEM((B, num_layers * H), jnp.bfloat16),
                pltpu.VMEM((num_layers, B, H), jnp.float32),
            ],
        ),
        compiler_params=pltpu.CompilerParams(
            dimension_semantics=("arbitrary",)),
    )(z0, whh0, wcat_rest, b_rest, w1, s1, t1, w2, s2, t2, w3, b3)


# ----------------------------------------------------------------------------
# Full forward (mirrors LSTM.forward of the PyTorch module, eval mode).
# ----------------------------------------------------------------------------
@functools.partial(jax.jit, static_argnames=("num_classes", "num_layers"))
def lrcn_lstm_forward(x_btd, params, num_classes=2, num_layers=3):
    B, T, D = x_btd.shape
    H = params["whh0"].shape[0]

    # 1) Hoisted layer-0 projection over all B*T rows, x streamed as bf16.
    #    (In the full LRCN this convert fuses into the CNN encoder's output.)
    x2d = x_btd.astype(jnp.bfloat16).reshape(B * T, D)
    z0_2d = input_projection(x2d, params["w_ih0"], params["b0"])   # (B*T, 4H) bf16

    # 2) Reorder to time-major (T, B, 4H); bf16 halves this shuffle's HBM traffic.
    # TODO(synk): emit (T, B, 4H) directly from the projection kernel to remove it.
    z0 = z0_2d.reshape(B, T, 4 * H).transpose(1, 0, 2)

    # 3) Fused multi-layer recurrence + FC/BN/ReLU/sigmoid head epilogue.
    p = params["head"]
    logits = fused_lstm_head(
        z0, params["whh0"], params["wcat_rest"], params["b_rest"],
        (p["w1"], p["s1"], p["t1"], p["w2"], p["s2"], p["t2"], p["w3"], p["b3"]),
        num_layers)
    return logits[:, :num_classes]


# ----------------------------------------------------------------------------
# Deterministic synthetic parameters (PyTorch-style init, our layouts).
# ----------------------------------------------------------------------------
def make_params(key, input_size, hidden_size, num_layers, num_classes, c_pad=128):
    eps = 1e-5
    H = hidden_size
    keys = iter(jax.random.split(key, 64))

    def unif(k, shape, scale, dtype=jnp.float32):
        return jax.random.uniform(k, shape, jnp.float32, -scale, scale).astype(dtype)

    k_lstm = 1.0 / float(H) ** 0.5

    # Layer 0: W_ih as (D, 4H) for the hoisted projection; b0 = b_ih0 + b_hh0.
    w_ih0 = unif(next(keys), (input_size, 4 * H), k_lstm, jnp.bfloat16)
    b0 = unif(next(keys), (1, 4 * H), k_lstm) + unif(next(keys), (1, 4 * H), k_lstm)
    whh0 = unif(next(keys), (H, 4 * H), k_lstm, jnp.bfloat16)

    wcat, brest = [], []
    for _ in range(1, num_layers):
        w_ih = unif(next(keys), (H, 4 * H), k_lstm)
        w_hh = unif(next(keys), (H, 4 * H), k_lstm)
        wcat.append(jnp.concatenate([w_ih, w_hh], axis=0).astype(jnp.bfloat16))
        brest.append(unif(next(keys), (1, 4 * H), k_lstm)
                     + unif(next(keys), (1, 4 * H), k_lstm))
    if num_layers > 1:
        wcat = jnp.stack(wcat)                               # (L-1, 2H, 4H)
        brest = jnp.stack(brest)                             # (L-1, 1, 4H)
    else:
        wcat = jnp.zeros((1, 2 * H, 4 * H), jnp.bfloat16)    # unused dummy
        brest = jnp.zeros((1, 1, 4 * H), jnp.float32)

    def linear(k1, k2, fan_in, fan_out):
        s = 1.0 / float(fan_in) ** 0.5
        return (unif(k1, (fan_in, fan_out), s),
                unif(k2, (1, fan_out), s))

    w1, b1 = linear(next(keys), next(keys), H, 128)
    w2, b2 = linear(next(keys), next(keys), 128, 64)
    w3, b3 = linear(next(keys), next(keys), 64, num_classes)

    def fold_bn(bias, n, n_pad):
        # Eval-mode BN with fresh running stats (mean=0, var=1, gamma=1, beta=0),
        # linear bias folded in; padded lanes get identity scale / zero shift.
        scale = 1.0 / jnp.sqrt(jnp.ones((1, n), jnp.float32) + eps)
        shift = bias[:, :n] * scale
        s = jnp.ones((1, n_pad), jnp.float32).at[:, :n].set(scale[0])
        t = jnp.zeros((1, n_pad), jnp.float32).at[:, :n].set(shift[0])
        return s, t

    s1, t1 = fold_bn(b1, 128, 128)
    s2, t2 = fold_bn(b2, 64, 128)
    w1p = w1.astype(jnp.bfloat16)                                        # (H, 128)
    w2p = jnp.zeros((128, 128), jnp.bfloat16).at[:, :64].set(
        w2.astype(jnp.bfloat16))                                         # (128, 128)
    w3p = jnp.zeros((128, c_pad), jnp.bfloat16).at[:64, :num_classes].set(
        w3.astype(jnp.bfloat16))                                         # (128, c_pad)
    b3p = jnp.zeros((1, c_pad), jnp.float32).at[:, :num_classes].set(b3)

    head = dict(w1=w1p, s1=s1, t1=t1, w2=w2p, s2=s2, t2=t2, w3=w3p, b3=b3p)
    return dict(w_ih0=w_ih0, b0=b0, whh0=whh0, wcat_rest=wcat, b_rest=brest,
                head=head)


# ----------------------------------------------------------------------------
# Pure-JAX reference (eval semantics), used for a loose numerical check.
# ----------------------------------------------------------------------------
def reference_forward(x_btd, params, num_classes, num_layers):
    B, T, D = x_btd.shape
    w_ih0 = params["w_ih0"].astype(jnp.float32)
    b0 = params["b0"]
    whh0 = params["whh0"].astype(jnp.float32)
    wcat = params["wcat_rest"].astype(jnp.float32)
    brest = params["b_rest"]
    H = whh0.shape[0]
    L = num_layers

    def cell(pre, c):
        i = jax.nn.sigmoid(pre[:, :H]); f = jax.nn.sigmoid(pre[:, H:2 * H])
        g = jnp.tanh(pre[:, 2 * H:3 * H]); o = jax.nn.sigmoid(pre[:, 3 * H:])
        c_new = f * c + i * g
        return o * jnp.tanh(c_new), c_new

    h = [jnp.zeros((B, H), jnp.float32) for _ in range(L)]
    c = [jnp.zeros((B, H), jnp.float32) for _ in range(L)]
    for t in range(T):
        x_t = x_btd[:, t, :]
        pre = x_t @ w_ih0 + b0 + h[0] @ whh0
        h[0], c[0] = cell(pre, c[0])
        for l in range(1, L):
            pre = (jnp.concatenate([h[l - 1], h[l]], axis=1) @ wcat[l - 1]
                   + brest[l - 1])
            h[l], c[l] = cell(pre, c[l])

    p = params["head"]
    x = h[-1] @ p["w1"].astype(jnp.float32)
    x = jnp.maximum(x * p["s1"] + p["t1"], 0.0)
    x = x @ p["w2"].astype(jnp.float32)
    x = jnp.maximum(x * p["s2"] + p["t2"], 0.0)
    x = x @ p["w3"].astype(jnp.float32) + p["b3"]
    return jax.nn.sigmoid(x)[:, :num_classes]


if __name__ == "__main__":
    # Small shapes consistent with the module's forward: x_RNN (batch, seq, embed).
    B, T, D = 2, 8, 32       # CNN_embed_dim shrunk from 25088 -> 32
    H = 32                   # h_RNN shrunk from 256 -> 32
    NUM_LAYERS = 3
    NUM_CLASSES = 2

    key = jax.random.PRNGKey(0)
    k_param, k_x = jax.random.split(key)
    params = make_params(k_param, D, H, NUM_LAYERS, NUM_CLASSES)
    x = jax.random.normal(k_x, (B, T, D), jnp.float32)

    out = lrcn_lstm_forward(x, params, num_classes=NUM_CLASSES,
                            num_layers=NUM_LAYERS)
    out = jax.block_until_ready(out)
    assert out.shape == (B, NUM_CLASSES)
    assert bool(jnp.all(jnp.isfinite(out)))

    ref = reference_forward(x, params, NUM_CLASSES, NUM_LAYERS)
    assert bool(jnp.allclose(out, ref, atol=5e-2, rtol=5e-2)), (out, ref)

    print("KERNEL_OK")
</pallas_src>

<mosaic_0001>
module attributes {stable_mosaic.version = 11 : i64} {
  func.func @proj_kernel(%arg0: i32, %arg1: i32, %arg2: memref<16x32xbf16, #tpu.memory_space<vmem>>, %arg3: memref<32x128xbf16, #tpu.memory_space<vmem>>, %arg4: memref<1x128xf32, #tpu.memory_space<vmem>>, %arg5: memref<16x128xbf16, #tpu.memory_space<vmem>>, %arg6: memref<16x128xf32, #tpu.memory_space<vmem>>) attributes {dimension_semantics = [#tpu.dimension_semantics<parallel>, #tpu.dimension_semantics<arbitrary>], iteration_bounds = array<i64: 1, 1>, scalar_prefetch = 0 : i64, scratch_operands = 1 : i64, tpu.core_type = #tpu.core_type<tc>, window_params = [{transform_indices = @transform_0, window_bounds = array<i64: 16, 32>}, {transform_indices = @transform_1, window_bounds = array<i64: 32, 128>}, {pipeline_mode = #tpu.pipeline_mode<synchronous>, transform_indices = @transform_2, window_bounds = array<i64: 1, 128>}, {transform_indices = @transform_3, window_bounds = array<i64: 16, 128>}]} {
    %c0_i32 = arith.constant 0 : i32
    %0 = arith.cmpi eq, %arg1, %c0_i32 : i32
    %1 = arith.extui %0 : i1 to i32
    %c0_i32_0 = arith.constant 0 : i32
    %2 = arith.cmpi ne, %1, %c0_i32_0 : i32
    scf.if %2 {
      %cst_10 = arith.constant 0.000000e+00 : f32
      %12 = vector.broadcast %cst_10 : f32 to vector<16x128xf32>
      %c0_11 = arith.constant 0 : index
      %c0_12 = arith.constant 0 : index
      %13 = vector.load %arg6[%c0_11, %c0_12] : memref<16x128xf32, #tpu.memory_space<vmem>>, vector<16x128xf32>
      tpu.vector_store %arg6[%c0_11, %c0_12], %12 {strides = array<i32>} : memref<16x128xf32, #tpu.memory_space<vmem>>, vector<16x128xf32>,
    } else {
    }
    %c0 = arith.constant 0 : index
    %c0_1 = arith.constant 0 : index
    %3 = vector.load %arg6[%c0, %c0_1] : memref<16x128xf32, #tpu.memory_space<vmem>>, vector<16x128xf32>
    %c0_2 = arith.constant 0 : index
    %c0_3 = arith.constant 0 : index
    %4 = vector.load %arg2[%c0_2, %c0_3] : memref<16x32xbf16, #tpu.memory_space<vmem>>, vector<16x32xbf16>
    %c0_4 = arith.constant 0 : index
    %c0_5 = arith.constant 0 : index
    %5 = vector.load %arg3[%c0_4, %c0_5] : memref<32x128xbf16, #tpu.memory_space<vmem>>, vector<32x128xbf16>
    %cst = arith.constant dense<0.000000e+00> : vector<16x128xf32>
    %6 = tpu.matmul %4, %5, %cst {dimension_numbers = #tpu.dot_dimension_numbers<[1], [0], [0], [1], [0, 0, 1, 1], [], []>} : vector<16x32xbf16>, vector<32x128xbf16>, vector<16x128xf32> -> vector<16x128xf32>
    %7 = arith.addf %3, %6 : vector<16x128xf32>
    %c0_6 = arith.constant 0 : index
    %c0_7 = arith.constant 0 : index
    %8 = vector.load %arg6[%c0_6, %c0_7] : memref<16x128xf32, #tpu.memory_space<vmem>>, vector<16x128xf32>
    tpu.vector_store %arg6[%c0_6, %c0_7], %7 {strides = array<i32>} : memref<16x128xf32, #tpu.memory_space<vmem>>, vector<16x128xf32>,
    %c0_i32_8 = arith.constant 0 : i32
    %9 = arith.cmpi eq, %arg1, %c0_i32_8 : i32
    %10 = arith.extui %9 : i1 to i32
    %c0_i32_9 = arith.constant 0 : i32
    %11 = arith.cmpi ne, %10, %c0_i32_9 : i32
    scf.if %11 {
      %c0_10 = arith.constant 0 : index
      %c0_11 = arith.constant 0 : index
      %12 = vector.load %arg6[%c0_10, %c0_11] : memref<16x128xf32, #tpu.memory_space<vmem>>, vector<16x128xf32>
      %c0_12 = arith.constant 0 : index
      %c0_13 = arith.constant 0 : index
      %13 = vector.load %arg4[%c0_12, %c0_13] : memref<1x128xf32, #tpu.memory_space<vmem>>, vector<1x128xf32>
      %14 = vector.broadcast %13 : vector<1x128xf32> to vector<16x128xf32>
      %15 = arith.addf %12, %14 : vector<16x128xf32>
      %16 = arith.truncf %15 : vector<16x128xf32> to vector<16x128xbf16>
      %c0_14 = arith.constant 0 : index
      %c0_15 = arith.constant 0 : index
      %17 = vector.load %arg5[%c0_14, %c0_15] : memref<16x128xbf16, #tpu.memory_space<vmem>>, vector<16x128xbf16>
      tpu.vector_store %arg5[%c0_14, %c0_15], %16 {strides = array<i32>} : memref<16x128xbf16, #tpu.memory_space<vmem>>, vector<16x128xbf16>,
    } else {
    }
    return
  }
  func.func @transform_0(%arg0: i32, %arg1: i32) -> (i32, i32) {
    %c0_i32 = arith.constant 0 : i32
    return %arg0, %arg1 : i32, i32
  }
  func.func @transform_1(%arg0: i32, %arg1: i32) -> (i32, i32) {
    %c0_i32 = arith.constant 0 : i32
    %c0_i32_0 = arith.constant 0 : i32
    return %arg1, %c0_i32 : i32, i32
  }
  func.func @transform_2(%arg0: i32, %arg1: i32) -> (i32, i32) {
    %c0_i32 = arith.constant 0 : i32
    %c0_i32_0 = arith.constant 0 : i32
    %c0_i32_1 = arith.constant 0 : i32
    return %c0_i32, %c0_i32_0 : i32, i32
  }
  func.func @transform_3(%arg0: i32, %arg1: i32) -> (i32, i32) {
    %c0_i32 = arith.constant 0 : i32
    %c0_i32_0 = arith.constant 0 : i32
    return %arg0, %c0_i32 : i32, i32
  }
}

module attributes {stable_mosaic.version = 11 : i64} {
  func.func @fused_lstm_head_kernel(%arg0: i32, %arg1: memref<8x2x128xbf16, #tpu.memory_space<vmem>>, %arg2: memref<32x128xbf16, #tpu.memory_space<vmem>>, %arg3: memref<2x64x128xbf16, #tpu.memory_space<vmem>>, %arg4: memref<2x1x128xf32, #tpu.memory_space<vmem>>, %arg5: memref<32x128xbf16, #tpu.memory_space<vmem>>, %arg6: memref<1x128xf32, #tpu.memory_space<vmem>>, %arg7: memref<1x128xf32, #tpu.memory_space<vmem>>, %arg8: memref<128x128xbf16, #tpu.memory_space<vmem>>, %arg9: memref<1x128xf32, #tpu.memory_space<vmem>>, %arg10: memref<1x128xf32, #tpu.memory_space<vmem>>, %arg11: memref<128x128xbf16, #tpu.memory_space<vmem>>, %arg12: memref<1x128xf32, #tpu.memory_space<vmem>>, %arg13: memref<2x128xf32, #tpu.memory_space<vmem>>, %arg14: memref<2x96xbf16, #tpu.memory_space<vmem>>, %arg15: memref<3x2x32xf32, #tpu.memory_space<vmem>>) attributes {dimension_semantics = [#tpu.dimension_semantics<arbitrary>], iteration_bounds = array<i64: 1>, scalar_prefetch = 0 : i64, scratch_operands = 2 : i64, tpu.core_type = #tpu.core_type<tc>, window_params = [{transform_indices = @transform_0, window_bounds = array<i64: 8, 2, 128>}, {pipeline_mode = #tpu.pipeline_mode<synchronous>, transform_indices = @transform_1, window_bounds = array<i64: 32, 128>}, {pipeline_mode = #tpu.pipeline_mode<synchronous>, transform_indices = @transform_2, window_bounds = array<i64: 2, 64, 128>}, {pipeline_mode = #tpu.pipeline_mode<synchronous>, transform_indices = @transform_3, window_bounds = array<i64: 2, 1, 128>}, {pipeline_mode = #tpu.pipeline_mode<synchronous>, transform_indices = @transform_4, window_bounds = array<i64: 32, 128>}, {pipeline_mode = #tpu.pipeline_mode<synchronous>, transform_indices = @transform_5, window_bounds = array<i64: 1, 128>}, {pipeline_mode = #tpu.pipeline_mode<synchronous>, transform_indices = @transform_6, window_bounds = array<i64: 1, 128>}, {pipeline_mode = #tpu.pipeline_mode<synchronous>, transform_indices = @transform_7, window_bounds = array<i64: 128, 128>}, {pipeline_mode = #tpu.pipeline_mode<synchronous>, transform_indices = @transform_8, window_bounds = array<i64: 1, 128>}, {pipeline_mode = #tpu.pipeline_mode<synchronous>, transform_indices = @transform_9, window_bounds = array<i64: 1, 128>}, {pipeline_mode = #tpu.pipeline_mode<synchronous>, transform_indices = @transform_10, window_bounds = array<i64: 128, 128>}, {pipeline_mode = #tpu.pipeline_mode<synchronous>, transform_indices = @transform_11, window_bounds = array<i64: 1, 128>}, {pipeline_mode = #tpu.pipeline_mode<synchronous>, transform_indices = @transform_12, window_bounds = array<i64: 2, 128>}]} {
    %c0_i32 = arith.constant 0 : i32
    %0 = arith.cmpi eq, %arg0, %c0_i32 : i32
    %1 = arith.extui %0 : i1 to i32
    %c0_i32_0 = arith.constant 0 : i32
    %2 = arith.cmpi ne, %1, %c0_i32_0 : i32
    scf.if %2 {
      %cst_436 = arith.constant 0.000000e+00 : bf16
      %942 = vector.broadcast %cst_436 : bf16 to vector<2x96xbf16>
      %c0_437 = arith.constant 0 : index
      %c0_438 = arith.constant 0 : index
      %943 = vector.load %arg14[%c0_437, %c0_438] : memref<2x96xbf16, #tpu.memory_space<vmem>>, vector<2x96xbf16>
      tpu.vector_store %arg14[%c0_437, %c0_438], %942 {strides = array<i32>} : memref<2x96xbf16, #tpu.memory_space<vmem>>, vector<2x96xbf16>,
      %cst_439 = arith.constant 0.000000e+00 : f32
      %944 = vector.broadcast %cst_439 : f32 to vector<3x2x32xf32>
      %c0_440 = arith.constant 0 : index
      %c0_441 = arith.constant 0 : index
      %c0_442 = arith.constant 0 : index
      %945 = vector.load %arg15[%c0_440, %c0_441, %c0_442] : memref<3x2x32xf32, #tpu.memory_space<vmem>>, vector<3x2x32xf32>
      tpu.vector_store %arg15[%c0_440, %c0_441, %c0_442], %944 {strides = array<i32>} : memref<3x2x32xf32, #tpu.memory_space<vmem>>, vector<3x2x32xf32>,
    } else {
    }
    %c0 = arith.constant 0 : index
    %c0_1 = arith.constant 0 : index
    %c0_2 = arith.constant 0 : index
    %3 = vector.load %arg4[%c0, %c0_1, %c0_2] : memref<2x1x128xf32, #tpu.memory_space<vmem>>, vector<1x1x128xf32>
    %4 = vector.shape_cast %3 : vector<1x1x128xf32> to vector<1x128xf32>
    %5 = vector.shape_cast %4 : vector<1x128xf32> to vector<1x128xf32>
    %6 = vector.broadcast %5 : vector<1x128xf32> to vector<2x128xf32>
    %c1 = arith.constant 1 : index
    %c0_3 = arith.constant 0 : index
    %c0_4 = arith.constant 0 : index
    %7 = vector.load %arg4[%c1, %c0_3, %c0_4] : memref<2x1x128xf32, #tpu.memory_space<vmem>>, vector<1x1x128xf32>
    %8 = vector.shape_cast %7 : vector<1x1x128xf32> to vector<1x128xf32>
    %9 = vector.shape_cast %8 : vector<1x128xf32> to vector<1x128xf32>
    %10 = vector.broadcast %9 : vector<1x128xf32> to vector<2x128xf32>
    %c0_i32_5 = arith.constant 0 : i32
    %c1_i32 = arith.constant 1 : i32
    %11 = arith.muli %c0_i32_5, %c1_i32 : i32
    %c0_i32_6 = arith.constant 0 : i32
    %12 = arith.addi %c0_i32_6, %11 : i32
    %13 = arith.index_cast %12 : i32 to index
    %c0_7 = arith.constant 0 : index
    %c0_8 = arith.constant 0 : index
    %14 = vector.load %arg1[%13, %c0_7, %c0_8] : memref<8x2x128xbf16, #tpu.memory_space<vmem>>, vector<1x2x128xbf16>
    %15 = vector.shape_cast %14 : vector<1x2x128xbf16> to vector<2x128xbf16>
    %16 = arith.extf %15 : vector<2x128xbf16> to vector<2x128xf32>
    %c0_9 = arith.constant 0 : index
    %c0_10 = arith.constant 0 : index
    %17 = vector.load %arg14[%c0_9, %c0_10] : memref<2x96xbf16, #tpu.memory_space<vmem>>, vector<2x32xbf16>
    %c0_11 = arith.constant 0 : index
    %c0_12 = arith.constant 0 : index
    %18 = vector.load %arg2[%c0_11, %c0_12] : memref<32x128xbf16, #tpu.memory_space<vmem>>, vector<32x128xbf16>
    %cst = arith.constant dense<0.000000e+00> : vector<2x128xf32>
    %19 = tpu.matmul %17, %18, %cst {dimension_numbers = #tpu.dot_dimension_numbers<[1], [0], [0], [1], [0, 0, 1, 1], [], []>} : vector<2x32xbf16>, vector<32x128xbf16>, vector<2x128xf32> -> vector<2x128xf32>
    %20 = arith.addf %16, %19 : vector<2x128xf32>
    %c0_13 = arith.constant 0 : index
    %c0_14 = arith.constant 0 : index
    %c0_15 = arith.constant 0 : index
    %21 = vector.load %arg15[%c0_13, %c0_14, %c0_15] : memref<3x2x32xf32, #tpu.memory_space<vmem>>, vector<1x2x32xf32>
    %22 = vector.shape_cast %21 : vector<1x2x32xf32> to vector<2x32xf32>
    %23 = vector.extract_strided_slice %20 {offsets = [0, 0], sizes = [2, 32], strides = [1, 1]} : vector<2x128xf32> to vector<2x32xf32>
    %24 = arith.negf %23 : vector<2x32xf32>
    %25 = math.exp %24 : vector<2x32xf32>
    %cst_16 = arith.constant 1.000000e+00 : f32
    %26 = vector.broadcast %cst_16 : f32 to vector<2x32xf32>
    %27 = arith.addf %26, %25 : vector<2x32xf32>
    %28 = arith.divf %26, %27 : vector<2x32xf32>
    %29 = vector.extract_strided_slice %20 {offsets = [0, 32], sizes = [2, 32], strides = [1, 1]} : vector<2x128xf32> to vector<2x32xf32>
    %30 = arith.negf %29 : vector<2x32xf32>
    %31 = math.exp %30 : vector<2x32xf32>
    %cst_17 = arith.constant 1.000000e+00 : f32
    %32 = vector.broadcast %cst_17 : f32 to vector<2x32xf32>
    %33 = arith.addf %32, %31 : vector<2x32xf32>
    %34 = arith.divf %32, %33 : vector<2x32xf32>
    %35 = vector.extract_strided_slice %20 {offsets = [0, 64], sizes = [2, 32], strides = [1, 1]} : vector<2x128xf32> to vector<2x32xf32>
    %36 = math.tanh %35 : vector<2x32xf32>
    %37 = vector.extract_strided_slice %20 {offsets = [0, 96], sizes = [2, 32], strides = [1, 1]} : vector<2x128xf32> to vector<2x32xf32>
    %38 = arith.negf %37 : vector<2x32xf32>
    %39 = math.exp %38 : vector<2x32xf32>
    %cst_18 = arith.constant 1.000000e+00 : f32
    %40 = vector.broadcast %cst_18 : f32 to vector<2x32xf32>
    %41 = arith.addf %40, %39 : vector<2x32xf32>
    %42 = arith.divf %40, %41 : vector<2x32xf32>
    %43 = arith.mulf %34, %22 : vector<2x32xf32>
    %44 = arith.mulf %28, %36 : vector<2x32xf32>
    %45 = arith.addf %43, %44 : vector<2x32xf32>
    %46 = math.tanh %45 : vector<2x32xf32>
    %47 = arith.mulf %42, %46 : vector<2x32xf32>
    %c0_19 = arith.constant 0 : index
    %c0_20 = arith.constant 0 : index
    %c0_21 = arith.constant 0 : index
    %48 = vector.load %arg15[%c0_19, %c0_20, %c0_21] : memref<3x2x32xf32, #tpu.memory_space<vmem>>, vector<1x2x32xf32>
    %49 = vector.shape_cast %48 : vector<1x2x32xf32> to vector<2x32xf32>
    %50 = vector.shape_cast %45 : vector<2x32xf32> to vector<1x2x32xf32>
    tpu.vector_store %arg15[%c0_19, %c0_20, %c0_21], %50 {strides = array<i32>} : memref<3x2x32xf32, #tpu.memory_space<vmem>>, vector<1x2x32xf32>,
    %51 = arith.truncf %47 : vector<2x32xf32> to vector<2x32xbf16>
    %c0_22 = arith.constant 0 : index
    %c0_23 = arith.constant 0 : index
    %52 = vector.load %arg14[%c0_22, %c0_23] : memref<2x96xbf16, #tpu.memory_space<vmem>>, vector<2x32xbf16>
    tpu.vector_store %arg14[%c0_22, %c0_23], %51 {strides = array<i32>} : memref<2x96xbf16, #tpu.memory_space<vmem>>, vector<2x32xbf16>,
    %c0_24 = arith.constant 0 : index
    %c0_25 = arith.constant 0 : index
    %53 = vector.load %arg14[%c0_24, %c0_25] : memref<2x96xbf16, #tpu.memory_space<vmem>>, vector<2x64xbf16>
    %c0_26 = arith.constant 0 : index
    %c0_27 = arith.constant 0 : index
    %c0_28 = arith.constant 0 : index
    %54 = vector.load %arg3[%c0_26, %c0_27, %c0_28] : memref<2x64x128xbf16, #tpu.memory_space<vmem>>, vector<1x64x128xbf16>
    %55 = vector.shape_cast %54 : vector<1x64x128xbf16> to vector<64x128xbf16>
    %cst_29 = arith.constant dense<0.000000e+00> : vector<2x128xf32>
    %56 = tpu.matmul %53, %55, %cst_29 {dimension_numbers = #tpu.dot_dimension_numbers<[1], [0], [0], [1], [0, 0, 1, 1], [], []>} : vector<2x64xbf16>, vector<64x128xbf16>, vector<2x128xf32> -> vector<2x128xf32>
    %57 = arith.addf %56, %6 : vector<2x128xf32>
    %c1_30 = arith.constant 1 : index
    %c0_31 = arith.constant 0 : index
    %c0_32 = arith.constant 0 : index
    %58 = vector.load %arg15[%c1_30, %c0_31, %c0_32] : memref<3x2x32xf32, #tpu.memory_space<vmem>>, vector<1x2x32xf32>
    %59 = vector.shape_cast %58 : vector<1x2x32xf32> to vector<2x32xf32>
    %60 = vector.extract_strided_slice %57 {offsets = [0, 0], sizes = [2, 32], strides = [1, 1]} : vector<2x128xf32> to vector<2x32xf32>
    %61 = arith.negf %60 : vector<2x32xf32>
    %62 = math.exp %61 : vector<2x32xf32>
    %cst_33 = arith.constant 1.000000e+00 : f32
    %63 = vector.broadcast %cst_33 : f32 to vector<2x32xf32>
    %64 = arith.addf %63, %62 : vector<2x32xf32>
    %65 = arith.divf %63, %64 : vector<2x32xf32>
    %66 = vector.extract_strided_slice %57 {offsets = [0, 32], sizes = [2, 32], strides = [1, 1]} : vector<2x128xf32> to vector<2x32xf32>
    %67 = arith.negf %66 : vector<2x32xf32>
    %68 = math.exp %67 : vector<2x32xf32>
    %cst_34 = arith.constant 1.000000e+00 : f32
    %69 = vector.broadcast %cst_34 : f32 to vector<2x32xf32>
    %70 = arith.addf %69, %68 : vector<2x32xf32>
    %71 = arith.divf %69, %70 : vector<2x32xf32>
    %72 = vector.extract_strided_slice %57 {offsets = [0, 64], sizes = [2, 32], strides = [1, 1]} : vector<2x128xf32> to vector<2x32xf32>
    %73 = math.tanh %72 : vector<2x32xf32>
    %74 = vector.extract_strided_slice %57 {offsets = [0, 96], sizes = [2, 32], strides = [1, 1]} : vector<2x128xf32> to vector<2x32xf32>
    %75 = arith.negf %74 : vector<2x32xf32>
    %76 = math.exp %75 : vector<2x32xf32>
    %cst_35 = arith.constant 1.000000e+00 : f32
    %77 = vector.broadcast %cst_35 : f32 to vector<2x32xf32>
    %78 = arith.addf %77, %76 : vector<2x32xf32>
    %79 = arith.divf %77, %78 : vector<2x32xf32>
    %80 = arith.mulf %71, %59 : vector<2x32xf32>
    %81 = arith.mulf %65, %73 : vector<2x32xf32>
    %82 = arith.addf %80, %81 : vector<2x32xf32>
    %83 = math.tanh %82 : vector<2x32xf32>
    %84 = arith.mulf %79, %83 : vector<2x32xf32>
    %c1_36 = arith.constant 1 : index
    %c0_37 = arith.constant 0 : index
    %c0_38 = arith.constant 0 : index
    %85 = vector.load %arg15[%c1_36, %c0_37, %c0_38] : memref<3x2x32xf32, #tpu.memory_space<vmem>>, vector<1x2x32xf32>
    %86 = vector.shape_cast %85 : vector<1x2x32xf32> to vector<2x32xf32>
    %87 = vector.shape_cast %82 : vector<2x32xf32> to vector<1x2x32xf32>
    tpu.vector_store %arg15[%c1_36, %c0_37, %c0_38], %87 {strides = array<i32>} : memref<3x2x32xf32, #tpu.memory_space<vmem>>, vector<1x2x32xf32>,
    %88 = arith.truncf %84 : vector<2x32xf32> to vector<2x32xbf16>
    %c0_39 = arith.constant 0 : index
    %c32 = arith.constant 32 : index
    %89 = vector.load %arg14[%c0_39, %c32] : memref<2x96xbf16, #tpu.memory_space<vmem>>, vector<2x32xbf16>
    tpu.vector_store %arg14[%c0_39, %c32], %88 {strides = array<i32>} : memref<2x96xbf16, #tpu.memory_space<vmem>>, vector<2x32xbf16>,
    %c0_40 = arith.constant 0 : index
    %c32_41 = arith.constant 32 : index
    %90 = vector.load %arg14[%c0_40, %c32_41] : memref<2x96xbf16, #tpu.memory_space<vmem>>, vector<2x64xbf16>
    %c1_42 = arith.constant 1 : index
    %c0_43 = arith.constant 0 : index
    %c0_44 = arith.constant 0 : index
    %91 = vector.load %arg3[%c1_42, %c0_43, %c0_44] : memref<2x64x128xbf16, #tpu.memory_space<vmem>>, vector<1x64x128xbf16>
    %92 = vector.shape_cast %91 : vector<1x64x128xbf16> to vector<64x128xbf16>
    %cst_45 = arith.constant dense<0.000000e+00> : vector<2x128xf32>
    %93 = tpu.matmul %90, %92, %cst_45 {dimension_numbers = #tpu.dot_dimension_numbers<[1], [0], [0], [1], [0, 0, 1, 1], [], []>} : vector<2x64xbf16>, vector<64x128xbf16>, vector<2x128xf32> -> vector<2x128xf32>
    %94 = arith.addf %93, %10 : vector<2x128xf32>
    %c2 = arith.constant 2 : index
    %c0_46 = arith.constant 0 : index
    %c0_47 = arith.constant 0 : index
    %95 = vector.load %arg15[%c2, %c0_46, %c0_47] : memref<3x2x32xf32, #tpu.memory_space<vmem>>, vector<1x2x32xf32>
    %96 = vector.shape_cast %95 : vector<1x2x32xf32> to vector<2x32xf32>
    %97 = vector.extract_strided_slice %94 {offsets = [0, 0], sizes = [2, 32], strides = [1, 1]} : vector<2x128xf32> to vector<2x32xf32>
    %98 = arith.negf %97 : vector<2x32xf32>
    %99 = math.exp %98 : vector<2x32xf32>
    %cst_48 = arith.constant 1.000000e+00 : f32
    %100 = vector.broadcast %cst_48 : f32 to vector<2x32xf32>
    %101 = arith.addf %100, %99 : vector<2x32xf32>
    %102 = arith.divf %100, %101 : vector<2x32xf32>
    %103 = vector.extract_strided_slice %94 {offsets = [0, 32], sizes = [2, 32], strides = [1, 1]} : vector<2x128xf32> to vector<2x32xf32>
    %104 = arith.negf %103 : vector<2x32xf32>
    %105 = math.exp %104 : vector<2x32xf32>
    %cst_49 = arith.constant 1.000000e+00 : f32
    %106 = vector.broadcast %cst_49 : f32 to vector<2x32xf32>
    %107 = arith.addf %106, %105 : vector<2x32xf32>
    %108 = arith.divf %106, %107 : vector<2x32xf32>
    %109 = vector.extract_strided_slice %94 {offsets = [0, 64], sizes = [2, 32], strides = [1, 1]} : vector<2x128xf32> to vector<2x32xf32>
    %110 = math.tanh %109 : vector<2x32xf32>
    %111 = vector.extract_strided_slice %94 {offsets = [0, 96], sizes = [2, 32], strides = [1, 1]} : vector<2x128xf32> to vector<2x32xf32>
    %112 = arith.negf %111 : vector<2x32xf32>
    %113 = math.exp %112 : vector<2x32xf32>
    %cst_50 = arith.constant 1.000000e+00 : f32
    %114 = vector.broadcast %cst_50 : f32 to vector<2x32xf32>
    %115 = arith.addf %114, %113 : vector<2x32xf32>
    %116 = arith.divf %114, %115 : vector<2x32xf32>
    %117 = arith.mulf %108, %96 : vector<2x32xf32>
    %118 = arith.mulf %102, %110 : vector<2x32xf32>
    %119 = arith.addf %117, %118 : vector<2x32xf32>
    %120 = math.tanh %119 : vector<2x32xf32>
    %121 = arith.mulf %116, %120 : vector<2x32xf32>
    %c2_51 = arith.constant 2 : index
    %c0_52 = arith.constant 0 : index
    %c0_53 = arith.constant 0 : index
    %122 = vector.load %arg15[%c2_51, %c0_52, %c0_53] : memref<3x2x32xf32, #tpu.memory_space<vmem>>, vector<1x2x32xf32>
    %123 = vector.shape_cast %122 : vector<1x2x32xf32> to vector<2x32xf32>
    %124 = vector.shape_cast %119 : vector<2x32xf32> to vector<1x2x32xf32>
    tpu.vector_store %arg15[%c2_51, %c0_52, %c0_53], %124 {strides = array<i32>} : memref<3x2x32xf32, #tpu.memory_space<vmem>>, vector<1x2x32xf32>,
    %125 = arith.truncf %121 : vector<2x32xf32> to vector<2x32xbf16>
    %c0_54 = arith.constant 0 : index
    %c64 = arith.constant 64 : index
    %126 = vector.load %arg14[%c0_54, %c64] : memref<2x96xbf16, #tpu.memory_space<vmem>>, vector<2x32xbf16>
    tpu.vector_store %arg14[%c0_54, %c64], %125 {strides = array<i32>} : memref<2x96xbf16, #tpu.memory_space<vmem>>, vector<2x32xbf16>,
    %c1_i32_55 = arith.constant 1 : i32
    %c1_i32_56 = arith.constant 1 : i32
    %127 = arith.muli %c1_i32_55, %c1_i32_56 : i32
    %c0_i32_57 = arith.constant 0 : i32
    %128 = arith.addi %c0_i32_57, %127 : i32
    %129 = arith.index_cast %128 : i32 to index
    %c0_58 = arith.constant 0 : index
    %c0_59 = arith.constant 0 : index
    %130 = vector.load %arg1[%129, %c0_58, %c0_59] : memref<8x2x128xbf16, #tpu.memory_space<vmem>>, vector<1x2x128xbf16>
    %131 = vector.shape_cast %130 : vector<1x2x128xbf16> to vector<2x128xbf16>
    %132 = arith.extf %131 : vector<2x128xbf16> to vector<2x128xf32>
    %c0_60 = arith.constant 0 : index
    %c0_61 = arith.constant 0 : index
    %133 = vector.load %arg14[%c0_60, %c0_61] : memref<2x96xbf16, #tpu.memory_space<vmem>>, vector<2x32xbf16>
    %c0_62 = arith.constant 0 : index
    %c0_63 = arith.constant 0 : index
    %134 = vector.load %arg2[%c0_62, %c0_63] : memref<32x128xbf16, #tpu.memory_space<vmem>>, vector<32x128xbf16>
    %cst_64 = arith.constant dense<0.000000e+00> : vector<2x128xf32>
    %135 = tpu.matmul %133, %134, %cst_64 {dimension_numbers = #tpu.dot_dimension_numbers<[1], [0], [0], [1], [0, 0, 1, 1], [], []>} : vector<2x32xbf16>, vector<32x128xbf16>, vector<2x128xf32> -> vector<2x128xf32>
    %136 = arith.addf %132, %135 : vector<2x128xf32>
    %c0_65 = arith.constant 0 : index
    %c0_66 = arith.constant 0 : index
    %c0_67 = arith.constant 0 : index
    %137 = vector.load %arg15[%c0_65, %c0_66, %c0_67] : memref<3x2x32xf32, #tpu.memory_space<vmem>>, vector<1x2x32xf32>
    %138 = vector.shape_cast %137 : vector<1x2x32xf32> to vector<2x32xf32>
    %139 = vector.extract_strided_slice %136 {offsets = [0, 0], sizes = [2, 32], strides = [1, 1]} : vector<2x128xf32> to vector<2x32xf32>
    %140 = arith.negf %139 : vector<2x32xf32>
    %141 = math.exp %140 : vector<2x32xf32>
    %cst_68 = arith.constant 1.000000e+00 : f32
    %142 = vector.broadcast %cst_68 : f32 to vector<2x32xf32>
    %143 = arith.addf %142, %141 : vector<2x32xf32>
    %144 = arith.divf %142, %143 : vector<2x32xf32>
    %145 = vector.extract_strided_slice %136 {offsets = [0, 32], sizes = [2, 32], strides = [1, 1]} : vector<2x128xf32> to vector<2x32xf32>
    %146 = arith.negf %145 : vector<2x32xf32>
    %147 = math.exp %146 : vector<2x32xf32>
    %cst_69 = arith.constant 1.000000e+00 : f32
    %148 = vector.broadcast %cst_69 : f32 to vector<2x32xf32>
    %149 = arith.addf %148, %147 : vector<2x32xf32>
    %150 = arith.divf %148, %149 : vector<2x32xf32>
    %151 = vector.extract_strided_slice %136 {offsets = [0, 64], sizes = [2, 32], strides = [1, 1]} : vector<2x128xf32> to vector<2x32xf32>
    %152 = math.tanh %151 : vector<2x32xf32>
    %153 = vector.extract_strided_slice %136 {offsets = [0, 96], sizes = [2, 32], strides = [1, 1]} : vector<2x128xf32> to vector<2x32xf32>
    %154 = arith.negf %153 : vector<2x32xf32>
    %155 = math.exp %154 : vector<2x32xf32>
    %cst_70 = arith.constant 1.000000e+00 : f32
    %156 = vector.broadcast %cst_70 : f32 to vector<2x32xf32>
    %157 = arith.addf %156, %155 : vector<2x32xf32>
    %158 = arith.divf %156, %157 : vector<2x32xf32>
    %159 = arith.mulf %150, %138 : vector<2x32xf32>
    %160 = arith.mulf %144, %152 : vector<2x32xf32>
    %161 = arith.addf %159, %160 : vector<2x32xf32>
    %162 = math.tanh %161 : vector<2x32xf32>
    %163 = arith.mulf %158, %162 : vector<2x32xf32>
    %c0_71 = arith.constant 0 : index
    %c0_72 = arith.constant 0 : index
    %c0_73 = arith.constant 0 : index
    %164 = vector.load %arg15[%c0_71, %c0_72, %c0_73] : memref<3x2x32xf32, #tpu.memory_space<vmem>>, vector<1x2x32xf32>
    %165 = vector.shape_cast %164 : vector<1x2x32xf32> to vector<2x32xf32>
    %166 = vector.shape_cast %161 : vector<2x32xf32> to vector<1x2x32xf32>
    tpu.vector_store %arg15[%c0_71, %c0_72, %c0_73], %166 {strides = array<i32>} : memref<3x2x32xf32, #tpu.memory_space<vmem>>, vector<1x2x32xf32>,
    %167 = arith.truncf %163 : vector<2x32xf32> to vector<2x32xbf16>
    %c0_74 = arith.constant 0 : index
    %c0_75 = arith.constant 0 : index
    %168 = vector.load %arg14[%c0_74, %c0_75] : memref<2x96xbf16, #tpu.memory_space<vmem>>, vector<2x32xbf16>
    tpu.vector_store %arg14[%c0_74, %c0_75], %167 {strides = array<i32>} : memref<2x96xbf16, #tpu.memory_space<vmem>>, vector<2x32xbf16>,
    %c0_76 = arith.constant 0 : index
    %c0_77 = arith.constant 0 : index
    %169 = vector.load %arg14[%c0_76, %c0_77] : memref<2x96xbf16, #tpu.memory_space<vmem>>, vector<2x64xbf16>
    %c0_78 = arith.constant 0 : index
    %c0_79 = arith.constant 0 : index
    %c0_80 = arith.constant 0 : index
    %170 = vector.load %arg3[%c0_78, %c0_79, %c0_80] : memref<2x64x128xbf16, #tpu.memory_space<vmem>>, vector<1x64x128xbf16>
    %171 = vector.shape_cast %170 : vector<1x64x128xbf16> to vector<64x128xbf16>
    %cst_81 = arith.constant dense<0.000000e+00> : vector<2x128xf32>
    %172 = tpu.matmul %169, %171, %cst_81 {dimension_numbers = #tpu.dot_dimension_numbers<[1], [0], [0], [1], [0, 0, 1, 1], [], []>} : vector<2x64xbf16>, vector<64x128xbf16>, vector<2x128xf32> -> vector<2x128xf32>
    %173 = arith.addf %172, %6 : vector<2x128xf32>
    %c1_82 = arith.constant 1 : index
    %c0_83 = arith.constant 0 : index
    %c0_84 = arith.constant 0 : index
    %174 = vector.load %arg15[%c1_82, %c0_83, %c0_84] : memref<3x2x32xf32, #tpu.memory_space<vmem>>, vector<1x2x32xf32>
    %175 = vector.shape_cast %174 : vector<1x2x32xf32> to vector<2x32xf32>
    %176 = vector.extract_strided_slice %173 {offsets = [0, 0], sizes = [2, 32], strides = [1, 1]} : vector<2x128xf32> to vector<2x32xf32>
    %177 = arith.negf %176 : vector<2x32xf32>
    %178 = math.exp %177 : vector<2x32xf32>
    %cst_85 = arith.constant 1.000000e+00 : f32
    %179 = vector.broadcast %cst_85 : f32 to vector<2x32xf32>
    %180 = arith.addf %179, %178 : vector<2x32xf32>
    %181 = arith.divf %179, %180 : vector<2x32xf32>
    %182 = vector.extract_strided_slice %173 {offsets = [0, 32], sizes = [2, 32], strides = [1, 1]} : vector<2x128xf32> to vector<2x32xf32>
    %183 = arith.negf %182 : vector<2x32xf32>
    %184 = math.exp %183 : vector<2x32xf32>
    %cst_86 = arith.constant 1.000000e+00 : f32
    %185 = vector.broadcast %cst_86 : f32 to vector<2x32xf32>
    %186 = arith.addf %185, %184 : vector<2x32xf32>
    %187 = arith.divf %185, %186 : vector<2x32xf32>
    %188 = vector.extract_strided_slice %173 {offsets = [0, 64], sizes = [2, 32], strides = [1, 1]} : vector<2x128xf32> to vector<2x32xf32>
    %189 = math.tanh %188 : vector<2x32xf32>
    %190 = vector.extract_strided_slice %173 {offsets = [0, 96], sizes = [2, 32], strides = [1, 1]} : vector<2x128xf32> to vector<2x32xf32>
    %191 = arith.negf %190 : vector<2x32xf32>
    %192 = math.exp %191 : vector<2x32xf32>
    %cst_87 = arith.constant 1.000000e+00 : f32
    %193 = vector.broadcast %cst_87 : f32 to vector<2x32xf32>
    %194 = arith.addf %193, %192 : vector<2x32xf32>
    %195 = arith.divf %193, %194 : vector<2x32xf32>
    %196 = arith.mulf %187, %175 : vector<2x32xf32>
    %197 = arith.mulf %181, %189 : vector<2x32xf32>
    %198 = arith.addf %196, %197 : vector<2x32xf32>
    %199 = math.tanh %198 : vector<2x32xf32>
    %200 = arith.mulf %195, %199 : vector<2x32xf32>
    %c1_88 = arith.constant 1 : index
    %c0_89 = arith.constant 0 : index
    %c0_90 = arith.constant 0 : index
    %201 = vector.load %arg15[%c1_88, %c0_89, %c0_90] : memref<3x2x32xf32, #tpu.memory_space<vmem>>, vector<1x2x32xf32>
    %202 = vector.shape_cast %201 : vector<1x2x32xf32> to vector<2x32xf32>
    %203 = vector.shape_cast %198 : vector<2x32xf32> to vector<1x2x32xf32>
    tpu.vector_store %arg15[%c1_88, %c0_89, %c0_90], %203 {strides = array<i32>} : memref<3x2x32xf32, #tpu.memory_space<vmem>>, vector<1x2x32xf32>,
    %204 = arith.truncf %200 : vector<2x32xf32> to vector<2x32xbf16>
    %c0_91 = arith.constant 0 : index
    %c32_92 = arith.constant 32 : index
    %205 = vector.load %arg14[%c0_91, %c32_92] : memref<2x96xbf16, #tpu.memory_space<vmem>>, vector<2x32xbf16>
    tpu.vector_store %arg14[%c0_91, %c32_92], %204 {strides = array<i32>} : memref<2x96xbf16, #tpu.memory_space<vmem>>, vector<2x32xbf16>,
    %c0_93 = arith.constant 0 : index
    %c32_94 = arith.constant 32 : index
    %206 = vector.load %arg14[%c0_93, %c32_94] : memref<2x96xbf16, #tpu.memory_space<vmem>>, vector<2x64xbf16>
    %c1_95 = arith.constant 1 : index
    %c0_96 = arith.constant 0 : index
    %c0_97 = arith.constant 0 : index
    %207 = vector.load %arg3[%c1_95, %c0_96, %c0_97] : memref<2x64x128xbf16, #tpu.memory_space<vmem>>, vector<1x64x128xbf16>
    %208 = vector.shape_cast %207 : vector<1x64x128xbf16> to vector<64x128xbf16>
    %cst_98 = arith.constant dense<0.000000e+00> : vector<2x128xf32>
    %209 = tpu.matmul %206, %208, %cst_98 {dimension_numbers = #tpu.dot_dimension_numbers<[1], [0], [0], [1], [0, 0, 1, 1], [], []>} : vector<2x64xbf16>, vector<64x128xbf16>, vector<2x128xf32> -> vector<2x128xf32>
    %210 = arith.addf %209, %10 : vector<2x128xf32>
    %c2_99 = arith.constant 2 : index
    %c0_100 = arith.constant 0 : index
    %c0_101 = arith.constant 0 : index
    %211 = vector.load %arg15[%c2_99, %c0_100, %c0_101] : memref<3x2x32xf32, #tpu.memory_space<vmem>>, vector<1x2x32xf32>
    %212 = vector.shape_cast %211 : vector<1x2x32xf32> to vector<2x32xf32>
    %213 = vector.extract_strided_slice %210 {offsets = [0, 0], sizes = [2, 32], strides = [1, 1]} : vector<2x128xf32> to vector<2x32xf32>
    %214 = arith.negf %213 : vector<2x32xf32>
    %215 = math.exp %214 : vector<2x32xf32>
    %cst_102 = arith.constant 1.000000e+00 : f32
    %216 = vector.broadcast %cst_102 : f32 to vector<2x32xf32>
    %217 = arith.addf %216, %215 : vector<2x32xf32>
    %218 = arith.divf %216, %217 : vector<2x32xf32>
    %219 = vector.extract_strided_slice %210 {offsets = [0, 32], sizes = [2, 32], strides = [1, 1]} : vector<2x128xf32> to vector<2x32xf32>
    %220 = arith.negf %219 : vector<2x32xf32>
    %221 = math.exp %220 : vector<2x32xf32>
    %cst_103 = arith.constant 1.000000e+00 : f32
    %222 = vector.broadcast %cst_103 : f32 to vector<2x32xf32>
    %223 = arith.addf %222, %221 : vector<2x32xf32>
    %224 = arith.divf %222, %223 : vector<2x32xf32>
    %225 = vector.extract_strided_slice %210 {offsets = [0, 64], sizes = [2, 32], strides = [1, 1]} : vector<2x128xf32> to vector<2x32xf32>
    %226 = math.tanh %225 : vector<2x32xf32>
    %227 = vector.extract_strided_slice %210 {offsets = [0, 96], sizes = [2, 32], strides = [1, 1]} : vector<2x128xf32> to vector<2x32xf32>
    %228 = arith.negf %227 : vector<2x32xf32>
    %229 = math.exp %228 : vector<2x32xf32>
    %cst_104 = arith.constant 1.000000e+00 : f32
    %230 = vector.broadcast %cst_104 : f32 to vector<2x32xf32>
    %231 = arith.addf %230, %229 : vector<2x32xf32>
    %232 = arith.divf %230, %231 : vector<2x32xf32>
    %233 = arith.mulf %224, %212 : vector<2x32xf32>
    %234 = arith.mulf %218, %226 : vector<2x32xf32>
    %235 = arith.addf %233, %234 : vector<2x32xf32>
    %236 = math.tanh %235 : vector<2x32xf32>
    %237 = arith.mulf %232, %236 : vector<2x32xf32>
    %c2_105 = arith.constant 2 : index
    %c0_106 = arith.constant 0 : index
    %c0_107 = arith.constant 0 : index
    %238 = vector.load %arg15[%c2_105, %c0_106, %c0_107] : memref<3x2x32xf32, #tpu.memory_space<vmem>>, vector<1x2x32xf32>
    %239 = vector.shape_cast %238 : vector<1x2x32xf32> to vector<2x32xf32>
    %240 = vector.shape_cast %235 : vector<2x32xf32> to vector<1x2x32xf32>
    tpu.vector_store %arg15[%c2_105, %c0_106, %c0_107], %240 {strides = array<i32>} : memref<3x2x32xf32, #tpu.memory_space<vmem>>, vector<1x2x32xf32>,
    %241 = arith.truncf %237 : vector<2x32xf32> to vector<2x32xbf16>
    %c0_108 = arith.constant 0 : index
    %c64_109 = arith.constant 64 : index
    %242 = vector.load %arg14[%c0_108, %c64_109] : memref<2x96xbf16, #tpu.memory_space<vmem>>, vector<2x32xbf16>
    tpu.vector_store %arg14[%c0_108, %c64_109], %241 {strides = array<i32>} : memref<2x96xbf16, #tpu.memory_space<vmem>>, vector<2x32xbf16>,
    %c2_i32 = arith.constant 2 : i32
    %c1_i32_110 = arith.constant 1 : i32
    %243 = arith.muli %c2_i32, %c1_i32_110 : i32
    %c0_i32_111 = arith.constant 0 : i32
    %244 = arith.addi %c0_i32_111, %243 : i32
    %245 = arith.index_cast %244 : i32 to index
    %c0_112 = arith.constant 0 : index
    %c0_113 = arith.constant 0 : index
    %246 = vector.load %arg1[%245, %c0_112, %c0_113] : memref<8x2x128xbf16, #tpu.memory_space<vmem>>, vector<1x2x128xbf16>
    %247 = vector.shape_cast %246 : vector<1x2x128xbf16> to vector<2x128xbf16>
    %248 = arith.extf %247 : vector<2x128xbf16> to vector<2x128xf32>
    %c0_114 = arith.constant 0 : index
    %c0_115 = arith.constant 0 : index
    %249 = vector.load %arg14[%c0_114, %c0_115] : memref<2x96xbf16, #tpu.memory_space<vmem>>, vector<2x32xbf16>
    %c0_116 = arith.constant 0 : index
    %c0_117 = arith.constant 0 : index
    %250 = vector.load %arg2[%c0_116, %c0_117] : memref<32x128xbf16, #tpu.memory_space<vmem>>, vector<32x128xbf16>
    %cst_118 = arith.constant dense<0.000000e+00> : vector<2x128xf32>
    %251 = tpu.matmul %249, %250, %cst_118 {dimension_numbers = #tpu.dot_dimension_numbers<[1], [0], [0], [1], [0, 0, 1, 1], [], []>} : vector<2x32xbf16>, vector<32x128xbf16>, vector<2x128xf32> -> vector<2x128xf32>
    %252 = arith.addf %248, %251 : vector<2x128xf32>
    %c0_119 = arith.constant 0 : index
    %c0_120 = arith.constant 0 : index
    %c0_121 = arith.constant 0 : index
    %253 = vector.load %arg15[%c0_119, %c0_120, %c0_121] : memref<3x2x32xf32, #tpu.memory_space<vmem>>, vector<1x2x32xf32>
    %254 = vector.shape_cast %253 : vector<1x2x32xf32> to vector<2x32xf32>
    %255 = vector.extract_strided_slice %252 {offsets = [0, 0], sizes = [2, 32], strides = [1, 1]} : vector<2x128xf32> to vector<2x32xf32>
    %256 = arith.negf %255 : vector<2x32xf32>
    %257 = math.exp %256 : vector<2x32xf32>
    %cst_122 = arith.constant 1.000000e+00 : f32
    %258 = vector.broadcast %cst_122 : f32 to vector<2x32xf32>
    %259 = arith.addf %258, %257 : vector<2x32xf32>
    %260 = arith.divf %258, %259 : vector<2x32xf32>
    %261 = vector.extract_strided_slice %252 {offsets = [0, 32], sizes = [2, 32], strides = [1, 1]} : vector<2x128xf32> to vector<2x32xf32>
    %262 = arith.negf %261 : vector<2x32xf32>
    %263 = math.exp %262 : vector<2x32xf32>
    %cst_123 = arith.constant 1.000000e+00 : f32
    %264 = vector.broadcast %cst_123 : f32 to vector<2x32xf32>
    %265 = arith.addf %264, %263 : vector<2x32xf32>
    %266 = arith.divf %264, %265 : vector<2x32xf32>
    %267 = vector.extract_strided_slice %252 {offsets = [0, 64], sizes = [2, 32], strides = [1, 1]} : vector<2x128xf32> to vector<2x32xf32>
    %268 = math.tanh %267 : vector<2x32xf32>
    %269 = vector.extract_strided_slice %252 {offsets = [0, 96], sizes = [2, 32], strides = [1, 1]} : vector<2x128xf32> to vector<2x32xf32>
    %270 = arith.negf %269 : vector<2x32xf32>
    %271 = math.exp %270 : vector<2x32xf32>
    %cst_124 = arith.constant 1.000000e+00 : f32
    %272 = vector.broadcast %cst_124 : f32 to vector<2x32xf32>
    %273 = arith.addf %272, %271 : vector<2x32xf32>
    %274 = arith.divf %272, %273 : vector<2x32xf32>
    %275 = arith.mulf %266, %254 : vector<2x32xf32>
    %276 = arith.mulf %260, %268 : vector<2x32xf32>
    %277 = arith.addf %275, %276 : vector<2x32xf32>
    %278 = math.tanh %277 : vector<2x32xf32>
    %279 = arith.mulf %274, %278 : vector<2x32xf32>
    %c0_125 = arith.constant 0 : index
    %c0_126 = arith.constant 0 : index
    %c0_127 = arith.constant 0 : index
    %280 = vector.load %arg15[%c0_125, %c0_126, %c0_127] : memref<3x2x32xf32, #tpu.memory_space<vmem>>, vector<1x2x32xf32>
    %281 = vector.shape_cast %280 : vector<1x2x32xf32> to vector<2x32xf32>
    %282 = vector.shape_cast %277 : vector<2x32xf32> to vector<1x2x32xf32>
    tpu.vector_store %arg15[%c0_125, %c0_126, %c0_127], %282 {strides = array<i32>} : memref<3x2x32xf32, #tpu.memory_space<vmem>>, vector<1x2x32xf32>,
    %283 = arith.truncf %279 : vector<2x32xf32> to vector<2x32xbf16>
    %c0_128 = arith.constant 0 : index
    %c0_129 = arith.constant 0 : index
    %284 = vector.load %arg14[%c0_128, %c0_129] : memref<2x96xbf16, #tpu.memory_space<vmem>>, vector<2x32xbf16>
    tpu.vector_store %arg14[%c0_128, %c0_129], %283 {strides = array<i32>} : memref<2x96xbf16, #tpu.memory_space<vmem>>, vector<2x32xbf16>,
    %c0_130 = arith.constant 0 : index
    %c0_131 = arith.constant 0 : index
    %285 = vector.load %arg14[%c0_130, %c0_131] : memref<2x96xbf16, #tpu.memory_space<vmem>>, vector<2x64xbf16>
    %c0_132 = arith.constant 0 : index
    %c0_133 = arith.constant 0 : index
    %c0_134 = arith.constant 0 : index
    %286 = vector.load %arg3[%c0_132, %c0_133, %c0_134] : memref<2x64x128xbf16, #tpu.memory_space<vmem>>, vector<1x64x128xbf16>
    %287 = vector.shape_cast %286 : vector<1x64x128xbf16> to vector<64x128xbf16>
    %cst_135 = arith.constant dense<0.000000e+00> : vector<2x128xf32>
    %288 = tpu.matmul %285, %287, %cst_135 {dimension_numbers = #tpu.dot_dimension_numbers<[1], [0], [0], [1], [0, 0, 1, 1], [], []>} : vector<2x64xbf16>, vector<64x128xbf16>, vector<2x128xf32> -> vector<2x128xf32>
    %289 = arith.addf %288, %6 : vector<2x128xf32>
    %c1_136 = arith.constant 1 : index
    %c0_137 = arith.constant 0 : index
    %c0_138 = arith.constant 0 : index
    %290 = vector.load %arg15[%c1_136, %c0_137, %c0_138] : memref<3x2x32xf32, #tpu.memory_space<vmem>>, vector<1x2x32xf32>
    %291 = vector.shape_cast %290 : vector<1x2x32xf32> to vector<2x32xf32>
    %292 = vector.extract_strided_slice %289 {offsets = [0, 0], sizes = [2, 32], strides = [1, 1]} : vector<2x128xf32> to vector<2x32xf32>
    %293 = arith.negf %292 : vector<2x32xf32>
    %294 = math.exp %293 : vector<2x32xf32>
    %cst_139 = arith.constant 1.000000e+00 : f32
    %295 = vector.broadcast %cst_139 : f32 to vector<2x32xf32>
    %296 = arith.addf %295, %294 : vector<2x32xf32>
    %297 = arith.divf %295, %296 : vector<2x32xf32>
    %298 = vector.extract_strided_slice %289 {offsets = [0, 32], sizes = [2, 32], strides = [1, 1]} : vector<2x128xf32> to vector<2x32xf32>
    %299 = arith.negf %298 : vector<2x32xf32>
    %300 = math.exp %299 : vector<2x32xf32>
    %cst_140 = arith.constant 1.000000e+00 : f32
    %301 = vector.broadcast %cst_140 : f32 to vector<2x32xf32>
    %302 = arith.addf %301, %300 : vector<2x32xf32>
    %303 = arith.divf %301, %302 : vector<2x32xf32>
    %304 = vector.extract_strided_slice %289 {offsets = [0, 64], sizes = [2, 32], strides = [1, 1]} : vector<2x128xf32> to vector<2x32xf32>
    %305 = math.tanh %304 : vector<2x32xf32>
    %306 = vector.extract_strided_slice %289 {offsets = [0, 96], sizes = [2, 32], strides = [1, 1]} : vector<2x128xf32> to vector<2x32xf32>
    %307 = arith.negf %306 : vector<2x32xf32>
    %308 = math.exp %307 : vector<2x32xf32>
    %cst_141 = arith.constant 1.000000e+00 : f32
    %309 = vector.broadcast %cst_141 : f32 to vector<2x32xf32>
    %310 = arith.addf %309, %308 : vector<2x32xf32>
    %311 = arith.divf %309, %310 : vector<2x32xf32>
    %312 = arith.mulf %303, %291 : vector<2x32xf32>
    %313 = arith.mulf %297, %305 : vector<2x32xf32>
    %314 = arith.addf %312, %313 : vector<2x32xf32>
    %315 = math.tanh %314 : vector<2x32xf32>
    %316 = arith.mulf %311, %315 : vector<2x32xf32>
    %c1_142 = arith.constant 1 : index
    %c0_143 = arith.constant 0 : index
    %c0_144 = arith.constant 0 : index
    %317 = vector.load %arg15[%c1_142, %c0_143, %c0_144] : memref<3x2x32xf32, #tpu.memory_space<vmem>>, vector<1x2x32xf32>
    %318 = vector.shape_cast %317 : vector<1x2x32xf32> to vector<2x32xf32>
    %319 = vector.shape_cast %314 : vector<2x32xf32> to vector<1x2x32xf32>
    tpu.vector_store %arg15[%c1_142, %c0_143, %c0_144], %319 {strides = array<i32>} : memref<3x2x32xf32, #tpu.memory_space<vmem>>, vector<1x2x32xf32>,
    %320 = arith.truncf %316 : vector<2x32xf32> to vector<2x32xbf16>
    %c0_145 = arith.constant 0 : index
    %c32_146 = arith.constant 32 : index
    %321 = vector.load %arg14[%c0_145, %c32_146] : memref<2x96xbf16, #tpu.memory_space<vmem>>, vector<2x32xbf16>
    tpu.vector_store %arg14[%c0_145, %c32_146], %320 {strides = array<i32>} : memref<2x96xbf16, #tpu.memory_space<vmem>>, vector<2x32xbf16>,
    %c0_147 = arith.constant 0 : index
    %c32_148 = arith.constant 32 : index
    %322 = vector.load %arg14[%c0_147, %c32_148] : memref<2x96xbf16, #tpu.memory_space<vmem>>, vector<2x64xbf16>
    %c1_149 = arith.constant 1 : index
    %c0_150 = arith.constant 0 : index
    %c0_151 = arith.constant 0 : index
    %323 = vector.load %arg3[%c1_149, %c0_150, %c0_151] : memref<2x64x128xbf16, #tpu.memory_space<vmem>>, vector<1x64x128xbf16>
    %324 = vector.shape_cast %323 : vector<1x64x128xbf16> to vector<64x128xbf16>
    %cst_152 = arith.constant dense<0.000000e+00> : vector<2x128xf32>
    %325 = tpu.matmul %322, %324, %cst_152 {dimension_numbers = #tpu.dot_dimension_numbers<[1], [0], [0], [1], [0, 0, 1, 1], [], []>} : vector<2x64xbf16>, vector<64x128xbf16>, vector<2x128xf32> -> vector<2x128xf32>
    %326 = arith.addf %325, %10 : vector<2x128xf32>
    %c2_153 = arith.constant 2 : index
    %c0_154 = arith.constant 0 : index
    %c0_155 = arith.constant 0 : index
    %327 = vector.load %arg15[%c2_153, %c0_154, %c0_155] : memref<3x2x32xf32, #tpu.memory_space<vmem>>, vector<1x2x32xf32>
    %328 = vector.shape_cast %327 : vector<1x2x32xf32> to vector<2x32xf32>
    %329 = vector.extract_strided_slice %326 {offsets = [0, 0], sizes = [2, 32], strides = [1, 1]} : vector<2x128xf32> to vector<2x32xf32>
    %330 = arith.negf %329 : vector<2x32xf32>
    %331 = math.exp %330 : vector<2x32xf32>
    %cst_156 = arith.constant 1.000000e+00 : f32
    %332 = vector.broadcast %cst_156 : f32 to vector<2x32xf32>
    %333 = arith.addf %332, %331 : vector<2x32xf32>
    %334 = arith.divf %332, %333 : vector<2x32xf32>
    %335 = vector.extract_strided_slice %326 {offsets = [0, 32], sizes = [2, 32], strides = [1, 1]} : vector<2x128xf32> to vector<2x32xf32>
    %336 = arith.negf %335 : vector<2x32xf32>
    %337 = math.exp %336 : vector<2x32xf32>
    %cst_157 = arith.constant 1.000000e+00 : f32
    %338 = vector.broadcast %cst_157 : f32 to vector<2x32xf32>
    %339 = arith.addf %338, %337 : vector<2x32xf32>
    %340 = arith.divf %338, %339 : vector<2x32xf32>
    %341 = vector.extract_strided_slice %326 {offsets = [0, 64], sizes = [2, 32], strides = [1, 1]} : vector<2x128xf32> to vector<2x32xf32>
    %342 = math.tanh %341 : vector<2x32xf32>
    %343 = vector.extract_strided_slice %326 {offsets = [0, 96], sizes = [2, 32], strides = [1, 1]} : vector<2x128xf32> to vector<2x32xf32>
    %344 = arith.negf %343 : vector<2x32xf32>
    %345 = math.exp %344 : vector<2x32xf32>
    %cst_158 = arith.constant 1.000000e+00 : f32
    %346 = vector.broadcast %cst_158 : f32 to vector<2x32xf32>
    %347 = arith.addf %346, %345 : vector<2x32xf32>
    %348 = arith.divf %346, %347 : vector<2x32xf32>
    %349 = arith.mulf %340, %328 : vector<2x32xf32>
    %350 = arith.mulf %334, %342 : vector<2x32xf32>
    %351 = arith.addf %349, %350 : vector<2x32xf32>
    %352 = math.tanh %351 : vector<2x32xf32>
    %353 = arith.mulf %348, %352 : vector<2x32xf32>
    %c2_159 = arith.constant 2 : index
    %c0_160 = arith.constant 0 : index
    %c0_161 = arith.constant 0 : index
    %354 = vector.load %arg15[%c2_159, %c0_160, %c0_161] : memref<3x2x32xf32, #tpu.memory_space<vmem>>, vector<1x2x32xf32>
    %355 = vector.shape_cast %354 : vector<1x2x32xf32> to vector<2x32xf32>
    %356 = vector.shape_cast %351 : vector<2x32xf32> to vector<1x2x32xf32>
    tpu.vector_store %arg15[%c2_159, %c0_160, %c0_161], %356 {strides = array<i32>} : memref<3x2x32xf32, #tpu.memory_space<vmem>>, vector<1x2x32xf32>,
    %357 = arith.truncf %353 : vector<2x32xf32> to vector<2x32xbf16>
    %c0_162 = arith.constant 0 : index
    %c64_163 = arith.constant 64 : index
    %358 = vector.load %arg14[%c0_162, %c64_163] : memref<2x96xbf16, #tpu.memory_space<vmem>>, vector<2x32xbf16>
    tpu.vector_store %arg14[%c0_162, %c64_163], %357 {strides = array<i32>} : memref<2x96xbf16, #tpu.memory_space<vmem>>, vector<2x32xbf16>,
    %c3_i32 = arith.constant 3 : i32
    %c1_i32_164 = arith.constant 1 : i32
    %359 = arith.muli %c3_i32, %c1_i32_164 : i32
    %c0_i32_165 = arith.constant 0 : i32
    %360 = arith.addi %c0_i32_165, %359 : i32
    %361 = arith.index_cast %360 : i32 to index
    %c0_166 = arith.constant 0 : index
    %c0_167 = arith.constant 0 : index
    %362 = vector.load %arg1[%361, %c0_166, %c0_167] : memref<8x2x128xbf16, #tpu.memory_space<vmem>>, vector<1x2x128xbf16>
    %363 = vector.shape_cast %362 : vector<1x2x128xbf16> to vector<2x128xbf16>
    %364 = arith.extf %363 : vector<2x128xbf16> to vector<2x128xf32>
    %c0_168 = arith.constant 0 : index
    %c0_169 = arith.constant 0 : index
    %365 = vector.load %arg14[%c0_168, %c0_169] : memref<2x96xbf16, #tpu.memory_space<vmem>>, vector<2x32xbf16>
    %c0_170 = arith.constant 0 : index
    %c0_171 = arith.constant 0 : index
    %366 = vector.load %arg2[%c0_170, %c0_171] : memref<32x128xbf16, #tpu.memory_space<vmem>>, vector<32x128xbf16>
    %cst_172 = arith.constant dense<0.000000e+00> : vector<2x128xf32>
    %367 = tpu.matmul %365, %366, %cst_172 {dimension_numbers = #tpu.dot_dimension_numbers<[1], [0], [0], [1], [0, 0, 1, 1], [], []>} : vector<2x32xbf16>, vector<32x128xbf16>, vector<2x128xf32> -> vector<2x128xf32>
    %368 = arith.addf %364, %367 : vector<2x128xf32>
    %c0_173 = arith.constant 0 : index
    %c0_174 = arith.constant 0 : index
    %c0_175 = arith.constant 0 : index
    %369 = vector.load %arg15[%c0_173, %c0_174, %c0_175] : memref<3x2x32xf32, #tpu.memory_space<vmem>>, vector<1x2x32xf32>
    %370 = vector.shape_cast %369 : vector<1x2x32xf32> to vector<2x32xf32>
    %371 = vector.extract_strided_slice %368 {offsets = [0, 0], sizes = [2, 32], strides = [1, 1]} : vector<2x128xf32> to vector<2x32xf32>
    %372 = arith.negf %371 : vector<2x32xf32>
    %373 = math.exp %372 : vector<2x32xf32>
    %cst_176 = arith.constant 1.000000e+00 : f32
    %374 = vector.broadcast %cst_176 : f32 to vector<2x32xf32>
    %375 = arith.addf %374, %373 : vector<2x32xf32>
    %376 = arith.divf %374, %375 : vector<2x32xf32>
    %377 = vector.extract_strided_slice %368 {offsets = [0, 32], sizes = [2, 32], strides = [1, 1]} : vector<2x128xf32> to vector<2x32xf32>
    %378 = arith.negf %377 : vector<2x32xf32>
    %379 = math.exp %378 : vector<2x32xf32>
    %cst_177 = arith.constant 1.000000e+00 : f32
    %380 = vector.broadcast %cst_177 : f32 to vector<2x32xf32>
    %381 = arith.addf %380, %379 : vector<2x32xf32>
    %382 = arith.divf %380, %381 : vector<2x32xf32>
    %383 = vector.extract_strided_slice %368 {offsets = [0, 64], sizes = [2, 32], strides = [1, 1]} : vector<2x128xf32> to vector<2x32xf32>
    %384 = math.tanh %383 : vector<2x32xf32>
    %385 = vector.extract_strided_slice %368 {offsets = [0, 96], sizes = [2, 32], strides = [1, 1]} : vector<2x128xf32> to vector<2x32xf32>
    %386 = arith.negf %385 : vector<2x32xf32>
    %387 = math.exp %386 : vector<2x32xf32>
    %cst_178 = arith.constant 1.000000e+00 : f32
    %388 = vector.broadcast %cst_178 : f32 to vector<2x32xf32>
    %389 = arith.addf %388, %387 : vector<2x32xf32>
    %390 = arith.divf %388, %389 : vector<2x32xf32>
    %391 = arith.mulf %382, %370 : vector<2x32xf32>
    %392 = arith.mulf %376, %384 : vector<2x32xf32>
    %393 = arith.addf %391, %392 : vector<2x32xf32>
    %394 = math.tanh %393 : vector<2x32xf32>
    %395 = arith.mulf %390, %394 : vector<2x32xf32>
    %c0_179 = arith.constant 0 : index
    %c0_180 = arith.constant 0 : index
    %c0_181 = arith.constant 0 : index
    %396 = vector.load %arg15[%c0_179, %c0_180, %c0_181] : memref<3x2x32xf32, #tpu.memory_space<vmem>>, vector<1x2x32xf32>
    %397 = vector.shape_cast %396 : vector<1x2x32xf32> to vector<2x32xf32>
    %398 = vector.shape_cast %393 : vector<2x32xf32> to vector<1x2x32xf32>
    tpu.vector_store %arg15[%c0_179, %c0_180, %c0_181], %398 {strides = array<i32>} : memref<3x2x32xf32, #tpu.memory_space<vmem>>, vector<1x2x32xf32>,
    %399 = arith.truncf %395 : vector<2x32xf32> to vector<2x32xbf16>
    %c0_182 = arith.constant 0 : index
    %c0_183 = arith.constant 0 : index
    %400 = vector.load %arg14[%c0_182, %c0_183] : memref<2x96xbf16, #tpu.memory_space<vmem>>, vector<2x32xbf16>
    tpu.vector_store %arg14[%c0_182, %c0_183], %399 {strides = array<i32>} : memref<2x96xbf16, #tpu.memory_space<vmem>>, vector<2x32xbf16>,
    %c0_184 = arith.constant 0 : index
    %c0_185 = arith.constant 0 : index
    %401 = vector.load %arg14[%c0_184, %c0_185] : memref<2x96xbf16, #tpu.memory_space<vmem>>, vector<2x64xbf16>
    %c0_186 = arith.constant 0 : index
    %c0_187 = arith.constant 0 : index
    %c0_188 = arith.constant 0 : index
    %402 = vector.load %arg3[%c0_186, %c0_187, %c0_188] : memref<2x64x128xbf16, #tpu.memory_space<vmem>>, vector<1x64x128xbf16>
    %403 = vector.shape_cast %402 : vector<1x64x128xbf16> to vector<64x128xbf16>
    %cst_189 = arith.constant dense<0.000000e+00> : vector<2x128xf32>
    %404 = tpu.matmul %401, %403, %cst_189 {dimension_numbers = #tpu.dot_dimension_numbers<[1], [0], [0], [1], [0, 0, 1, 1], [], []>} : vector<2x64xbf16>, vector<64x128xbf16>, vector<2x128xf32> -> vector<2x128xf32>
    %405 = arith.addf %404, %6 : vector<2x128xf32>
    %c1_190 = arith.constant 1 : index
    %c0_191 = arith.constant 0 : index
    %c0_192 = arith.constant 0 : index
    %406 = vector.load %arg15[%c1_190, %c0_191, %c0_192] : memref<3x2x32xf32, #tpu.memory_space<vmem>>, vector<1x2x32xf32>
    %407 = vector.shape_cast %406 : vector<1x2x32xf32> to vector<2x32xf32>
    %408 = vector.extract_strided_slice %405 {offsets = [0, 0], sizes = [2, 32], strides = [1, 1]} : vector<2x128xf32> to vector<2x32xf32>
    %409 = arith.negf %408 : vector<2x32xf32>
    %410 = math.exp %409 : vector<2x32xf32>
    %cst_193 = arith.constant 1.000000e+00 : f32
    %411 = vector.broadcast %cst_193 : f32 to vector<2x32xf32>
    %412 = arith.addf %411, %410 : vector<2x32xf32>
    %413 = arith.divf %411, %412 : vector<2x32xf32>
    %414 = vector.extract_strided_slice %405 {offsets = [0, 32], sizes = [2, 32], strides = [1, 1]} : vector<2x128xf32> to vector<2x32xf32>
    %415 = arith.negf %414 : vector<2x32xf32>
    %416 = math.exp %415 : vector<2x32xf32>
    %cst_194 = arith.constant 1.000000e+00 : f32
    %417 = vector.broadcast %cst_194 : f32 to vector<2x32xf32>
    %418 = arith.addf %417, %416 : vector<2x32xf32>
    %419 = arith.divf %417, %418 : vector<2x32xf32>
    %420 = vector.extract_strided_slice %405 {offsets = [0, 64], sizes = [2, 32], strides = [1, 1]} : vector<2x128xf32> to vector<2x32xf32>
    %421 = math.tanh %420 : vector<2x32xf32>
    %422 = vector.extract_strided_slice %405 {offsets = [0, 96], sizes = [2, 32], strides = [1, 1]} : vector<2x128xf32> to vector<2x32xf32>
    %423 = arith.negf %422 : vector<2x32xf32>
    %424 = math.exp %423 : vector<2x32xf32>
    %cst_195 = arith.constant 1.000000e+00 : f32
    %425 = vector.broadcast %cst_195 : f32 to vector<2x32xf32>
    %426 = arith.addf %425, %424 : vector<2x32xf32>
    %427 = arith.divf %425, %426 : vector<2x32xf32>
    %428 = arith.mulf %419, %407 : vector<2x32xf32>
    %429 = arith.mulf %413, %421 : vector<2x32xf32>
    %430 = arith.addf %428, %429 : vector<2x32xf32>
    %431 = math.tanh %430 : vector<2x32xf32>
    %432 = arith.mulf %427, %431 : vector<2x32xf32>
    %c1_196 = arith.constant 1 : index
    %c0_197 = arith.constant 0 : index
    %c0_198 = arith.constant 0 : index
    %433 = vector.load %arg15[%c1_196, %c0_197, %c0_198] : memref<3x2x32xf32, #tpu.memory_space<vmem>>, vector<1x2x32xf32>
    %434 = vector.shape_cast %433 : vector<1x2x32xf32> to vector<2x32xf32>
    %435 = vector.shape_cast %430 : vector<2x32xf32> to vector<1x2x32xf32>
    tpu.vector_store %arg15[%c1_196, %c0_197, %c0_198], %435 {strides = array<i32>} : memref<3x2x32xf32, #tpu.memory_space<vmem>>, vector<1x2x32xf32>,
    %436 = arith.truncf %432 : vector<2x32xf32> to vector<2x32xbf16>
    %c0_199 = arith.constant 0 : index
    %c32_200 = arith.constant 32 : index
    %437 = vector.load %arg14[%c0_199, %c32_200] : memref<2x96xbf16, #tpu.memory_space<vmem>>, vector<2x32xbf16>
    tpu.vector_store %arg14[%c0_199, %c32_200], %436 {strides = array<i32>} : memref<2x96xbf16, #tpu.memory_space<vmem>>, vector<2x32xbf16>,
    %c0_201 = arith.constant 0 : index
    %c32_202 = arith.constant 32 : index
    %438 = vector.load %arg14[%c0_201, %c32_202] : memref<2x96xbf16, #tpu.memory_space<vmem>>, vector<2x64xbf16>
    %c1_203 = arith.constant 1 : index
    %c0_204 = arith.constant 0 : index
    %c0_205 = arith.constant 0 : index
    %439 = vector.load %arg3[%c1_203, %c0_204, %c0_205] : memref<2x64x128xbf16, #tpu.memory_space<vmem>>, vector<1x64x128xbf16>
    %440 = vector.shape_cast %439 : vector<1x64x128xbf16> to vector<64x128xbf16>
    %cst_206 = arith.constant dense<0.000000e+00> : vector<2x128xf32>
    %441 = tpu.matmul %438, %440, %cst_206 {dimension_numbers = #tpu.dot_dimension_numbers<[1], [0], [0], [1], [0, 0, 1, 1], [], []>} : vector<2x64xbf16>, vector<64x128xbf16>, vector<2x128xf32> -> vector<2x128xf32>
    %442 = arith.addf %441, %10 : vector<2x128xf32>
    %c2_207 = arith.constant 2 : index
    %c0_208 = arith.constant 0 : index
    %c0_209 = arith.constant 0 : index
    %443 = vector.load %arg15[%c2_207, %c0_208, %c0_209] : memref<3x2x32xf32, #tpu.memory_space<vmem>>, vector<1x2x32xf32>
    %444 = vector.shape_cast %443 : vector<1x2x32xf32> to vector<2x32xf32>
    %445 = vector.extract_strided_slice %442 {offsets = [0, 0], sizes = [2, 32], strides = [1, 1]} : vector<2x128xf32> to vector<2x32xf32>
    %446 = arith.negf %445 : vector<2x32xf32>
    %447 = math.exp %446 : vector<2x32xf32>
    %cst_210 = arith.constant 1.000000e+00 : f32
    %448 = vector.broadcast %cst_210 : f32 to vector<2x32xf32>
    %449 = arith.addf %448, %447 : vector<2x32xf32>
    %450 = arith.divf %448, %449 : vector<2x32xf32>
    %451 = vector.extract_strided_slice %442 {offsets = [0, 32], sizes = [2, 32], strides = [1, 1]} : vector<2x128xf32> to vector<2x32xf32>
    %452 = arith.negf %451 : vector<2x32xf32>
    %453 = math.exp %452 : vector<2x32xf32>
    %cst_211 = arith.constant 1.000000e+00 : f32
    %454 = vector.broadcast %cst_211 : f32 to vector<2x32xf32>
    %455 = arith.addf %454, %453 : vector<2x32xf32>
    %456 = arith.divf %454, %455 : vector<2x32xf32>
    %457 = vector.extract_strided_slice %442 {offsets = [0, 64], sizes = [2, 32], strides = [1, 1]} : vector<2x128xf32> to vector<2x32xf32>
    %458 = math.tanh %457 : vector<2x32xf32>
    %459 = vector.extract_strided_slice %442 {offsets = [0, 96], sizes = [2, 32], strides = [1, 1]} : vector<2x128xf32> to vector<2x32xf32>
    %460 = arith.negf %459 : vector<2x32xf32>
    %461 = math.exp %460 : vector<2x32xf32>
    %cst_212 = arith.constant 1.000000e+00 : f32
    %462 = vector.broadcast %cst_212 : f32 to vector<2x32xf32>
    %463 = arith.addf %462, %461 : vector<2x32xf32>
    %464 = arith.divf %462, %463 : vector<2x32xf32>
    %465 = arith.mulf %456, %444 : vector<2x32xf32>
    %466 = arith.mulf %450, %458 : vector<2x32xf32>
    %467 = arith.addf %465, %466 : vector<2x32xf32>
    %468 = math.tanh %467 : vector<2x32xf32>
    %469 = arith.mulf %464, %468 : vector<2x32xf32>
    %c2_213 = arith.constant 2 : index
    %c0_214 = arith.constant 0 : index
    %c0_215 = arith.constant 0 : index
    %470 = vector.load %arg15[%c2_213, %c0_214, %c0_215] : memref<3x2x32xf32, #tpu.memory_space<vmem>>, vector<1x2x32xf32>
    %471 = vector.shape_cast %470 : vector<1x2x32xf32> to vector<2x32xf32>
    %472 = vector.shape_cast %467 : vector<2x32xf32> to vector<1x2x32xf32>
    tpu.vector_store %arg15[%c2_213, %c0_214, %c0_215], %472 {strides = array<i32>} : memref<3x2x32xf32, #tpu.memory_space<vmem>>, vector<1x2x32xf32>,
    %473 = arith.truncf %469 : vector<2x32xf32> to vector<2x32xbf16>
    %c0_216 = arith.constant 0 : index
    %c64_217 = arith.constant 64 : index
    %474 = vector.load %arg14[%c0_216, %c64_217] : memref<2x96xbf16, #tpu.memory_space<vmem>>, vector<2x32xbf16>
    tpu.vector_store %arg14[%c0_216, %c64_217], %473 {strides = array<i32>} : memref<2x96xbf16, #tpu.memory_space<vmem>>, vector<2x32xbf16>,
    %c4_i32 = arith.constant 4 : i32
    %c1_i32_218 = arith.constant 1 : i32
    %475 = arith.muli %c4_i32, %c1_i32_218 : i32
    %c0_i32_219 = arith.constant 0 : i32
    %476 = arith.addi %c0_i32_219, %475 : i32
    %477 = arith.index_cast %476 : i32 to index
    %c0_220 = arith.constant 0 : index
    %c0_221 = arith.constant 0 : index
    %478 = vector.load %arg1[%477, %c0_220, %c0_221] : memref<8x2x128xbf16, #tpu.memory_space<vmem>>, vector<1x2x128xbf16>
    %479 = vector.shape_cast %478 : vector<1x2x128xbf16> to vector<2x128xbf16>
    %480 = arith.extf %479 : vector<2x128xbf16> to vector<2x128xf32>
    %c0_222 = arith.constant 0 : index
    %c0_223 = arith.constant 0 : index
    %481 = vector.load %arg14[%c0_222, %c0_223] : memref<2x96xbf16, #tpu.memory_space<vmem>>, vector<2x32xbf16>
    %c0_224 = arith.constant 0 : index
    %c0_225 = arith.constant 0 : index
    %482 = vector.load %arg2[%c0_224, %c0_225] : memref<32x128xbf16, #tpu.memory_space<vmem>>, vector<32x128xbf16>
    %cst_226 = arith.constant dense<0.000000e+00> : vector<2x128xf32>
    %483 = tpu.matmul %481, %482, %cst_226 {dimension_numbers = #tpu.dot_dimension_numbers<[1], [0], [0], [1], [0, 0, 1, 1], [], []>} : vector<2x32xbf16>, vector<32x128xbf16>, vector<2x128xf32> -> vector<2x128xf32>
    %484 = arith.addf %480, %483 : vector<2x128xf32>
    %c0_227 = arith.constant 0 : index
    %c0_228 = arith.constant 0 : index
    %c0_229 = arith.constant 0 : index
    %485 = vector.load %arg15[%c0_227, %c0_228, %c0_229] : memref<3x2x32xf32, #tpu.memory_space<vmem>>, vector<1x2x32xf32>
    %486 = vector.shape_cast %485 : vector<1x2x32xf32> to vector<2x32xf32>
    %487 = vector.extract_strided_slice %484 {offsets = [0, 0], sizes = [2, 32], strides = [1, 1]} : vector<2x128xf32> to vector<2x32xf32>
    %488 = arith.negf %487 : vector<2x32xf32>
    %489 = math.exp %488 : vector<2x32xf32>
    %cst_230 = arith.constant 1.000000e+00 : f32
    %490 = vector.broadcast %cst_230 : f32 to vector<2x32xf32>
    %491 = arith.addf %490, %489 : vector<2x32xf32>
    %492 = arith.divf %490, %491 : vector<2x32xf32>
    %493 = vector.extract_strided_slice %484 {offsets = [0, 32], sizes = [2, 32], strides = [1, 1]} : vector<2x128xf32> to vector<2x32xf32>
    %494 = arith.negf %493 : vector<2x32xf32>
    %495 = math.exp %494 : vector<2x32xf32>
    %cst_231 = arith.constant 1.000000e+00 : f32
    %496 = vector.broadcast %cst_231 : f32 to vector<2x32xf32>
    %497 = arith.addf %496, %495 : vector<2x32xf32>
    %498 = arith.divf %496, %497 : vector<2x32xf32>
    %499 = vector.extract_strided_slice %484 {offsets = [0, 64], sizes = [2, 32], strides = [1, 1]} : vector<2x128xf32> to vector<2x32xf32>
    %500 = math.tanh %499 : vector<2x32xf32>
    %501 = vector.extract_strided_slice %484 {offsets = [0, 96], sizes = [2, 32], strides = [1, 1]} : vector<2x128xf32> to vector<2x32xf32>
    %502 = arith.negf %501 : vector<2x32xf32>
    %503 = math.exp %502 : vector<2x32xf32>
    %cst_232 = arith.constant 1.000000e+00 : f32
    %504 = vector.broadcast %cst_232 : f32 to vector<2x32xf32>
    %505 = arith.addf %504, %503 : vector<2x32xf32>
    %506 = arith.divf %504, %505 : vector<2x32xf32>
    %507 = arith.mulf %498, %486 : vector<2x32xf32>
    %508 = arith.mulf %492, %500 : vector<2x32xf32>
    %509 = arith.addf %507, %508 : vector<2x32xf32>
    %510 = math.tanh %509 : vector<2x32xf32>
    %511 = arith.mulf %506, %510 : vector<2x32xf32>
    %c0_233 = arith.constant 0 : index
    %c0_234 = arith.constant 0 : index
    %c0_235 = arith.constant 0 : index
    %512 = vector.load %arg15[%c0_233, %c0_234, %c0_235] : memref<3x2x32xf32, #tpu.memory_space<vmem>>, vector<1x2x32xf32>
    %513 = vector.shape_cast %512 : vector<1x2x32xf32> to vector<2x32xf32>
    %514 = vector.shape_cast %509 : vector<2x32xf32> to vector<1x2x32xf32>
    tpu.vector_store %arg15[%c0_233, %c0_234, %c0_235], %514 {strides = array<i32>} : memref<3x2x32xf32, #tpu.memory_space<vmem>>, vector<1x2x32xf32>,
    %515 = arith.truncf %511 : vector<2x32xf32> to vector<2x32xbf16>
    %c0_236 = arith.constant 0 : index
    %c0_237 = arith.constant 0 : index
    %516 = vector.load %arg14[%c0_236, %c0_237] : memref<2x96xbf16, #tpu.memory_space<vmem>>, vector<2x32xbf16>
    tpu.vector_store %arg14[%c0_236, %c0_237], %515 {strides = array<i32>} : memref<2x96xbf16, #tpu.memory_space<vmem>>, vector<2x32xbf16>,
    %c0_238 = arith.constant 0 : index
    %c0_239 = arith.constant 0 : index
    %517 = vector.load %arg14[%c0_238, %c0_239] : memref<2x96xbf16, #tpu.memory_space<vmem>>, vector<2x64xbf16>
    %c0_240 = arith.constant 0 : index
    %c0_241 = arith.constant 0 : index
    %c0_242 = arith.constant 0 : index
    %518 = vector.load %arg3[%c0_240, %c0_241, %c0_242] : memref<2x64x128xbf16, #tpu.memory_space<vmem>>, vector<1x64x128xbf16>
    %519 = vector.shape_cast %518 : vector<1x64x128xbf16> to vector<64x128xbf16>
    %cst_243 = arith.constant dense<0.000000e+00> : vector<2x128xf32>
    %520 = tpu.matmul %517, %519, %cst_243 {dimension_numbers = #tpu.dot_dimension_numbers<[1], [0], [0], [1], [0, 0, 1, 1], [], []>} : vector<2x64xbf16>, vector<64x128xbf16>, vector<2x128xf32> -> vector<2x128xf32>
    %521 = arith.addf %520, %6 : vector<2x128xf32>
    %c1_244 = arith.constant 1 : index
    %c0_245 = arith.constant 0 : index
    %c0_246 = arith.constant 0 : index
    %522 = vector.load %arg15[%c1_244, %c0_245, %c0_246] : memref<3x2x32xf32, #tpu.memory_space<vmem>>, vector<1x2x32xf32>
    %523 = vector.shape_cast %522 : vector<1x2x32xf32> to vector<2x32xf32>
    %524 = vector.extract_strided_slice %521 {offsets = [0, 0], sizes = [2, 32], strides = [1, 1]} : vector<2x128xf32> to vector<2x32xf32>
    %525 = arith.negf %524 : vector<2x32xf32>
    %526 = math.exp %525 : vector<2x32xf32>
    %cst_247 = arith.constant 1.000000e+00 : f32
    %527 = vector.broadcast %cst_247 : f32 to vector<2x32xf32>
    %528 = arith.addf %527, %526 : vector<2x32xf32>
    %529 = arith.divf %527, %528 : vector<2x32xf32>
    %530 = vector.extract_strided_slice %521 {offsets = [0, 32], sizes = [2, 32], strides = [1, 1]} : vector<2x128xf32> to vector<2x32xf32>
    %531 = arith.negf %530 : vector<2x32xf32>
    %532 = math.exp %531 : vector<2x32xf32>
    %cst_248 = arith.constant 1.000000e+00 : f32
    %533 = vector.broadcast %cst_248 : f32 to vector<2x32xf32>
    %534 = arith.addf %533, %532 : vector<2x32xf32>
    %535 = arith.divf %533, %534 : vector<2x32xf32>
    %536 = vector.extract_strided_slice %521 {offsets = [0, 64], sizes = [2, 32], strides = [1, 1]} : vector<2x128xf32> to vector<2x32xf32>
    %537 = math.tanh %536 : vector<2x32xf32>
    %538 = vector.extract_strided_slice %521 {offsets = [0, 96], sizes = [2, 32], strides = [1, 1]} : vector<2x128xf32> to vector<2x32xf32>
    %539 = arith.negf %538 : vector<2x32xf32>
    %540 = math.exp %539 : vector<2x32xf32>
    %cst_249 = arith.constant 1.000000e+00 : f32
    %541 = vector.broadcast %cst_249 : f32 to vector<2x32xf32>
    %542 = arith.addf %541, %540 : vector<2x32xf32>
    %543 = arith.divf %541, %542 : vector<2x32xf32>
    %544 = arith.mulf %535, %523 : vector<2x32xf32>
    %545 = arith.mulf %529, %537 : vector<2x32xf32>
    %546 = arith.addf %544, %545 : vector<2x32xf32>
    %547 = math.tanh %546 : vector<2x32xf32>
    %548 = arith.mulf %543, %547 : vector<2x32xf32>
    %c1_250 = arith.constant 1 : index
    %c0_251 = arith.constant 0 : index
    %c0_252 = arith.constant 0 : index
    %549 = vector.load %arg15[%c1_250, %c0_251, %c0_252] : memref<3x2x32xf32, #tpu.memory_space<vmem>>, vector<1x2x32xf32>
    %550 = vector.shape_cast %549 : vector<1x2x32xf32> to vector<2x32xf32>
    %551 = vector.shape_cast %546 : vector<2x32xf32> to vector<1x2x32xf32>
    tpu.vector_store %arg15[%c1_250, %c0_251, %c0_252], %551 {strides = array<i32>} : memref<3x2x32xf32, #tpu.memory_space<vmem>>, vector<1x2x32xf32>,
    %552 = arith.truncf %548 : vector<2x32xf32> to vector<2x32xbf16>
    %c0_253 = arith.constant 0 : index
    %c32_254 = arith.constant 32 : index
    %553 = vector.load %arg14[%c0_253, %c32_254] : memref<2x96xbf16, #tpu.memory_space<vmem>>, vector<2x32xbf16>
    tpu.vector_store %arg14[%c0_253, %c32_254], %552 {strides = array<i32>} : memref<2x96xbf16, #tpu.memory_space<vmem>>, vector<2x32xbf16>,
    %c0_255 = arith.constant 0 : index
    %c32_256 = arith.constant 32 : index
    %554 = vector.load %arg14[%c0_255, %c32_256] : memref<2x96xbf16, #tpu.memory_space<vmem>>, vector<2x64xbf16>
    %c1_257 = arith.constant 1 : index
    %c0_258 = arith.constant 0 : index
    %c0_259 = arith.constant 0 : index
    %555 = vector.load %arg3[%c1_257, %c0_258, %c0_259] : memref<2x64x128xbf16, #tpu.memory_space<vmem>>, vector<1x64x128xbf16>
    %556 = vector.shape_cast %555 : vector<1x64x128xbf16> to vector<64x128xbf16>
    %cst_260 = arith.constant dense<0.000000e+00> : vector<2x128xf32>
    %557 = tpu.matmul %554, %556, %cst_260 {dimension_numbers = #tpu.dot_dimension_numbers<[1], [0], [0], [1], [0, 0, 1, 1], [], []>} : vector<2x64xbf16>, vector<64x128xbf16>, vector<2x128xf32> -> vector<2x128xf32>
    %558 = arith.addf %557, %10 : vector<2x128xf32>
    %c2_261 = arith.constant 2 : index
    %c0_262 = arith.constant 0 : index
    %c0_263 = arith.constant 0 : index
    %559 = vector.load %arg15[%c2_261, %c0_262, %c0_263] : memref<3x2x32xf32, #tpu.memory_space<vmem>>, vector<1x2x32xf32>
    %560 = vector.shape_cast %559 : vector<1x2x32xf32> to vector<2x32xf32>
    %561 = vector.extract_strided_slice %558 {offsets = [0, 0], sizes = [2, 32], strides = [1, 1]} : vector<2x128xf32> to vector<2x32xf32>
    %562 = arith.negf %561 : vector<2x32xf32>
    %563 = math.exp %562 : vector<2x32xf32>
    %cst_264 = arith.constant 1.000000e+00 : f32
    %564 = vector.broadcast %cst_264 : f32 to vector<2x32xf32>
    %565 = arith.addf %564, %563 : vector<2x32xf32>
    %566 = arith.divf %564, %565 : vector<2x32xf32>
    %567 = vector.extract_strided_slice %558 {offsets = [0, 32], sizes = [2, 32], strides = [1, 1]} : vector<2x128xf32> to vector<2x32xf32>
    %568 = arith.negf %567 : vector<2x32xf32>
    %569 = math.exp %568 : vector<2x32xf32>
    %cst_265 = arith.constant 1.000000e+00 : f32
    %570 = vector.broadcast %cst_265 : f32 to vector<2x32xf32>
    %571 = arith.addf %570, %569 : vector<2x32xf32>
    %572 = arith.divf %570, %571 : vector<2x32xf32>
    %573 = vector.extract_strided_slice %558 {offsets = [0, 64], sizes = [2, 32], strides = [1, 1]} : vector<2x128xf32> to vector<2x32xf32>
    %574 = math.tanh %573 : vector<2x32xf32>
    %575 = vector.extract_strided_slice %558 {offsets = [0, 96], sizes = [2, 32], strides = [1, 1]} : vector<2x128xf32> to vector<2x32xf32>
    %576 = arith.negf %575 : vector<2x32xf32>
    %577 = math.exp %576 : vector<2x32xf32>
    %cst_266 = arith.constant 1.000000e+00 : f32
    %578 = vector.broadcast %cst_266 : f32 to vector<2x32xf32>
    %579 = arith.addf %578, %577 : vector<2x32xf32>
    %580 = arith.divf %578, %579 : vector<2x32xf32>
    %581 = arith.mulf %572, %560 : vector<2x32xf32>
    %582 = arith.mulf %566, %574 : vector<2x32xf32>
    %583 = arith.addf %581, %582 : vector<2x32xf32>
    %584 = math.tanh %583 : vector<2x32xf32>
    %585 = arith.mulf %580, %584 : vector<2x32xf32>
    %c2_267 = arith.constant 2 : index
    %c0_268 = arith.constant 0 : index
    %c0_269 = arith.constant 0 : index
    %586 = vector.load %arg15[%c2_267, %c0_268, %c0_269] : memref<3x2x32xf32, #tpu.memory_space<vmem>>, vector<1x2x32xf32>
    %587 = vector.shape_cast %586 : vector<1x2x32xf32> to vector<2x32xf32>
    %588 = vector.shape_cast %583 : vector<2x32xf32> to vector<1x2x32xf32>
    tpu.vector_store %arg15[%c2_267, %c0_268, %c0_269], %588 {strides = array<i32>} : memref<3x2x32xf32, #tpu.memory_space<vmem>>, vector<1x2x32xf32>,
    %589 = arith.truncf %585 : vector<2x32xf32> to vector<2x32xbf16>
    %c0_270 = arith.constant 0 : index
    %c64_271 = arith.constant 64 : index
    %590 = vector.load %arg14[%c0_270, %c64_271] : memref<2x96xbf16, #tpu.memory_space<vmem>>, vector<2x32xbf16>
    tpu.vector_store %arg14[%c0_270, %c64_271], %589 {strides = array<i32>} : memref<2x96xbf16, #tpu.memory_space<vmem>>, vector<2x32xbf16>,
    %c5_i32 = arith.constant 5 : i32
    %c1_i32_272 = arith.constant 1 : i32
    %591 = arith.muli %c5_i32, %c1_i32_272 : i32
    %c0_i32_273 = arith.constant 0 : i32
    %592 = arith.addi %c0_i32_273, %591 : i32
    %593 = arith.index_cast %592 : i32 to index
    %c0_274 = arith.constant 0 : index
    %c0_275 = arith.constant 0 : index
    %594 = vector.load %arg1[%593, %c0_274, %c0_275] : memref<8x2x128xbf16, #tpu.memory_space<vmem>>, vector<1x2x128xbf16>
    %595 = vector.shape_cast %594 : vector<1x2x128xbf16> to vector<2x128xbf16>
    %596 = arith.extf %595 : vector<2x128xbf16> to vector<2x128xf32>
    %c0_276 = arith.constant 0 : index
    %c0_277 = arith.constant 0 : index
    %597 = vector.load %arg14[%c0_276, %c0_277] : memref<2x96xbf16, #tpu.memory_space<vmem>>, vector<2x32xbf16>
    %c0_278 = arith.constant 0 : index
    %c0_279 = arith.constant 0 : index
    %598 = vector.load %arg2[%c0_278, %c0_279] : memref<32x128xbf16, #tpu.memory_space<vmem>>, vector<32x128xbf16>
    %cst_280 = arith.constant dense<0.000000e+00> : vector<2x128xf32>
    %599 = tpu.matmul %597, %598, %cst_280 {dimension_numbers = #tpu.dot_dimension_numbers<[1], [0], [0], [1], [0, 0, 1, 1], [], []>} : vector<2x32xbf16>, vector<32x128xbf16>, vector<2x128xf32> -> vector<2x128xf32>
    %600 = arith.addf %596, %599 : vector<2x128xf32>
    %c0_281 = arith.constant 0 : index
    %c0_282 = arith.constant 0 : index
    %c0_283 = arith.constant 0 : index
    %601 = vector.load %arg15[%c0_281, %c0_282, %c0_283] : memref<3x2x32xf32, #tpu.memory_space<vmem>>, vector<1x2x32xf32>
    %602 = vector.shape_cast %601 : vector<1x2x32xf32> to vector<2x32xf32>
    %603 = vector.extract_strided_slice %600 {offsets = [0, 0], sizes = [2, 32], strides = [1, 1]} : vector<2x128xf32> to vector<2x32xf32>
    %604 = arith.negf %603 : vector<2x32xf32>
    %605 = math.exp %604 : vector<2x32xf32>
    %cst_284 = arith.constant 1.000000e+00 : f32
    %606 = vector.broadcast %cst_284 : f32 to vector<2x32xf32>
    %607 = arith.addf %606, %605 : vector<2x32xf32>
    %608 = arith.divf %606, %607 : vector<2x32xf32>
    %609 = vector.extract_strided_slice %600 {offsets = [0, 32], sizes = [2, 32], strides = [1, 1]} : vector<2x128xf32> to vector<2x32xf32>
    %610 = arith.negf %609 : vector<2x32xf32>
    %611 = math.exp %610 : vector<2x32xf32>
    %cst_285 = arith.constant 1.000000e+00 : f32
    %612 = vector.broadcast %cst_285 : f32 to vector<2x32xf32>
    %613 = arith.addf %612, %611 : vector<2x32xf32>
    %614 = arith.divf %612, %613 : vector<2x32xf32>
    %615 = vector.extract_strided_slice %600 {offsets = [0, 64], sizes = [2, 32], strides = [1, 1]} : vector<2x128xf32> to vector<2x32xf32>
    %616 = math.tanh %615 : vector<2x32xf32>
    %617 = vector.extract_strided_slice %600 {offsets = [0, 96], sizes = [2, 32], strides = [1, 1]} : vector<2x128xf32> to vector<2x32xf32>
    %618 = arith.negf %617 : vector<2x32xf32>
    %619 = math.exp %618 : vector<2x32xf32>
    %cst_286 = arith.constant 1.000000e+00 : f32
    %620 = vector.broadcast %cst_286 : f32 to vector<2x32xf32>
    %621 = arith.addf %620, %619 : vector<2x32xf32>
    %622 = arith.divf %620, %621 : vector<2x32xf32>
    %623 = arith.mulf %614, %602 : vector<2x32xf32>
    %624 = arith.mulf %608, %616 : vector<2x32xf32>
    %625 = arith.addf %623, %624 : vector<2x32xf32>
    %626 = math.tanh %625 : vector<2x32xf32>
    %627 = arith.mulf %622, %626 : vector<2x32xf32>
    %c0_287 = arith.constant 0 : index
    %c0_288 = arith.constant 0 : index
    %c0_289 = arith.constant 0 : index
    %628 = vector.load %arg15[%c0_287, %c0_288, %c0_289] : memref<3x2x32xf32, #tpu.memory_space<vmem>>, vector<1x2x32xf32>
    %629 = vector.shape_cast %628 : vector<1x2x32xf32> to vector<2x32xf32>
    %630 = vector.shape_cast %625 : vector<2x32xf32> to vector<1x2x32xf32>
    tpu.vector_store %arg15[%c0_287, %c0_288, %c0_289], %630 {strides = array<i32>} : memref<3x2x32xf32, #tpu.memory_space<vmem>>, vector<1x2x32xf32>,
    %631 = arith.truncf %627 : vector<2x32xf32> to vector<2x32xbf16>
    %c0_290 = arith.constant 0 : index
    %c0_291 = arith.constant 0 : index
    %632 = vector.load %arg14[%c0_290, %c0_291] : memref<2x96xbf16, #tpu.memory_space<vmem>>, vector<2x32xbf16>
    tpu.vector_store %arg14[%c0_290, %c0_291], %631 {strides = array<i32>} : memref<2x96xbf16, #tpu.memory_space<vmem>>, vector<2x32xbf16>,
    %c0_292 = arith.constant 0 : index
    %c0_293 = arith.constant 0 : index
    %633 = vector.load %arg14[%c0_292, %c0_293] : memref<2x96xbf16, #tpu.memory_space<vmem>>, vector<2x64xbf16>
    %c0_294 = arith.constant 0 : index
    %c0_295 = arith.constant 0 : index
    %c0_296 = arith.constant 0 : index
    %634 = vector.load %arg3[%c0_294, %c0_295, %c0_296] : memref<2x64x128xbf16, #tpu.memory_space<vmem>>, vector<1x64x128xbf16>
    %635 = vector.shape_cast %634 : vector<1x64x128xbf16> to vector<64x128xbf16>
    %cst_297 = arith.constant dense<0.000000e+00> : vector<2x128xf32>
    %636 = tpu.matmul %633, %635, %cst_297 {dimension_numbers = #tpu.dot_dimension_numbers<[1], [0], [0], [1], [0, 0, 1, 1], [], []>} : vector<2x64xbf16>, vector<64x128xbf16>, vector<2x128xf32> -> vector<2x128xf32>
    %637 = arith.addf %636, %6 : vector<2x128xf32>
    %c1_298 = arith.constant 1 : index
    %c0_299 = arith.constant 0 : index
    %c0_300 = arith.constant 0 : index
    %638 = vector.load %arg15[%c1_298, %c0_299, %c0_300] : memref<3x2x32xf32, #tpu.memory_space<vmem>>, vector<1x2x32xf32>
    %639 = vector.shape_cast %638 : vector<1x2x32xf32> to vector<2x32xf32>
    %640 = vector.extract_strided_slice %637 {offsets = [0, 0], sizes = [2, 32], strides = [1, 1]} : vector<2x128xf32> to vector<2x32xf32>
    %641 = arith.negf %640 : vector<2x32xf32>
    %642 = math.exp %641 : vector<2x32xf32>
    %cst_301 = arith.constant 1.000000e+00 : f32
    %643 = vector.broadcast %cst_301 : f32 to vector<2x32xf32>
    %644 = arith.addf %643, %642 : vector<2x32xf32>
    %645 = arith.divf %643, %644 : vector<2x32xf32>
    %646 = vector.extract_strided_slice %637 {offsets = [0, 32], sizes = [2, 32], strides = [1, 1]} : vector<2x128xf32> to vector<2x32xf32>
    %647 = arith.negf %646 : vector<2x32xf32>
    %648 = math.exp %647 : vector<2x32xf32>
    %cst_302 = arith.constant 1.000000e+00 : f32
    %649 = vector.broadcast %cst_302 : f32 to vector<2x32xf32>
    %650 = arith.addf %649, %648 : vector<2x32xf32>
    %651 = arith.divf %649, %650 : vector<2x32xf32>
    %652 = vector.extract_strided_slice %637 {offsets = [0, 64], sizes = [2, 32], strides = [1, 1]} : vector<2x128xf32> to vector<2x32xf32>
    %653 = math.tanh %652 : vector<2x32xf32>
    %654 = vector.extract_strided_slice %637 {offsets = [0, 96], sizes = [2, 32], strides = [1, 1]} : vector<2x128xf32> to vector<2x32xf32>
    %655 = arith.negf %654 : vector<2x32xf32>
    %656 = math.exp %655 : vector<2x32xf32>
    %cst_303 = arith.constant 1.000000e+00 : f32
    %657 = vector.broadcast %cst_303 : f32 to vector<2x32xf32>
    %658 = arith.addf %657, %656 : vector<2x32xf32>
    %659 = arith.divf %657, %658 : vector<2x32xf32>
    %660 = arith.mulf %651, %639 : vector<2x32xf32>
    %661 = arith.mulf %645, %653 : vector<2x32xf32>
    %662 = arith.addf %660, %661 : vector<2x32xf32>
    %663 = math.tanh %662 : vector<2x32xf32>
    %664 = arith.mulf %659, %663 : vector<2x32xf32>
    %c1_304 = arith.constant 1 : index
    %c0_305 = arith.constant 0 : index
    %c0_306 = arith.constant 0 : index
    %665 = vector.load %arg15[%c1_304, %c0_305, %c0_306] : memref<3x2x32xf32, #tpu.memory_space<vmem>>, vector<1x2x32xf32>
    %666 = vector.shape_cast %665 : vector<1x2x32xf32> to vector<2x32xf32>
    %667 = vector.shape_cast %662 : vector<2x32xf32> to vector<1x2x32xf32>
    tpu.vector_store %arg15[%c1_304, %c0_305, %c0_306], %667 {strides = array<i32>} : memref<3x2x32xf32, #tpu.memory_space<vmem>>, vector<1x2x32xf32>,
    %668 = arith.truncf %664 : vector<2x32xf32> to vector<2x32xbf16>
    %c0_307 = arith.constant 0 : index
    %c32_308 = arith.constant 32 : index
    %669 = vector.load %arg14[%c0_307, %c32_308] : memref<2x96xbf16, #tpu.memory_space<vmem>>, vector<2x32xbf16>
    tpu.vector_store %arg14[%c0_307, %c32_308], %668 {strides = array<i32>} : memref<2x96xbf16, #tpu.memory_space<vmem>>, vector<2x32xbf16>,
    %c0_309 = arith.constant 0 : index
    %c32_310 = arith.constant 32 : index
    %670 = vector.load %arg14[%c0_309, %c32_310] : memref<2x96xbf16, #tpu.memory_space<vmem>>, vector<2x64xbf16>
    %c1_311 = arith.constant 1 : index
    %c0_312 = arith.constant 0 : index
    %c0_313 = arith.constant 0 : index
    %671 = vector.load %arg3[%c1_311, %c0_312, %c0_313] : memref<2x64x128xbf16, #tpu.memory_space<vmem>>, vector<1x64x128xbf16>
    %672 = vector.shape_cast %671 : vector<1x64x128xbf16> to vector<64x128xbf16>
    %cst_314 = arith.constant dense<0.000000e+00> : vector<2x128xf32>
    %673 = tpu.matmul %670, %672, %cst_314 {dimension_numbers = #tpu.dot_dimension_numbers<[1], [0], [0], [1], [0, 0, 1, 1], [], []>} : vector<2x64xbf16>, vector<64x128xbf16>, vector<2x128xf32> -> vector<2x128xf32>
    %674 = arith.addf %673, %10 : vector<2x128xf32>
    %c2_315 = arith.constant 2 : index
    %c0_316 = arith.constant 0 : index
    %c0_317 = arith.constant 0 : index
    %675 = vector.load %arg15[%c2_315, %c0_316, %c0_317] : memref<3x2x32xf32, #tpu.memory_space<vmem>>, vector<1x2x32xf32>
    %676 = vector.shape_cast %675 : vector<1x2x32xf32> to vector<2x32xf32>
    %677 = vector.extract_strided_slice %674 {offsets = [0, 0], sizes = [2, 32], strides = [1, 1]} : vector<2x128xf32> to vector<2x32xf32>
    %678 = arith.negf %677 : vector<2x32xf32>
    %679 = math.exp %678 : vector<2x32xf32>
    %cst_318 = arith.constant 1.000000e+00 : f32
    %680 = vector.broadcast %cst_318 : f32 to vector<2x32xf32>
    %681 = arith.addf %680, %679 : vector<2x32xf32>
    %682 = arith.divf %680, %681 : vector<2x32xf32>
    %683 = vector.extract_strided_slice %674 {offsets = [0, 32], sizes = [2, 32], strides = [1, 1]} : vector<2x128xf32> to vector<2x32xf32>
    %684 = arith.negf %683 : vector<2x32xf32>
    %685 = math.exp %684 : vector<2x32xf32>
    %cst_319 = arith.constant 1.000000e+00 : f32
    %686 = vector.broadcast %cst_319 : f32 to vector<2x32xf32>
    %687 = arith.addf %686, %685 : vector<2x32xf32>
    %688 = arith.divf %686, %687 : vector<2x32xf32>
    %689 = vector.extract_strided_slice %674 {offsets = [0, 64], sizes = [2, 32], strides = [1, 1]} : vector<2x128xf32> to vector<2x32xf32>
    %690 = math.tanh %689 : vector<2x32xf32>
    %691 = vector.extract_strided_slice %674 {offsets = [0, 96], sizes = [2, 32], strides = [1, 1]} : vector<2x128xf32> to vector<2x32xf32>
    %692 = arith.negf %691 : vector<2x32xf32>
    %693 = math.exp %692 : vector<2x32xf32>
    %cst_320 = arith.constant 1.000000e+00 : f32
    %694 = vector.broadcast %cst_320 : f32 to vector<2x32xf32>
    %695 = arith.addf %694, %693 : vector<2x32xf32>
    %696 = arith.divf %694, %695 : vector<2x32xf32>
    %697 = arith.mulf %688, %676 : vector<2x32xf32>
    %698 = arith.mulf %682, %690 : vector<2x32xf32>
    %699 = arith.addf %697, %698 : vector<2x32xf32>
    %700 = math.tanh %699 : vector<2x32xf32>
    %701 = arith.mulf %696, %700 : vector<2x32xf32>
    %c2_321 = arith.constant 2 : index
    %c0_322 = arith.constant 0 : index
    %c0_323 = arith.constant 0 : index
    %702 = vector.load %arg15[%c2_321, %c0_322, %c0_323] : memref<3x2x32xf32, #tpu.memory_space<vmem>>, vector<1x2x32xf32>
    %703 = vector.shape_cast %702 : vector<1x2x32xf32> to vector<2x32xf32>
    %704 = vector.shape_cast %699 : vector<2x32xf32> to vector<1x2x32xf32>
    tpu.vector_store %arg15[%c2_321, %c0_322, %c0_323], %704 {strides = array<i32>} : memref<3x2x32xf32, #tpu.memory_space<vmem>>, vector<1x2x32xf32>,
    %705 = arith.truncf %701 : vector<2x32xf32> to vector<2x32xbf16>
    %c0_324 = arith.constant 0 : index
    %c64_325 = arith.constant 64 : index
    %706 = vector.load %arg14[%c0_324, %c64_325] : memref<2x96xbf16, #tpu.memory_space<vmem>>, vector<2x32xbf16>
    tpu.vector_store %arg14[%c0_324, %c64_325], %705 {strides = array<i32>} : memref<2x96xbf16, #tpu.memory_space<vmem>>, vector<2x32xbf16>,
    %c6_i32 = arith.constant 6 : i32
    %c1_i32_326 = arith.constant 1 : i32
    %707 = arith.muli %c6_i32, %c1_i32_326 : i32
    %c0_i32_327 = arith.constant 0 : i32
    %708 = arith.addi %c0_i32_327, %707 : i32
    %709 = arith.index_cast %708 : i32 to index
    %c0_328 = arith.constant 0 : index
    %c0_329 = arith.constant 0 : index
    %710 = vector.load %arg1[%709, %c0_328, %c0_329] : memref<8x2x128xbf16, #tpu.memory_space<vmem>>, vector<1x2x128xbf16>
    %711 = vector.shape_cast %710 : vector<1x2x128xbf16> to vector<2x128xbf16>
    %712 = arith.extf %711 : vector<2x128xbf16> to vector<2x128xf32>
    %c0_330 = arith.constant 0 : index
    %c0_331 = arith.constant 0 : index
    %713 = vector.load %arg14[%c0_330, %c0_331] : memref<2x96xbf16, #tpu.memory_space<vmem>>, vector<2x32xbf16>
    %c0_332 = arith.constant 0 : index
    %c0_333 = arith.constant 0 : index
    %714 = vector.load %arg2[%c0_332, %c0_333] : memref<32x128xbf16, #tpu.memory_space<vmem>>, vector<32x128xbf16>
    %cst_334 = arith.constant dense<0.000000e+00> : vector<2x128xf32>
    %715 = tpu.matmul %713, %714, %cst_334 {dimension_numbers = #tpu.dot_dimension_numbers<[1], [0], [0], [1], [0, 0, 1, 1], [], []>} : vector<2x32xbf16>, vector<32x128xbf16>, vector<2x128xf32> -> vector<2x128xf32>
    %716 = arith.addf %712, %715 : vector<2x128xf32>
    %c0_335 = arith.constant 0 : index
    %c0_336 = arith.constant 0 : index
    %c0_337 = arith.constant 0 : index
    %717 = vector.load %arg15[%c0_335, %c0_336, %c0_337] : memref<3x2x32xf32, #tpu.memory_space<vmem>>, vector<1x2x32xf32>
    %718 = vector.shape_cast %717 : vector<1x2x32xf32> to vector<2x32xf32>
    %719 = vector.extract_strided_slice %716 {offsets = [0, 0], sizes = [2, 32], strides = [1, 1]} : vector<2x128xf32> to vector<2x32xf32>
    %720 = arith.negf %719 : vector<2x32xf32>
    %721 = math.exp %720 : vector<2x32xf32>
    %cst_338 = arith.constant 1.000000e+00 : f32
    %722 = vector.broadcast %cst_338 : f32 to vector<2x32xf32>
    %723 = arith.addf %722, %721 : vector<2x32xf32>
    %724 = arith.divf %722, %723 : vector<2x32xf32>
    %725 = vector.extract_strided_slice %716 {offsets = [0, 32], sizes = [2, 32], strides = [1, 1]} : vector<2x128xf32> to vector<2x32xf32>
    %726 = arith.negf %725 : vector<2x32xf32>
    %727 = math.exp %726 : vector<2x32xf32>
    %cst_339 = arith.constant 1.000000e+00 : f32
    %728 = vector.broadcast %cst_339 : f32 to vector<2x32xf32>
    %729 = arith.addf %728, %727 : vector<2x32xf32>
    %730 = arith.divf %728, %729 : vector<2x32xf32>
    %731 = vector.extract_strided_slice %716 {offsets = [0, 64], sizes = [2, 32], strides = [1, 1]} : vector<2x128xf32> to vector<2x32xf32>
    %732 = math.tanh %731 : vector<2x32xf32>
    %733 = vector.extract_strided_slice %716 {offsets = [0, 96], sizes = [2, 32], strides = [1, 1]} : vector<2x128xf32> to vector<2x32xf32>
    %734 = arith.negf %733 : vector<2x32xf32>
    %735 = math.exp %734 : vector<2x32xf32>
    %cst_340 = arith.constant 1.000000e+00 : f32
    %736 = vector.broadcast %cst_340 : f32 to vector<2x32xf32>
    %737 = arith.addf %736, %735 : vector<2x32xf32>
    %738 = arith.divf %736, %737 : vector<2x32xf32>
    %739 = arith.mulf %730, %718 : vector<2x32xf32>
    %740 = arith.mulf %724, %732 : vector<2x32xf32>
    %741 = arith.addf %739, %740 : vector<2x32xf32>
    %742 = math.tanh %741 : vector<2x32xf32>
    %743 = arith.mulf %738, %742 : vector<2x32xf32>
    %c0_341 = arith.constant 0 : index
    %c0_342 = arith.constant 0 : index
    %c0_343 = arith.constant 0 : index
    %744 = vector.load %arg15[%c0_341, %c0_342, %c0_343] : memref<3x2x32xf32, #tpu.memory_space<vmem>>, vector<1x2x32xf32>
    %745 = vector.shape_cast %744 : vector<1x2x32xf32> to vector<2x32xf32>
    %746 = vector.shape_cast %741 : vector<2x32xf32> to vector<1x2x32xf32>
    tpu.vector_store %arg15[%c0_341, %c0_342, %c0_343], %746 {strides = array<i32>} : memref<3x2x32xf32, #tpu.memory_space<vmem>>, vector<1x2x32xf32>,
    %747 = arith.truncf %743 : vector<2x32xf32> to vector<2x32xbf16>
    %c0_344 = arith.constant 0 : index
    %c0_345 = arith.constant 0 : index
    %748 = vector.load %arg14[%c0_344, %c0_345] : memref<2x96xbf16, #tpu.memory_space<vmem>>, vector<2x32xbf16>
    tpu.vector_store %arg14[%c0_344, %c0_345], %747 {strides = array<i32>} : memref<2x96xbf16, #tpu.memory_space<vmem>>, vector<2x32xbf16>,
    %c0_346 = arith.constant 0 : index
    %c0_347 = arith.constant 0 : index
    %749 = vector.load %arg14[%c0_346, %c0_347] : memref<2x96xbf16, #tpu.memory_space<vmem>>, vector<2x64xbf16>
    %c0_348 = arith.constant 0 : index
    %c0_349 = arith.constant 0 : index
    %c0_350 = arith.constant 0 : index
    %750 = vector.load %arg3[%c0_348, %c0_349, %c0_350] : memref<2x64x128xbf16, #tpu.memory_space<vmem>>, vector<1x64x128xbf16>
    %751 = vector.shape_cast %750 : vector<1x64x128xbf16> to vector<64x128xbf16>
    %cst_351 = arith.constant dense<0.000000e+00> : vector<2x128xf32>
    %752 = tpu.matmul %749, %751, %cst_351 {dimension_numbers = #tpu.dot_dimension_numbers<[1], [0], [0], [1], [0, 0, 1, 1], [], []>} : vector<2x64xbf16>, vector<64x128xbf16>, vector<2x128xf32> -> vector<2x128xf32>
    %753 = arith.addf %752, %6 : vector<2x128xf32>
    %c1_352 = arith.constant 1 : index
    %c0_353 = arith.constant 0 : index
    %c0_354 = arith.constant 0 : index
    %754 = vector.load %arg15[%c1_352, %c0_353, %c0_354] : memref<3x2x32xf32, #tpu.memory_space<vmem>>, vector<1x2x32xf32>
    %755 = vector.shape_cast %754 : vector<1x2x32xf32> to vector<2x32xf32>
    %756 = vector.extract_strided_slice %753 {offsets = [0, 0], sizes = [2, 32], strides = [1, 1]} : vector<2x128xf32> to vector<2x32xf32>
    %757 = arith.negf %756 : vector<2x32xf32>
    %758 = math.exp %757 : vector<2x32xf32>
    %cst_355 = arith.constant 1.000000e+00 : f32
    %759 = vector.broadcast %cst_355 : f32 to vector<2x32xf32>
    %760 = arith.addf %759, %758 : vector<2x32xf32>
    %761 = arith.divf %759, %760 : vector<2x32xf32>
    %762 = vector.extract_strided_slice %753 {offsets = [0, 32], sizes = [2, 32], strides = [1, 1]} : vector<2x128xf32> to vector<2x32xf32>
    %763 = arith.negf %762 : vector<2x32xf32>
    %764 = math.exp %763 : vector<2x32xf32>
    %cst_356 = arith.constant 1.000000e+00 : f32
    %765 = vector.broadcast %cst_356 : f32 to vector<2x32xf32>
    %766 = arith.addf %765, %764 : vector<2x32xf32>
    %767 = arith.divf %765, %766 : vector<2x32xf32>
    %768 = vector.extract_strided_slice %753 {offsets = [0, 64], sizes = [2, 32], strides = [1, 1]} : vector<2x128xf32> to vector<2x32xf32>
    %769 = math.tanh %768 : vector<2x32xf32>
    %770 = vector.extract_strided_slice %753 {offsets = [0, 96], sizes = [2, 32], strides = [1, 1]} : vector<2x128xf32> to vector<2x32xf32>
    %771 = arith.negf %770 : vector<2x32xf32>
    %772 = math.exp %771 : vector<2x32xf32>
    %cst_357 = arith.constant 1.000000e+00 : f32
    %773 = vector.broadcast %cst_357 : f32 to vector<2x32xf32>
    %774 = arith.addf %773, %772 : vector<2x32xf32>
    %775 = arith.divf %773, %774 : vector<2x32xf32>
    %776 = arith.mulf %767, %755 : vector<2x32xf32>
    %777 = arith.mulf %761, %769 : vector<2x32xf32>
    %778 = arith.addf %776, %777 : vector<2x32xf32>
    %779 = math.tanh %778 : vector<2x32xf32>
    %780 = arith.mulf %775, %779 : vector<2x32xf32>
    %c1_358 = arith.constant 1 : index
    %c0_359 = arith.constant 0 : index
    %c0_360 = arith.constant 0 : index
    %781 = vector.load %arg15[%c1_358, %c0_359, %c0_360] : memref<3x2x32xf32, #tpu.memory_space<vmem>>, vector<1x2x32xf32>
    %782 = vector.shape_cast %781 : vector<1x2x32xf32> to vector<2x32xf32>
    %783 = vector.shape_cast %778 : vector<2x32xf32> to vector<1x2x32xf32>
    tpu.vector_store %arg15[%c1_358, %c0_359, %c0_360], %783 {strides = array<i32>} : memref<3x2x32xf32, #tpu.memory_space<vmem>>, vector<1x2x32xf32>,
    %784 = arith.truncf %780 : vector<2x32xf32> to vector<2x32xbf16>
    %c0_361 = arith.constant 0 : index
    %c32_362 = arith.constant 32 : index
    %785 = vector.load %arg14[%c0_361, %c32_362] : memref<2x96xbf16, #tpu.memory_space<vmem>>, vector<2x32xbf16>
    tpu.vector_store %arg14[%c0_361, %c32_362], %784 {strides = array<i32>} : memref<2x96xbf16, #tpu.memory_space<vmem>>, vector<2x32xbf16>,
    %c0_363 = arith.constant 0 : index
    %c32_364 = arith.constant 32 : index
    %786 = vector.load %arg14[%c0_363, %c32_364] : memref<2x96xbf16, #tpu.memory_space<vmem>>, vector<2x64xbf16>
    %c1_365 = arith.constant 1 : index
    %c0_366 = arith.constant 0 : index
    %c0_367 = arith.constant 0 : index
    %787 = vector.load %arg3[%c1_365, %c0_366, %c0_367] : memref<2x64x128xbf16, #tpu.memory_space<vmem>>, vector<1x64x128xbf16>
    %788 = vector.shape_cast %787 : vector<1x64x128xbf16> to vector<64x128xbf16>
    %cst_368 = arith.constant dense<0.000000e+00> : vector<2x128xf32>
    %789 = tpu.matmul %786, %788, %cst_368 {dimension_numbers = #tpu.dot_dimension_numbers<[1], [0], [0], [1], [0, 0, 1, 1], [], []>} : vector<2x64xbf16>, vector<64x128xbf16>, vector<2x128xf32> -> vector<2x128xf32>
    %790 = arith.addf %789, %10 : vector<2x128xf32>
    %c2_369 = arith.constant 2 : index
    %c0_370 = arith.constant 0 : index
    %c0_371 = arith.constant 0 : index
    %791 = vector.load %arg15[%c2_369, %c0_370, %c0_371] : memref<3x2x32xf32, #tpu.memory_space<vmem>>, vector<1x2x32xf32>
    %792 = vector.shape_cast %791 : vector<1x2x32xf32> to vector<2x32xf32>
    %793 = vector.extract_strided_slice %790 {offsets = [0, 0], sizes = [2, 32], strides = [1, 1]} : vector<2x128xf32> to vector<2x32xf32>
    %794 = arith.negf %793 : vector<2x32xf32>
    %795 = math.exp %794 : vector<2x32xf32>
    %cst_372 = arith.constant 1.000000e+00 : f32
    %796 = vector.broadcast %cst_372 : f32 to vector<2x32xf32>
    %797 = arith.addf %796, %795 : vector<2x32xf32>
    %798 = arith.divf %796, %797 : vector<2x32xf32>
    %799 = vector.extract_strided_slice %790 {offsets = [0, 32], sizes = [2, 32], strides = [1, 1]} : vector<2x128xf32> to vector<2x32xf32>
    %800 = arith.negf %799 : vector<2x32xf32>
    %801 = math.exp %800 : vector<2x32xf32>
    %cst_373 = arith.constant 1.000000e+00 : f32
    %802 = vector.broadcast %cst_373 : f32 to vector<2x32xf32>
    %803 = arith.addf %802, %801 : vector<2x32xf32>
    %804 = arith.divf %802, %803 : vector<2x32xf32>
    %805 = vector.extract_strided_slice %790 {offsets = [0, 64], sizes = [2, 32], strides = [1, 1]} : vector<2x128xf32> to vector<2x32xf32>
    %806 = math.tanh %805 : vector<2x32xf32>
    %807 = vector.extract_strided_slice %790 {offsets = [0, 96], sizes = [2, 32], strides = [1, 1]} : vector<2x128xf32> to vector<2x32xf32>
    %808 = arith.negf %807 : vector<2x32xf32>
    %809 = math.exp %808 : vector<2x32xf32>
    %cst_374 = arith.constant 1.000000e+00 : f32
    %810 = vector.broadcast %cst_374 : f32 to vector<2x32xf32>
    %811 = arith.addf %810, %809 : vector<2x32xf32>
    %812 = arith.divf %810, %811 : vector<2x32xf32>
    %813 = arith.mulf %804, %792 : vector<2x32xf32>
    %814 = arith.mulf %798, %806 : vector<2x32xf32>
    %815 = arith.addf %813, %814 : vector<2x32xf32>
    %816 = math.tanh %815 : vector<2x32xf32>
    %817 = arith.mulf %812, %816 : vector<2x32xf32>
    %c2_375 = arith.constant 2 : index
    %c0_376 = arith.constant 0 : index
    %c0_377 = arith.constant 0 : index
    %818 = vector.load %arg15[%c2_375, %c0_376, %c0_377] : memref<3x2x32xf32, #tpu.memory_space<vmem>>, vector<1x2x32xf32>
    %819 = vector.shape_cast %818 : vector<1x2x32xf32> to vector<2x32xf32>
    %820 = vector.shape_cast %815 : vector<2x32xf32> to vector<1x2x32xf32>
    tpu.vector_store %arg15[%c2_375, %c0_376, %c0_377], %820 {strides = array<i32>} : memref<3x2x32xf32, #tpu.memory_space<vmem>>, vector<1x2x32xf32>,
    %821 = arith.truncf %817 : vector<2x32xf32> to vector<2x32xbf16>
    %c0_378 = arith.constant 0 : index
    %c64_379 = arith.constant 64 : index
    %822 = vector.load %arg14[%c0_378, %c64_379] : memref<2x96xbf16, #tpu.memory_space<vmem>>, vector<2x32xbf16>
    tpu.vector_store %arg14[%c0_378, %c64_379], %821 {strides = array<i32>} : memref<2x96xbf16, #tpu.memory_space<vmem>>, vector<2x32xbf16>,
    %c7_i32 = arith.constant 7 : i32
    %c1_i32_380 = arith.constant 1 : i32
    %823 = arith.muli %c7_i32, %c1_i32_380 : i32
    %c0_i32_381 = arith.constant 0 : i32
    %824 = arith.addi %c0_i32_381, %823 : i32
    %825 = arith.index_cast %824 : i32 to index
    %c0_382 = arith.constant 0 : index
    %c0_383 = arith.constant 0 : index
    %826 = vector.load %arg1[%825, %c0_382, %c0_383] : memref<8x2x128xbf16, #tpu.memory_space<vmem>>, vector<1x2x128xbf16>
    %827 = vector.shape_cast %826 : vector<1x2x128xbf16> to vector<2x128xbf16>
    %828 = arith.extf %827 : vector<2x128xbf16> to vector<2x128xf32>
    %c0_384 = arith.constant 0 : index
    %c0_385 = arith.constant 0 : index
    %829 = vector.load %arg14[%c0_384, %c0_385] : memref<2x96xbf16, #tpu.memory_space<vmem>>, vector<2x32xbf16>
    %c0_386 = arith.constant 0 : index
    %c0_387 = arith.constant 0 : index
    %830 = vector.load %arg2[%c0_386, %c0_387] : memref<32x128xbf16, #tpu.memory_space<vmem>>, vector<32x128xbf16>
    %cst_388 = arith.constant dense<0.000000e+00> : vector<2x128xf32>
    %831 = tpu.matmul %829, %830, %cst_388 {dimension_numbers = #tpu.dot_dimension_numbers<[1], [0], [0], [1], [0, 0, 1, 1], [], []>} : vector<2x32xbf16>, vector<32x128xbf16>, vector<2x128xf32> -> vector<2x128xf32>
    %832 = arith.addf %828, %831 : vector<2x128xf32>
    %c0_389 = arith.constant 0 : index
    %c0_390 = arith.constant 0 : index
    %c0_391 = arith.constant 0 : index
    %833 = vector.load %arg15[%c0_389, %c0_390, %c0_391] : memref<3x2x32xf32, #tpu.memory_space<vmem>>, vector<1x2x32xf32>
    %834 = vector.shape_cast %833 : vector<1x2x32xf32> to vector<2x32xf32>
    %835 = vector.extract_strided_slice %832 {offsets = [0, 0], sizes = [2, 32], strides = [1, 1]} : vector<2x128xf32> to vector<2x32xf32>
    %836 = arith.negf %835 : vector<2x32xf32>
    %837 = math.exp %836 : vector<2x32xf32>
    %cst_392 = arith.constant 1.000000e+00 : f32
    %838 = vector.broadcast %cst_392 : f32 to vector<2x32xf32>
    %839 = arith.addf %838, %837 : vector<2x32xf32>
    %840 = arith.divf %838, %839 : vector<2x32xf32>
    %841 = vector.extract_strided_slice %832 {offsets = [0, 32], sizes = [2, 32], strides = [1, 1]} : vector<2x128xf32> to vector<2x32xf32>
    %842 = arith.negf %841 : vector<2x32xf32>
    %843 = math.exp %842 : vector<2x32xf32>
    %cst_393 = arith.constant 1.000000e+00 : f32
    %844 = vector.broadcast %cst_393 : f32 to vector<2x32xf32>
    %845 = arith.addf %844, %843 : vector<2x32xf32>
    %846 = arith.divf %844, %845 : vector<2x32xf32>
    %847 = vector.extract_strided_slice %832 {offsets = [0, 64], sizes = [2, 32], strides = [1, 1]} : vector<2x128xf32> to vector<2x32xf32>
    %848 = math.tanh %847 : vector<2x32xf32>
    %849 = vector.extract_strided_slice %832 {offsets = [0, 96], sizes = [2, 32], strides = [1, 1]} : vector<2x128xf32> to vector<2x32xf32>
    %850 = arith.negf %849 : vector<2x32xf32>
    %851 = math.exp %850 : vector<2x32xf32>
    %cst_394 = arith.constant 1.000000e+00 : f32
    %852 = vector.broadcast %cst_394 : f32 to vector<2x32xf32>
    %853 = arith.addf %852, %851 : vector<2x32xf32>
    %854 = arith.divf %852, %853 : vector<2x32xf32>
    %855 = arith.mulf %846, %834 : vector<2x32xf32>
    %856 = arith.mulf %840, %848 : vector<2x32xf32>
    %857 = arith.addf %855, %856 : vector<2x32xf32>
    %858 = math.tanh %857 : vector<2x32xf32>
    %859 = arith.mulf %854, %858 : vector<2x32xf32>
    %c0_395 = arith.constant 0 : index
    %c0_396 = arith.constant 0 : index
    %c0_397 = arith.constant 0 : index
    %860 = vector.load %arg15[%c0_395, %c0_396, %c0_397] : memref<3x2x32xf32, #tpu.memory_space<vmem>>, vector<1x2x32xf32>
    %861 = vector.shape_cast %860 : vector<1x2x32xf32> to vector<2x32xf32>
    %862 = vector.shape_cast %857 : vector<2x32xf32> to vector<1x2x32xf32>
    tpu.vector_store %arg15[%c0_395, %c0_396, %c0_397], %862 {strides = array<i32>} : memref<3x2x32xf32, #tpu.memory_space<vmem>>, vector<1x2x32xf32>,
    %863 = arith.truncf %859 : vector<2x32xf32> to vector<2x32xbf16>
    %c0_398 = arith.constant 0 : index
    %c0_399 = arith.constant 0 : index
    %864 = vector.load %arg14[%c0_398, %c0_399] : memref<2x96xbf16, #tpu.memory_space<vmem>>, vector<2x32xbf16>
    tpu.vector_store %arg14[%c0_398, %c0_399], %863 {strides = array<i32>} : memref<2x96xbf16, #tpu.memory_space<vmem>>, vector<2x32xbf16>,
    %c0_400 = arith.constant 0 : index
    %c0_401 = arith.constant 0 : index
    %865 = vector.load %arg14[%c0_400, %c0_401] : memref<2x96xbf16, #tpu.memory_space<vmem>>, vector<2x64xbf16>
    %c0_402 = arith.constant 0 : index
    %c0_403 = arith.constant 0 : index
    %c0_404 = arith.constant 0 : index
    %866 = vector.load %arg3[%c0_402, %c0_403, %c0_404] : memref<2x64x128xbf16, #tpu.memory_space<vmem>>, vector<1x64x128xbf16>
    %867 = vector.shape_cast %866 : vector<1x64x128xbf16> to vector<64x128xbf16>
    %cst_405 = arith.constant dense<0.000000e+00> : vector<2x128xf32>
    %868 = tpu.matmul %865, %867, %cst_405 {dimension_numbers = #tpu.dot_dimension_numbers<[1], [0], [0], [1], [0, 0, 1, 1], [], []>} : vector<2x64xbf16>, vector<64x128xbf16>, vector<2x128xf32> -> vector<2x128xf32>
    %869 = arith.addf %868, %6 : vector<2x128xf32>
    %c1_406 = arith.constant 1 : index
    %c0_407 = arith.constant 0 : index
    %c0_408 = arith.constant 0 : index
    %870 = vector.load %arg15[%c1_406, %c0_407, %c0_408] : memref<3x2x32xf32, #tpu.memory_space<vmem>>, vector<1x2x32xf32>
    %871 = vector.shape_cast %870 : vector<1x2x32xf32> to vector<2x32xf32>
    %872 = vector.extract_strided_slice %869 {offsets = [0, 0], sizes = [2, 32], strides = [1, 1]} : vector<2x128xf32> to vector<2x32xf32>
    %873 = arith.negf %872 : vector<2x32xf32>
    %874 = math.exp %873 : vector<2x32xf32>
    %cst_409 = arith.constant 1.000000e+00 : f32
    %875 = vector.broadcast %cst_409 : f32 to vector<2x32xf32>
    %876 = arith.addf %875, %874 : vector<2x32xf32>
    %877 = arith.divf %875, %876 : vector<2x32xf32>
    %878 = vector.extract_strided_slice %869 {offsets = [0, 32], sizes = [2, 32], strides = [1, 1]} : vector<2x128xf32> to vector<2x32xf32>
    %879 = arith.negf %878 : vector<2x32xf32>
    %880 = math.exp %879 : vector<2x32xf32>
    %cst_410 = arith.constant 1.000000e+00 : f32
    %881 = vector.broadcast %cst_410 : f32 to vector<2x32xf32>
    %882 = arith.addf %881, %880 : vector<2x32xf32>
    %883 = arith.divf %881, %882 : vector<2x32xf32>
    %884 = vector.extract_strided_slice %869 {offsets = [0, 64], sizes = [2, 32], strides = [1, 1]} : vector<2x128xf32> to vector<2x32xf32>
    %885 = math.tanh %884 : vector<2x32xf32>
    %886 = vector.extract_strided_slice %869 {offsets = [0, 96], sizes = [2, 32], strides = [1, 1]} : vector<2x128xf32> to vector<2x32xf32>
    %887 = arith.negf %886 : vector<2x32xf32>
    %888 = math.exp %887 : vector<2x32xf32>
    %cst_411 = arith.constant 1.000000e+00 : f32
    %889 = vector.broadcast %cst_411 : f32 to vector<2x32xf32>
    %890 = arith.addf %889, %888 : vector<2x32xf32>
    %891 = arith.divf %889, %890 : vector<2x32xf32>
    %892 = arith.mulf %883, %871 : vector<2x32xf32>
    %893 = arith.mulf %877, %885 : vector<2x32xf32>
    %894 = arith.addf %892, %893 : vector<2x32xf32>
    %895 = math.tanh %894 : vector<2x32xf32>
    %896 = arith.mulf %891, %895 : vector<2x32xf32>
    %c1_412 = arith.constant 1 : index
    %c0_413 = arith.constant 0 : index
    %c0_414 = arith.constant 0 : index
    %897 = vector.load %arg15[%c1_412, %c0_413, %c0_414] : memref<3x2x32xf32, #tpu.memory_space<vmem>>, vector<1x2x32xf32>
    %898 = vector.shape_cast %897 : vector<1x2x32xf32> to vector<2x32xf32>
    %899 = vector.shape_cast %894 : vector<2x32xf32> to vector<1x2x32xf32>
    tpu.vector_store %arg15[%c1_412, %c0_413, %c0_414], %899 {strides = array<i32>} : memref<3x2x32xf32, #tpu.memory_space<vmem>>, vector<1x2x32xf32>,
    %900 = arith.truncf %896 : vector<2x32xf32> to vector<2x32xbf16>
    %c0_415 = arith.constant 0 : index
    %c32_416 = arith.constant 32 : index
    %901 = vector.load %arg14[%c0_415, %c32_416] : memref<2x96xbf16, #tpu.memory_space<vmem>>, vector<2x32xbf16>
    tpu.vector_store %arg14[%c0_415, %c32_416], %900 {strides = array<i32>} : memref<2x96xbf16, #tpu.memory_space<vmem>>, vector<2x32xbf16>,
    %c0_417 = arith.constant 0 : index
    %c32_418 = arith.constant 32 : index
    %902 = vector.load %arg14[%c0_417, %c32_418] : memref<2x96xbf16, #tpu.memory_space<vmem>>, vector<2x64xbf16>
    %c1_419 = arith.constant 1 : index
    %c0_420 = arith.constant 0 : index
    %c0_421 = arith.constant 0 : index
    %903 = vector.load %arg3[%c1_419, %c0_420, %c0_421] : memref<2x64x128xbf16, #tpu.memory_space<vmem>>, vector<1x64x128xbf16>
    %904 = vector.shape_cast %903 : vector<1x64x128xbf16> to vector<64x128xbf16>
    %cst_422 = arith.constant dense<0.000000e+00> : vector<2x128xf32>
    %905 = tpu.matmul %902, %904, %cst_422 {dimension_numbers = #tpu.dot_dimension_numbers<[1], [0], [0], [1], [0, 0, 1, 1], [], []>} : vector<2x64xbf16>, vector<64x128xbf16>, vector<2x128xf32> -> vector<2x128xf32>
    %906 = arith.addf %905, %10 : vector<2x128xf32>
    %c2_423 = arith.constant 2 : index
    %c0_424 = arith.constant 0 : index
    %c0_425 = arith.constant 0 : index
    %907 = vector.load %arg15[%c2_423, %c0_424, %c0_425] : memref<3x2x32xf32, #tpu.memory_space<vmem>>, vector<1x2x32xf32>
    %908 = vector.shape_cast %907 : vector<1x2x32xf32> to vector<2x32xf32>
    %909 = vector.extract_strided_slice %906 {offsets = [0, 0], sizes = [2, 32], strides = [1, 1]} : vector<2x128xf32> to vector<2x32xf32>
    %910 = arith.negf %909 : vector<2x32xf32>
    %911 = math.exp %910 : vector<2x32xf32>
    %cst_426 = arith.constant 1.000000e+00 : f32
    %912 = vector.broadcast %cst_426 : f32 to vector<2x32xf32>
    %913 = arith.addf %912, %911 : vector<2x32xf32>
    %914 = arith.divf %912, %913 : vector<2x32xf32>
    %915 = vector.extract_strided_slice %906 {offsets = [0, 32], sizes = [2, 32], strides = [1, 1]} : vector<2x128xf32> to vector<2x32xf32>
    %916 = arith.negf %915 : vector<2x32xf32>
    %917 = math.exp %916 : vector<2x32xf32>
    %cst_427 = arith.constant 1.000000e+00 : f32
    %918 = vector.broadcast %cst_427 : f32 to vector<2x32xf32>
    %919 = arith.addf %918, %917 : vector<2x32xf32>
    %920 = arith.divf %918, %919 : vector<2x32xf32>
    %921 = vector.extract_strided_slice %906 {offsets = [0, 64], sizes = [2, 32], strides = [1, 1]} : vector<2x128xf32> to vector<2x32xf32>
    %922 = math.tanh %921 : vector<2x32xf32>
    %923 = vector.extract_strided_slice %906 {offsets = [0, 96], sizes = [2, 32], strides = [1, 1]} : vector<2x128xf32> to vector<2x32xf32>
    %924 = arith.negf %923 : vector<2x32xf32>
    %925 = math.exp %924 : vector<2x32xf32>
    %cst_428 = arith.constant 1.000000e+00 : f32
    %926 = vector.broadcast %cst_428 : f32 to vector<2x32xf32>
    %927 = arith.addf %926, %925 : vector<2x32xf32>
    %928 = arith.divf %926, %927 : vector<2x32xf32>
    %929 = arith.mulf %920, %908 : vector<2x32xf32>
    %930 = arith.mulf %914, %922 : vector<2x32xf32>
    %931 = arith.addf %929, %930 : vector<2x32xf32>
    %932 = math.tanh %931 : vector<2x32xf32>
    %933 = arith.mulf %928, %932 : vector<2x32xf32>
    %c2_429 = arith.constant 2 : index
    %c0_430 = arith.constant 0 : index
    %c0_431 = arith.constant 0 : index
    %934 = vector.load %arg15[%c2_429, %c0_430, %c0_431] : memref<3x2x32xf32, #tpu.memory_space<vmem>>, vector<1x2x32xf32>
    %935 = vector.shape_cast %934 : vector<1x2x32xf32> to vector<2x32xf32>
    %936 = vector.shape_cast %931 : vector<2x32xf32> to vector<1x2x32xf32>
    tpu.vector_store %arg15[%c2_429, %c0_430, %c0_431], %936 {strides = array<i32>} : memref<3x2x32xf32, #tpu.memory_space<vmem>>, vector<1x2x32xf32>,
    %937 = arith.truncf %933 : vector<2x32xf32> to vector<2x32xbf16>
    %c0_432 = arith.constant 0 : index
    %c64_433 = arith.constant 64 : index
    %938 = vector.load %arg14[%c0_432, %c64_433] : memref<2x96xbf16, #tpu.memory_space<vmem>>, vector<2x32xbf16>
    tpu.vector_store %arg14[%c0_432, %c64_433], %937 {strides = array<i32>} : memref<2x96xbf16, #tpu.memory_space<vmem>>, vector<2x32xbf16>,
    %c8_i32 = arith.constant 8 : i32
    %c0_i32_434 = arith.constant 0 : i32
    %939 = arith.cmpi eq, %arg0, %c0_i32_434 : i32
    %940 = arith.extui %939 : i1 to i32
    %c0_i32_435 = arith.constant 0 : i32
    %941 = arith.cmpi ne, %940, %c0_i32_435 : i32
    scf.if %941 {
      %c0_436 = arith.constant 0 : index
      %c64_437 = arith.constant 64 : index
      %942 = vector.load %arg14[%c0_436, %c64_437] : memref<2x96xbf16, #tpu.memory_space<vmem>>, vector<2x32xbf16>
      %c0_438 = arith.constant 0 : index
      %c0_439 = arith.constant 0 : index
      %943 = vector.load %arg5[%c0_438, %c0_439] : memref<32x128xbf16, #tpu.memory_space<vmem>>, vector<32x128xbf16>
      %cst_440 = arith.constant dense<0.000000e+00> : vector<2x128xf32>
      %944 = tpu.matmul %942, %943, %cst_440 {dimension_numbers = #tpu.dot_dimension_numbers<[1], [0], [0], [1], [0, 0, 1, 1], [], []>} : vector<2x32xbf16>, vector<32x128xbf16>, vector<2x128xf32> -> vector<2x128xf32>
      %c0_441 = arith.constant 0 : index
      %c0_442 = arith.constant 0 : index
      %945 = vector.load %arg6[%c0_441, %c0_442] : memref<1x128xf32, #tpu.memory_space<vmem>>, vector<1x128xf32>
      %946 = vector.broadcast %945 : vector<1x128xf32> to vector<2x128xf32>
      %947 = arith.mulf %944, %946 : vector<2x128xf32>
      %c0_443 = arith.constant 0 : index
      %c0_444 = arith.constant 0 : index
      %948 = vector.load %arg7[%c0_443, %c0_444] : memref<1x128xf32, #tpu.memory_space<vmem>>, vector<1x128xf32>
      %949 = vector.broadcast %948 : vector<1x128xf32> to vector<2x128xf32>
      %950 = arith.addf %947, %949 : vector<2x128xf32>
      %cst_445 = arith.constant 0.000000e+00 : f32
      %951 = vector.broadcast %cst_445 : f32 to vector<2x128xf32>
      %952 = arith.maximumf %950, %951 : vector<2x128xf32>
      %953 = arith.truncf %952 : vector<2x128xf32> to vector<2x128xbf16>
      %c0_446 = arith.constant 0 : index
      %c0_447 = arith.constant 0 : index
      %954 = vector.load %arg8[%c0_446, %c0_447] : memref<128x128xbf16, #tpu.memory_space<vmem>>, vector<128x128xbf16>
      %cst_448 = arith.constant dense<0.000000e+00> : vector<2x128xf32>
      %955 = tpu.matmul %953, %954, %cst_448 {dimension_numbers = #tpu.dot_dimension_numbers<[1], [0], [0], [1], [0, 0, 1, 1], [], []>} : vector<2x128xbf16>, vector<128x128xbf16>, vector<2x128xf32> -> vector<2x128xf32>
      %c0_449 = arith.constant 0 : index
      %c0_450 = arith.constant 0 : index
      %956 = vector.load %arg9[%c0_449, %c0_450] : memref<1x128xf32, #tpu.memory_space<vmem>>, vector<1x128xf32>
      %957 = vector.broadcast %956 : vector<1x128xf32> to vector<2x128xf32>
      %958 = arith.mulf %955, %957 : vector<2x128xf32>
      %c0_451 = arith.constant 0 : index
      %c0_452 = arith.constant 0 : index
      %959 = vector.load %arg10[%c0_451, %c0_452] : memref<1x128xf32, #tpu.memory_space<vmem>>, vector<1x128xf32>
      %960 = vector.broadcast %959 : vector<1x128xf32> to vector<2x128xf32>
      %961 = arith.addf %958, %960 : vector<2x128xf32>
      %cst_453 = arith.constant 0.000000e+00 : f32
      %962 = vector.broadcast %cst_453 : f32 to vector<2x128xf32>
      %963 = arith.maximumf %961, %962 : vector<2x128xf32>
      %964 = arith.truncf %963 : vector<2x128xf32> to vector<2x128xbf16>
      %c0_454 = arith.constant 0 : index
      %c0_455 = arith.constant 0 : index
      %965 = vector.load %arg11[%c0_454, %c0_455] : memref<128x128xbf16, #tpu.memory_space<vmem>>, vector<128x128xbf16>
      %cst_456 = arith.constant dense<0.000000e+00> : vector<2x128xf32>
      %966 = tpu.matmul %964, %965, %cst_456 {dimension_numbers = #tpu.dot_dimension_numbers<[1], [0], [0], [1], [0, 0, 1, 1], [], []>} : vector<2x128xbf16>, vector<128x128xbf16>, vector<2x128xf32> -> vector<2x128xf32>
      %c0_457 = arith.constant 0 : index
      %c0_458 = arith.constant 0 : index
      %967 = vector.load %arg12[%c0_457, %c0_458] : memref<1x128xf32, #tpu.memory_space<vmem>>, vector<1x128xf32>
      %968 = vector.broadcast %967 : vector<1x128xf32> to vector<2x128xf32>
      %969 = arith.addf %966, %968 : vector<2x128xf32>
      %970 = arith.negf %969 : vector<2x128xf32>
      %971 = math.exp %970 : vector<2x128xf32>
      %cst_459 = arith.constant 1.000000e+00 : f32
      %972 = vector.broadcast %cst_459 : f32 to vector<2x128xf32>
      %973 = arith.addf %972, %971 : vector<2x128xf32>
      %974 = arith.divf %972, %973 : vector<2x128xf32>
      %c0_460 = arith.constant 0 : index
      %c0_461 = arith.constant 0 : index
      %975 = vector.load %arg13[%c0_460, %c0_461] : memref<2x128xf32, #tpu.memory_space<vmem>>, vector<2x128xf32>
      tpu.vector_store %arg13[%c0_460, %c0_461], %974 {strides = array<i32>} : memref<2x128xf32, #tpu.memory_space<vmem>>, vector<2x128xf32>,
    } else {
    }
    return
  }
  func.func @transform_0(%arg0: i32) -> (i32, i32, i32) {
    %c0_i32 = arith.constant 0 : i32
    %c0_i32_0 = arith.constant 0 : i32
    %c0_i32_1 = arith.constant 0 : i32
    return %arg0, %c0_i32, %c0_i32_0 : i32, i32, i32
  }
  func.func @transform_1(%arg0: i32) -> (i32, i32) {
    %c0_i32 = arith.constant 0 : i32
    %c0_i32_0 = arith.constant 0 : i32
    %c0_i32_1 = arith.constant 0 : i32
    return %c0_i32, %c0_i32_0 : i32, i32
  }
  func.func @transform_2(%arg0: i32) -> (i32, i32, i32) {
    %c0_i32 = arith.constant 0 : i32
    %c0_i32_0 = arith.constant 0 : i32
    %c0_i32_1 = arith.constant 0 : i32
    %c0_i32_2 = arith.constant 0 : i32
    return %c0_i32, %c0_i32_0, %c0_i32_1 : i32, i32, i32
  }
  func.func @transform_3(%arg0: i32) -> (i32, i32, i32) {
    %c0_i32 = arith.constant 0 : i32
    %c0_i32_0 = arith.constant 0 : i32
    %c0_i32_1 = arith.constant 0 : i32
    %c0_i32_2 = arith.constant 0 : i32
    return %c0_i32, %c0_i32_0, %c0_i32_1 : i32, i32, i32
  }
  func.func @transform_4(%arg0: i32) -> (i32, i32) {
    %c0_i32 = arith.constant 0 : i32
    %c0_i32_0 = arith.constant 0 : i32
    %c0_i32_1 = arith.constant 0 : i32
    return %c0_i32, %c0_i32_0 : i32, i32
  }
  func.func @transform_5(%arg0: i32) -> (i32, i32) {
    %c0_i32 = arith.constant 0 : i32
    %c0_i32_0 = arith.constant 0 : i32
    %c0_i32_1 = arith.constant 0 : i32
    return %c0_i32, %c0_i32_0 : i32, i32
  }
  func.func @transform_6(%arg0: i32) -> (i32, i32) {
    %c0_i32 = arith.constant 0 : i32
    %c0_i32_0 = arith.constant 0 : i32
    %c0_i32_1 = arith.constant 0 : i32
    return %c0_i32, %c0_i32_0 : i32, i32
  }
  func.func @transform_7(%arg0: i32) -> (i32, i32) {
    %c0_i32 = arith.constant 0 : i32
    %c0_i32_0 = arith.constant 0 : i32
    %c0_i32_1 = arith.constant 0 : i32
    return %c0_i32, %c0_i32_0 : i32, i32
  }
  func.func @transform_8(%arg0: i32) -> (i32, i32) {
    %c0_i32 = arith.constant 0 : i32
    %c0_i32_0 = arith.constant 0 : i32
    %c0_i32_1 = arith.constant 0 : i32
    return %c0_i32, %c0_i32_0 : i32, i32
  }
  func.func @transform_9(%arg0: i32) -> (i32, i32) {
    %c0_i32 = arith.constant 0 : i32
    %c0_i32_0 = arith.constant 0 : i32
    %c0_i32_1 = arith.constant 0 : i32
    return %c0_i32, %c0_i32_0 : i32, i32
  }
  func.func @transform_10(%arg0: i32) -> (i32, i32) {
    %c0_i32 = arith.constant 0 : i32
    %c0_i32_0 = arith.constant 0 : i32
    %c0_i32_1 = arith.constant 0 : i32
    return %c0_i32, %c0_i32_0 : i32, i32
  }
  func.func @transform_11(%arg0: i32) -> (i32, i32) {
    %c0_i32 = arith.constant 0 : i32
    %c0_i32_0 = arith.constant 0 : i32
    %c0_i32_1 = arith.constant 0 : i32
    return %c0_i32, %c0_i32_0 : i32, i32
  }
  func.func @transform_12(%arg0: i32) -> (i32, i32) {
    %c0_i32 = arith.constant 0 : i32
    %c0_i32_0 = arith.constant 0 : i32
    %c0_i32_1 = arith.constant 0 : i32
    return %c0_i32, %c0_i32_0 : i32, i32
  }
}

</mosaic_0001>

<bundles_post_ra>
// kernel: lrcn_lstm_forward.2
= control target key start
LH: loop header
LB: loop body
LE: loop exit
PB: predicated region body
PF: predicated region fallthrough
CT: control target
= control target key end

     0   :  { %8 = vsyncpa [#allocation4], 0  ;;  %s195_s12 = smov [#allocation3]   ;;  %s241_s0 = inlined_call_operand.vmem [shape: bf16[16,32], index: 0, kind: input, shape index: {}]   ;;  %s242_s1 = inlined_call_operand.hbm [shape: bf16[32,128], index: 1, kind: input, shape index: {}]   ;;  %s243_s2 = inlined_call_operand.vmem [shape: f32[1,128], index: 2, kind: input, shape index: {}]   ;;  %s244_s3 = inlined_call_operand.vmem [shape: bf16[16,128], index: 3, kind: output, shape index: {}]  }
   0x1   :  { %s16_s13 = sshll.u32 %s195_s12, 4  ;;  %s171_s16 = scalar_lea.hbm %s242_s1, 256  ;;  %s17_s13 = int_to_ptr.vmem [resolvable:$true] %s16_s13 }
   0x2   :  { %p172_p0 = scmp.ne.s32.totalorder %s242_s1, %s171_s16  ;;  %p175_p1 = scmp.lt.u32.totalorder %s171_s16, %s242_s1 }
   0x4   :  { %p177_p2 = pnand %p175_p1, %p172_p0 }
   0x6   :  { %180 = shalt.err (!%p177_p2)
}
   0x7   :  { %s181_s21 = scalar_lea.vmem %s17_s13, 256  ;;  %p186_p4 = scmp.lt.s32.totalorder %s17_s13, %s17_s13 }
   0x8   :  { %p182_p3 = scmp.ne.s32.totalorder %s17_s13, %s181_s21  ;;  %p187_p5 = scmp.lt.s32.totalorder %s181_s21, %s181_s21 }
   0xa   :  { %p188_p6 = por %p187_p5, %p186_p4 }
   0xc   :  { %p189_p7 = pnand %p188_p6, %p182_p3 }
   0xe   :  { %192 = shalt.err (!%p189_p7)
}
   0xf   :  { %s196_s22 = smov 64   ;;  %s197_s23 = smov 4  }
  0x10   :  { %22 = dma.hbm_to_vmem [thread:$0]  %s242_s1, 256, %s17_s13, [#allocation4], %s196_s22, %s196_s22, %s197_s23  }
  0x11   :  { %193 = dma.done.wait [#allocation4], 256  }
  0x12   :  { %194 = vsyncadd [#allocation4], 4294967040  ;;  %v198_v0 = vmov 0.0   ;;  %vm199_vm0 = vmmov 0   ;;  %v168_v1 = vld [vmem:[#allocation3] sm:$0xff]   ;;  %v169_v2 = vld [vmem:[#allocation3 + $0x8] sm:$0xff]  }
  0x13   :  { %155 = vmatprep.subr.bf16.mxu0 %v198_v0  ;;  %159 = vmatprep.mubr.msk.bf16.mxu0 %vm199_vm0, %v198_v0  ;;  %v170_v3 = vld [vmem:[%s241_s0] sm:$0xff]   ;;  %vm60_vm1 = vcmask 261120  }
  0x14   :  { %156 = vmatpush3.bf16.msra.mxu0 %v168_v1  ;;  %v142_v5 = vld [vmem:[%s243_s2] ss:$0 sm:$0xff] }
  0x15   :  { %157 = vmatprep.subr.bf16.mxu0 %v198_v0 }
  0x18   :  { %158 = vmatpush3.bf16.msra.mxu0 %v169_v2 }
  0x1b   :  { %160 = vmatmul.mubr.msk.bf16.vlgmr.msra.gmra.mrb[0].mxu0 %vm60_vm1, %v170_v3 }
  0xee   :  { %v98_v4 = vpop.f32.mrb[0].mxu0 }
  0xef   :  { %v161_v6 = vpop.f32.mrb[1].mxu0  ;;  %v121_v8 = vadd.f32 %v142_v5, %v98_v4 }
  0xf0   :  { %v101_v7 = vpop.f32.mrb[2].mxu0 }
  0xf1   :  { %v122_v9 = vadd.f32 %v142_v5, %v101_v7  ;;  %v162_v10 = vpop.f32.mrb[3].mxu0 }
  0xf3   :  { %v150_v11 = vpack.c.bf16 %v122_v9, %v121_v8 }
  0xf5   :  { %151 = vst [vmem:[%s244_s3] sm:$0xff] %v150_v11  }
  0xf6   :  { %137 = vsyncpa [#allocation4], 1 }

// kernel: lrcn_lstm_forward.3
= control target key start
LH: loop header
LB: loop body
LE: loop exit
PB: predicated region body
PF: predicated region fallthrough
CT: control target
= control target key end

     0   :  { %17 = vsyncpa [#allocation5], 0  ;;  %s5770_s0 = inlined_call_operand.vmem [shape: bf16[8,2,128], index: 0, kind: input, shape index: {}]   ;;  %s5771_s1 = inlined_call_operand.vmem [shape: bf16[32,128], index: 1, kind: input, shape index: {}]   ;;  %s5772_s2 = inlined_call_operand.vmem [shape: bf16[2,64,128], index: 2, kind: input, shape index: {}]   ;;  %s5773_s3 = inlined_call_operand.vmem [shape: f32[2,1,128], index: 3, kind: input, shape index: {}]   ;;  %s5774_s4 = inlined_call_operand.vmem [shape: bf16[32,128], index: 4, kind: input, shape index: {}]   ;;  %s5775_s5 = inlined_call_operand.vmem [shape: f32[1,128], index: 5, kind: input, shape index: {}]   ;;  %s5776_s6 = inlined_call_operand.vmem [shape: f32[1,128], index: 6, kind: input, shape index: {}]   ;;  %s5777_s7 = inlined_call_operand.hbm [shape: bf16[128,128], index: 7, kind: input, shape index: {}]   ;;  %s5778_s8 = inlined_call_operand.vmem [shape: f32[1,128], index: 8, kind: input, shape index: {}]   ;;  %s5779_s9 = inlined_call_operand.vmem [shape: f32[1,128], index: 9, kind: input, shape index: {}]   ;;  %s5780_s10 = inlined_call_operand.hbm [shape: bf16[128,128], index: 10, kind: input, shape index: {}]   ;;  %s5781_s11 = inlined_call_operand.vmem [shape: f32[1,128], index: 11, kind: input, shape index: {}]   ;;  %s5782_s12 = inlined_call_operand.hbm [shape: f32[2,128], index: 12, kind: output, shape index: {}]  }
   0x1   :  { %18 = vsyncpa [#allocation8], 0 }
   0x2   :  { %19 = vsyncpa [#allocation6], 0  ;;  %s4783_s21 = smov [#allocation4]   ;;  %s4711_s25 = scalar_lea.hbm %s5777_s7, 1024 }
   0x3   :  { %s39_s22 = sshll.u32 %s4783_s21, 4  ;;  %p4712_p0 = scmp.ne.s32.totalorder %s5777_s7, %s4711_s25  ;;  %s40_s22 = int_to_ptr.vmem [resolvable:$true] %s39_s22 }
   0x4   :  { %p4715_p1 = scmp.lt.u32.totalorder %s4711_s25, %s5777_s7 }
   0x6   :  { %p4717_p2 = pnand %p4715_p1, %p4712_p0 }
   0x8   :  { %4720 = shalt.err (!%p4717_p2)
}
   0x9   :  { %s4721_s30 = scalar_lea.vmem %s40_s22, 1024  ;;  %p4726_p4 = scmp.lt.s32.totalorder %s40_s22, %s40_s22 }
   0xa   :  { %p4722_p3 = scmp.ne.s32.totalorder %s40_s22, %s4721_s30  ;;  %p4727_p5 = scmp.lt.s32.totalorder %s4721_s30, %s4721_s30 }
   0xc   :  { %p4728_p6 = por %p4727_p5, %p4726_p4 }
   0xe   :  { %p4729_p7 = pnand %p4728_p6, %p4722_p3 }
  0x10   :  { %4732 = shalt.err (!%p4729_p7)
}
  0x11   :  { %s4784_s13 = smov 64   ;;  %s4785_s14 = smov 4  }
  0x12   :  { %45 = dma.hbm_to_vmem [thread:$0]  %s5777_s7, 1024, %s40_s22, [#allocation5], %s4784_s13, %s4784_s13, %s4785_s14  }
  0x13   :  { %s4786_s17 = smov [#allocation7]   ;;  %s4733_s21 = scalar_lea.hbm %s5780_s10, 1024 }
  0x14   :  { %s55_s18 = sshll.u32 %s4786_s17, 4  ;;  %p4734_p8 = scmp.ne.s32.totalorder %s5780_s10, %s4733_s21  ;;  %s56_s18 = int_to_ptr.vmem [resolvable:$true] %s55_s18 }
  0x15   :  { %p4737_p9 = scmp.lt.u32.totalorder %s4733_s21, %s5780_s10 }
  0x17   :  { %p4739_p10 = pnand %p4737_p9, %p4734_p8 }
  0x19   :  { %4742 = shalt.err (!%p4739_p10)
}
  0x1a   :  { %s4743_s27 = scalar_lea.vmem %s56_s18, 1024  ;;  %p4748_p12 = scmp.lt.s32.totalorder %s56_s18, %s56_s18 }
  0x1b   :  { %p4744_p11 = scmp.ne.s32.totalorder %s56_s18, %s4743_s27  ;;  %p4749_p13 = scmp.lt.s32.totalorder %s4743_s27, %s4743_s27 }
  0x1d   :  { %p4750_p0 = por %p4749_p13, %p4748_p12 }
  0x1f   :  { %p4751_p1 = pnand %p4750_p0, %p4744_p11 }
  0x21   :  { %4754 = shalt.err (!%p4751_p1)
}
  0x22   :  { %61 = dma.hbm_to_vmem [thread:$0]  %s5780_s10, 1024, %s56_s18, [#allocation8], %s4784_s13, %s4784_s13, %s4785_s14  }
  0x23   :  { %4777 = dma.done.wait [#allocation5], 1024  }
  0x24   :  { %4778 = vsyncadd [#allocation5], 4294966272 }
  0x25   :  { %4779 = dma.done.wait [#allocation8], 1024  }
  0x26   :  { %4780 = vsyncadd [#allocation8], 4294966272  ;;  %vm75_vm0 = vcmask 778240   ;;  %v4787_v0 = vmov 0.0   ;;  %vm4788_vm1 = vmmov 0   ;;  %v4789_v1 = vmov 0  }
  0x27   :  { %4099 = vmatprep.subr.bf16.mxu0 %v4787_v0  ;;  %4103 = vmatprep.mubr.msk.bf16.mxu0 %vm4788_vm1, %v4787_v0  ;;  %76 = vst.msk [vmem:[#allocation2] sm:$0x1] %vm75_vm0, %v4789_v1  ;;  %v4415_v2 = vld [vmem:[%s5771_s1] sm:$0xff]   ;;  %v4416_v3 = vld [vmem:[%s5771_s1 + $0x8] sm:$0xff]   ;;  %vm115_vm2 = vcmask 261120   ;;  %vm77_vm3 = vcmask 254976   ;;  %v200_v29 = vlaneseq }
  0x28   :  { %4107 = vmatprep.subr.bf16.mxu1 %v4787_v0  ;;  %4115 = vmatprep.mubr.msk.bf16.mxu1 %vm4788_vm1, %v4787_v0  ;;  %78 = vst.msk [vmem:[#allocation3] sm:$0x3] %vm77_vm3, %v4787_v0  ;;  %79 = vst.msk [vmem:[#allocation3 + $0x2] sm:$0x3] %vm77_vm3, %v4787_v0  ;;  %v96_v5 = vld [vmem:[%s5770_s0] sm:$0x1] }
  0x29   :  { %4100 = vmatpush3.bf16.msra.mxu0 %v4415_v2  ;;  %80 = vst.msk [vmem:[#allocation3 + $0x4] sm:$0x3] %vm77_vm3, %v4787_v0  ;;  %v97_v6 = vunpack.c.l.bf16 %v96_v5  ;;  %s4790_s16 = smov 32   ;;  %v4417_v24 = vld [vmem:[%s5772_s2] sm:$0xff]   ;;  %v4418_v25 = vld [vmem:[%s5772_s2 + $0x8] sm:$0xff]   ;;  %v4419_v30 = vld [vmem:[%s5772_s2 + $0x10] sm:$0xff]  }
  0x2a   :  { %4101 = vmatprep.subr.bf16.mxu0 %v4787_v0  ;;  %4108 = vmatpush3.bf16.msra.mxu1 %v4417_v24  ;;  %v4791_v27 = vmov 1966171168   ;;  %v4933_v32 = vshrl.u32 %v200_v29, 7  ;;  %v4420_v33 = vld [vmem:[%s5772_s2 + $0x18] sm:$0xff]   ;;  %vm228_vm4 = vcmask 253952   ;;  %vm263_vm5 = vcmask 523264  }
  0x2b   :  { %4109 = vmatprep.subr.bf16.mxu1 %v4787_v0  ;;  %v212_v28 = vunpack.c.l.s4 %v4791_v27  ;;  %v4953_v43 = vld [vmem:[%s5773_s3] ss:$0 sm:$0xff]  ;;  %v4423_v5 = vld [vmem:[%s5772_s2 + $0x30] sm:$0xff]   ;;  %vm361_vm6 = vcmask 516352   ;;  %s4792_s17 = smov 96   ;;  %vm511_vm7 = vcmask 778752  }
  0x2c   :  { %v4421_v2 = vld [vmem:[%s5772_s2 + $0x20] sm:$0xff]  }
  0x2d   :  { %4102 = vmatpush3.bf16.msra.mxu0 %v4416_v3  ;;  %v213_v31 = vunpack.c.0.s8 %v212_v28 }
  0x2e   :  { %v98_v4 = vld [vmem:[#allocation2] sm:$0x1]  ;;  %4119 = vmatprep.subr.bf16.mxu0 %v4787_v0  ;;  %4110 = vmatpush3.bf16.msra.mxu1 %v4418_v25 }
  0x2f   :  { %v3737_v13 = vld.sshfl [vmem:[#allocation3] sm:$0x3 pattern:$0x76325410]  ;;  %4111 = vmatprep.subr.bf16.mxu1 %v4787_v0  ;;  %v4939_v35 = vsub.s32 %v213_v31, %v4933_v32  ;;  %v308_v40 = vld [vmem:[#allocation3 + $0x2] sm:$0x3] }
  0x30   :  { %4104 = vmatmul.mubr.msk.bf16.vlgmr.msra.gmra.mrb[0].mxu0 %vm115_vm2, %v98_v4  ;;  %v4422_v4 = vld [vmem:[%s5772_s2 + $0x28] sm:$0xff]  }
  0x31   :  { %4127 = vmatprep.mubr.msk.bf16.mxu0 %vm4788_vm1, %v4787_v0  ;;  %4120 = vmatpush3.bf16.msra.mxu0 %v4421_v2 }
  0x32   :  { %4112 = vmatpush3.bf16.msra.mxu1 %v4419_v30  ;;  %4121 = vmatprep.subr.bf16.mxu0 %v4787_v0  ;;  %v4793_v30 = vmov 1983009808  }
  0x33   :  { %4113 = vmatprep.subr.bf16.mxu1 %v4787_v0  ;;  %v198_v31 = vunpack.c.l.s4 %v4793_v30 }
  0x35   :  { %4122 = vmatpush3.bf16.msra.mxu0 %v4422_v4 }
  0x36   :  { %4114 = vmatpush3.bf16.msra.mxu1 %v4420_v33  ;;  %4123 = vmatprep.subr.bf16.mxu0 %v4787_v0  ;;  %v199_v33 = vunpack.c.0.s8 %v198_v31 }
  0x37   :  { %4131 = vmatprep.subr.bf16.mxu1 %v4787_v0 }
  0x39   :  { %4124 = vmatpush3.bf16.msra.mxu0 %v4423_v5  ;;  %v4427_v5 = vld [vmem:[%s5772_s2] sm:$0xff]  }
  0x3a   :  { %4125 = vmatprep.subr.bf16.mxu0 %v4787_v0 }
 0x103   :  { %v153_v7 = vpop.f32.mrb[0].mxu0 }
 0x104   :  { %v159_v8 = vadd.f32 %v153_v7, %v97_v6  ;;  %v4105_v9 = vpop.f32.mrb[1].mxu0  ;;  %v4424_v6 = vld [vmem:[%s5772_s2 + $0x38] sm:$0xff]  }
 0x105   :  { %v156_v10 = vpop.f32.mrb[2].mxu0  ;;  %4126 = vmatpush3.bf16.msra.mxu0 %v4424_v6  ;;  %v4428_v6 = vld [vmem:[%s5772_s2 + $0x8] sm:$0xff]  }
 0x106   :  { %v4106_v11 = vpop.f32.mrb[3].mxu0  ;;  %4513 = vtanh.f32 %v159_v8  ;;  %v3736_v14 = vmul.f32 -1.442695, %v159_v8  ;;  %4139 = vmatprep.subr.bf16.mxu0 %v4787_v0  ;;  %v458_v10 = vld [vmem:[#allocation3 + $0x4] sm:$0x3] }
 0x108   :  { %4515 = vpow2.f32 %v3736_v14 }
 0x110   :  { %v4514_v12 = vpop.eup %4513 }
 0x111   :  { %181 = vrot.lane.b32.xlu0 %v4514_v12, %s4784_s13  ;;  %v4991_v12 = vld [vmem:[%s5773_s3 + $0x1] ss:$0 sm:$0xff] }
 0x112   :  { %v4516_v15 = vpop.eup %4515 }
 0x113   :  { %v164_v16 = vadd.f32 1.0, %v4516_v15 }
 0x115   :  { %176 = vrot.lane.b32.xlu0 %v3737_v13, %s4790_s16  ;;  %4517 = vrcp.f32 %v164_v16 }
 0x11f   :  { %v4518_v17 = vpop.eup %4517 }
 0x183   :  { %v182_v18 = vpop.permute.xlu0 %181 }
 0x184   :  { %v184_v19 = vmul.f32 %v4518_v17, %v182_v18 }
 0x186   :  { %186 = vrot.lane.b32.xlu1 %v184_v19, %s4790_s16 }
 0x187   :  { %v177_v20 = vpop.permute.xlu0 %176 }
 0x188   :  { %v179_v21 = vmul.f32 %v4518_v17, %v177_v20 }
 0x1f8   :  { %v187_v22 = vpop.permute.xlu1 %186 }
 0x1f9   :  { %v4917_v23 = vadd.f32 %v187_v22, %v179_v21 }
 0x1fb   :  { %4519 = vtanh.f32 %v4917_v23 }
 0x205   :  { %v4520_v26 = vpop.eup %4519 }
 0x206   :  { %192 = vrot.lane.b32.xlu1 %v4520_v26, %s4784_s13 }
 0x278   :  { %v193_v34 = vpop.permute.xlu1 %192 }
 0x279   :  { %v195_v36 = vmul.f32 %v4518_v17, %v193_v34  ;;  %v5000_v34 = vsub.s32 %v199_v33, %v4933_v32  ;;  %v4426_v32 = vld [vmem:[%s5771_s1 + $0x8] sm:$0xff]  }
 0x27b   :  { %v209_v37 = vpack.c.bf16 %v195_v36, %v195_v36 }
 0x27d   :  { %v217_v38 = vrot.slane %v209_v37, %v4939_v35  ;;  %v203_v37 = vrot.slane %v4917_v23, %v5000_v34 }
 0x27f   :  { %v224_v39 = vrot.slane %v217_v38, %v4939_v35  ;;  %v4425_v38 = vld [vmem:[%s5771_s1] sm:$0xff]  }
 0x281   :  { %225 = vrot.lane.b32.xlu0 %v224_v39, %s4790_s16 }
 0x285   :  { %317 = vrot.lane.b32.xlu0 %v308_v40, %s4790_s16 }
 0x2f3   :  { %v226_v41 = vpop.permute.xlu0 %225 }
 0x2f4   :  { %229 = vst.msk [vmem:[#allocation2] sm:$0x1] %vm228_vm4, %v226_v41 }
 0x2f7   :  { %v318_v56 = vpop.permute.xlu0 %317 }
 0x2fb   :  { %v230_v42 = vld [vmem:[#allocation2] sm:$0x1] }
 0x2fc   :  { %4116 = vmatmul.mubr.msk.bf16.vlgmr.msra.gmra.mrb[0].mxu1 %vm263_vm5, %v230_v42 }
 0x2fd   :  { %4135 = vmatprep.mubr.msk.bf16.mxu1 %vm4788_vm1, %v4787_v0  ;;  %4132 = vmatpush3.bf16.msra.mxu1 %v4425_v38 }
 0x2fe   :  { %4133 = vmatprep.subr.bf16.mxu1 %v4787_v0 }
 0x301   :  { %4134 = vmatpush3.bf16.msra.mxu1 %v4426_v32 }
 0x302   :  { %4151 = vmatprep.subr.bf16.mxu1 %v4787_v0 }
 0x3cf   :  { %v301_v44 = vpop.f32.mrb[0].mxu1 }
 0x3d0   :  { %v302_v45 = vadd.f32 %v4953_v43, %v301_v44  ;;  %v4117_v46 = vpop.f32.mrb[1].mxu1 }
 0x3d1   :  { %v304_v47 = vpop.f32.mrb[2].mxu1 }
 0x3d2   :  { %4521 = vtanh.f32 %v302_v45  ;;  %v4118_v48 = vpop.f32.mrb[3].mxu1  ;;  %v3743_v50 = vmul.f32 -1.442695, %v302_v45 }
 0x3d3   :  { %v3759_v48 = vld [vmem:[%s5770_s0 + $0x1] sm:$0x1] }
 0x3d4   :  { %4523 = vpow2.f32 %v3743_v50 }
 0x3dc   :  { %v4522_v49 = vpop.eup %4521 }
 0x3dd   :  { %322 = vrot.lane.b32.xlu1 %v4522_v49, %s4784_s13  ;;  %v515_v49 = vunpack.c.l.bf16 %v3759_v48 }
 0x3de   :  { %v4524_v51 = vpop.eup %4523 }
 0x3df   :  { %v312_v52 = vadd.f32 1.0, %v4524_v51 }
 0x3e1   :  { %4525 = vrcp.f32 %v312_v52 }
 0x3eb   :  { %v4526_v53 = vpop.eup %4525 }
 0x3ec   :  { %v320_v57 = vmul.f32 %v4526_v53, %v318_v56 }
 0x44f   :  { %v323_v54 = vpop.permute.xlu1 %322 }
 0x450   :  { %v325_v55 = vmul.f32 %v4526_v53, %v323_v54 }
 0x452   :  { %327 = vrot.lane.b32.xlu1 %v325_v55, %s4790_s16 }
 0x4c4   :  { %v328_v58 = vpop.permute.xlu1 %327 }
 0x4c5   :  { %v4958_v59 = vadd.f32 %v328_v58, %v320_v57 }
 0x4c7   :  { %4527 = vtanh.f32 %v4958_v59 }
 0x4d1   :  { %v4528_v60 = vpop.eup %4527 }
 0x4d2   :  { %333 = vrot.lane.b32.xlu0 %v4528_v60, %s4784_s13 }
 0x544   :  { %v334_v61 = vpop.permute.xlu0 %333 }
 0x545   :  { %v336_v62 = vmul.f32 %v4526_v53, %v334_v61 }
 0x547   :  { %v342_v63 = vpack.c.bf16 %v336_v62, %v336_v62 }
 0x549   :  { %v350_v1 = vrot.slane %v342_v63, %v4939_v35 }
 0x54b   :  { %v357_v3 = vrot.slane %v350_v1, %v4939_v35 }
 0x54d   :  { %358 = vrot.lane.b32.xlu1 %v357_v3, %s4784_s13 }
 0x5bf   :  { %v359_v7 = vpop.permute.xlu1 %358 }
 0x5c0   :  { %362 = vst.msk [vmem:[#allocation2] sm:$0x1] %vm361_vm6, %v359_v7  ;;  %v4429_v7 = vld [vmem:[%s5772_s2 + $0x10] sm:$0xff]  }
 0x5c7   :  { %v3752_v8 = vld.sshfl [vmem:[#allocation2] sm:$0x1 pattern:$0x75316420] }
 0x5c8   :  { %v387_v9 = vrot.slane %v3752_v8, %v4939_v35  ;;  %v4430_v8 = vld [vmem:[%s5772_s2 + $0x18] sm:$0xff]  }
 0x5ca   :  { %388 = vrot.lane.b32.xlu0 %v387_v9, %s4792_s17 }
 0x5ce   :  { %467 = vrot.lane.b32.xlu0 %v458_v10, %s4790_s16 }
 0x63c   :  { %v389_v11 = vpop.permute.xlu0 %388 }
 0x63d   :  { %4128 = vmatmul.mubr.msk.bf16.vlgmr.msra.gmra.mrb[4].mxu0 %vm263_vm5, %v389_v11 }
 0x63e   :  { %4147 = vmatprep.mubr.msk.bf16.mxu0 %vm4788_vm1, %v4787_v0  ;;  %4140 = vmatpush3.bf16.msra.mxu0 %v4427_v5 }
 0x63f   :  { %4141 = vmatprep.subr.bf16.mxu0 %v4787_v0 }
 0x640   :  { %v468_v26 = vpop.permute.xlu0 %467 }
 0x642   :  { %4142 = vmatpush3.bf16.msra.mxu0 %v4428_v6 }
 0x643   :  { %4143 = vmatprep.subr.bf16.mxu0 %v4787_v0 }
 0x646   :  { %4144 = vmatpush3.bf16.msra.mxu0 %v4429_v7 }
 0x647   :  { %4145 = vmatprep.subr.bf16.mxu0 %v4787_v0 }
 0x64a   :  { %4146 = vmatpush3.bf16.msra.mxu0 %v4430_v8 }
 0x64b   :  { %4163 = vmatprep.subr.bf16.mxu0 %v4787_v0 }
 0x710   :  { %v451_v13 = vpop.f32.mrb[4].mxu0 }
 0x711   :  { %v452_v14 = vadd.f32 %v4991_v12, %v451_v13  ;;  %v4129_v15 = vpop.f32.mrb[5].mxu0 }
 0x712   :  { %v454_v16 = vpop.f32.mrb[6].mxu0 }
 0x713   :  { %4529 = vtanh.f32 %v452_v14  ;;  %v4130_v17 = vpop.f32.mrb[7].mxu0  ;;  %v3758_v19 = vmul.f32 -1.442695, %v452_v14 }
 0x715   :  { %4531 = vpow2.f32 %v3758_v19 }
 0x71d   :  { %v4530_v18 = vpop.eup %4529 }
 0x71e   :  { %472 = vrot.lane.b32.xlu1 %v4530_v18, %s4784_s13 }
 0x71f   :  { %v4532_v20 = vpop.eup %4531 }
 0x720   :  { %v462_v21 = vadd.f32 1.0, %v4532_v20 }
 0x722   :  { %4533 = vrcp.f32 %v462_v21 }
 0x72c   :  { %v4534_v22 = vpop.eup %4533 }
 0x72d   :  { %v470_v27 = vmul.f32 %v4534_v22, %v468_v26 }
 0x790   :  { %v473_v24 = vpop.permute.xlu1 %472 }
 0x791   :  { %v475_v25 = vmul.f32 %v4534_v22, %v473_v24 }
 0x793   :  { %477 = vrot.lane.b32.xlu1 %v475_v25, %s4790_s16 }
 0x805   :  { %v478_v28 = vpop.permute.xlu1 %477 }
 0x806   :  { %v4996_v29 = vadd.f32 %v478_v28, %v470_v27 }
 0x808   :  { %4535 = vtanh.f32 %v4996_v29 }
 0x812   :  { %v4536_v36 = vpop.eup %4535 }
 0x813   :  { %483 = vrot.lane.b32.xlu0 %v4536_v36, %s4784_s13 }
 0x817   :  { %204 = vrot.lane.b32.xlu0 %v203_v37, %s4792_s17 }
 0x885   :  { %v484_v39 = vpop.permute.xlu0 %483 }
 0x886   :  { %v486_v40 = vmul.f32 %v4534_v22, %v484_v39 }
 0x888   :  { %v492_v41 = vpack.c.bf16 %v486_v40, %v486_v40 }
 0x889   :  { %v205_v23 = vpop.permute.xlu0 %204 }
 0x88a   :  { %v500_v42 = vrot.slane %v492_v41, %v4939_v35  ;;  %208 = vst.msk [vmem:[#allocation3] sm:$0x3] %vm77_vm3, %v205_v23 }
 0x88c   :  { %v507_v44 = vrot.slane %v500_v42, %v4939_v35 }
 0x88e   :  { %508 = vrot.lane.b32.xlu1 %v507_v44, %s4792_s17  ;;  %v4431_v44 = vld [vmem:[%s5772_s2 + $0x20] sm:$0xff]  }
 0x891   :  { %v3764_v45 = vld.sshfl [vmem:[#allocation3] sm:$0x3 pattern:$0x76325410] }
 0x892   :  { %593 = vrot.lane.b32.xlu0 %v3764_v45, %s4790_s16  ;;  %v4432_v45 = vld [vmem:[%s5772_s2 + $0x28] sm:$0xff]  }
 0x900   :  { %v509_v46 = vpop.permute.xlu1 %508 }
 0x901   :  { %512 = vst.msk [vmem:[#allocation2] sm:$0x1] %vm511_vm7, %v509_v46  ;;  %v4433_v46 = vld [vmem:[%s5772_s2 + $0x30] sm:$0xff]  }
 0x904   :  { %v594_v63 = vpop.permute.xlu0 %593 }
 0x908   :  { %v516_v47 = vld [vmem:[#allocation2] sm:$0x1] }
 0x909   :  { %4136 = vmatmul.mubr.msk.bf16.vlgmr.msra.gmra.mrb[4].mxu1 %vm115_vm2, %v516_v47  ;;  %v4434_v47 = vld [vmem:[%s5772_s2 + $0x38] sm:$0xff]  }
 0x90a   :  { %4159 = vmatprep.mubr.msk.bf16.mxu1 %vm4788_vm1, %v4787_v0  ;;  %4152 = vmatpush3.bf16.msra.mxu1 %v4431_v44  ;;  %v4437_v44 = vld [vmem:[%s5772_s2] sm:$0xff]  }
 0x90b   :  { %4153 = vmatprep.subr.bf16.mxu1 %v4787_v0 }
 0x90e   :  { %4154 = vmatpush3.bf16.msra.mxu1 %v4432_v45  ;;  %v4438_v45 = vld [vmem:[%s5772_s2 + $0x8] sm:$0xff]  }
 0x90f   :  { %4155 = vmatprep.subr.bf16.mxu1 %v4787_v0 }
 0x912   :  { %4156 = vmatpush3.bf16.msra.mxu1 %v4433_v46  ;;  %v4439_v46 = vld [vmem:[%s5772_s2 + $0x10] sm:$0xff]  }
 0x913   :  { %4157 = vmatprep.subr.bf16.mxu1 %v4787_v0 }
 0x916   :  { %4158 = vmatpush3.bf16.msra.mxu1 %v4434_v47  ;;  %v4440_v47 = vld [vmem:[%s5772_s2 + $0x18] sm:$0xff]  }
 0x917   :  { %4171 = vmatprep.subr.bf16.mxu1 %v4787_v0 }
 0x9dc   :  { %v570_v50 = vpop.f32.mrb[4].mxu1 }
 0x9dd   :  { %v576_v51 = vadd.f32 %v570_v50, %v515_v49  ;;  %v4137_v52 = vpop.f32.mrb[5].mxu1 }
 0x9de   :  { %v573_v53 = vpop.f32.mrb[6].mxu1 }
 0x9df   :  { %4537 = vtanh.f32 %v576_v51  ;;  %v4138_v54 = vpop.f32.mrb[7].mxu1  ;;  %v3763_v56 = vmul.f32 -1.442695, %v576_v51 }
 0x9e1   :  { %4539 = vpow2.f32 %v3763_v56 }
 0x9e9   :  { %v4538_v55 = vpop.eup %4537 }
 0x9ea   :  { %598 = vrot.lane.b32.xlu1 %v4538_v55, %s4784_s13 }
 0x9eb   :  { %v4540_v57 = vpop.eup %4539 }
 0x9ec   :  { %v581_v58 = vadd.f32 1.0, %v4540_v57 }
 0x9ee   :  { %4541 = vrcp.f32 %v581_v58 }
 0x9f8   :  { %v4542_v60 = vpop.eup %4541 }
 0x9f9   :  { %v596_v1 = vmul.f32 %v4542_v60, %v594_v63 }
 0xa5c   :  { %v599_v61 = vpop.permute.xlu1 %598 }
 0xa5d   :  { %v601_v62 = vmul.f32 %v4542_v60, %v599_v61 }
 0xa5f   :  { %603 = vrot.lane.b32.xlu1 %v601_v62, %s4790_s16 }
 0xad1   :  { %v604_v2 = vpop.permute.xlu1 %603 }
 0xad2   :  { %v5028_v3 = vadd.f32 %v604_v2, %v596_v1 }
 0xad4   :  { %4543 = vtanh.f32 %v5028_v3 }
 0xade   :  { %v4544_v4 = vpop.eup %4543 }
 0xadf   :  { %609 = vrot.lane.b32.xlu0 %v4544_v4, %s4784_s13 }
 0xae3   :  { %338 = vrot.lane.b32.xlu0 %v4958_v59, %s4792_s17 }
 0xb51   :  { %v610_v9 = vpop.permute.xlu0 %609 }
 0xb52   :  { %v612_v10 = vmul.f32 %v4542_v60, %v610_v9  ;;  %v620_v9 = vrot.slane %v5028_v3, %v5000_v34 }
 0xb54   :  { %v625_v59 = vpack.c.bf16 %v612_v10, %v612_v10  ;;  %v4435_v10 = vld [vmem:[%s5771_s1] sm:$0xff]  }
 0xb55   :  { %v339_v11 = vpop.permute.xlu0 %338 }
 0xb56   :  { %v633_v13 = vrot.slane %v625_v59, %v4939_v35  ;;  %341 = vst.msk [vmem:[#allocation3 + $0x2] sm:$0x3] %vm77_vm3, %v339_v11  ;;  %v4436_v59 = vld [vmem:[%s5771_s1 + $0x8] sm:$0xff]  }
 0xb58   :  { %v640_v14 = vrot.slane %v633_v13, %v4939_v35 }
 0xb5a   :  { %641 = vrot.lane.b32.xlu1 %v640_v14, %s4790_s16 }
 0xb5d   :  { %v721_v15 = vld [vmem:[#allocation3 + $0x2] sm:$0x3] }
 0xb5e   :  { %730 = vrot.lane.b32.xlu0 %v721_v15, %s4790_s16 }
 0xbcc   :  { %v642_v16 = vpop.permute.xlu1 %641 }
 0xbcd   :  { %644 = vst.msk [vmem:[#allocation2] sm:$0x1] %vm228_vm4, %v642_v16 }
 0xbd0   :  { %v731_v33 = vpop.permute.xlu0 %730 }
 0xbd4   :  { %v645_v17 = vld [vmem:[#allocation2] sm:$0x1] }
 0xbd5   :  { %4148 = vmatmul.mubr.msk.bf16.vlgmr.msra.gmra.mrb[8].mxu0 %vm263_vm5, %v645_v17 }
 0xbd6   :  { %4167 = vmatprep.mubr.msk.bf16.mxu0 %vm4788_vm1, %v4787_v0  ;;  %4164 = vmatpush3.bf16.msra.mxu0 %v4435_v10 }
 0xbd7   :  { %4165 = vmatprep.subr.bf16.mxu0 %v4787_v0 }
 0xbda   :  { %4166 = vmatpush3.bf16.msra.mxu0 %v4436_v59 }
 0xbdb   :  { %4183 = vmatprep.subr.bf16.mxu0 %v4787_v0 }
 0xca8   :  { %v715_v18 = vpop.f32.mrb[8].mxu0 }
 0xca9   :  { %v716_v19 = vadd.f32 %v4953_v43, %v715_v18  ;;  %v4149_v20 = vpop.f32.mrb[9].mxu0 }
 0xcaa   :  { %v718_v21 = vpop.f32.mrb[10].mxu0  ;;  %v3786_v20 = vld [vmem:[%s5770_s0 + $0x2] sm:$0x1] }
 0xcab   :  { %4545 = vtanh.f32 %v716_v19  ;;  %v4150_v22 = vpop.f32.mrb[11].mxu0  ;;  %v3770_v25 = vmul.f32 -1.442695, %v716_v19  ;;  %v924_v21 = vunpack.c.l.bf16 %v3786_v20 }
 0xcad   :  { %4547 = vpow2.f32 %v3770_v25 }
 0xcb5   :  { %v4546_v24 = vpop.eup %4545 }
 0xcb6   :  { %735 = vrot.lane.b32.xlu1 %v4546_v24, %s4784_s13 }
 0xcb7   :  { %v4548_v26 = vpop.eup %4547 }
 0xcb8   :  { %v725_v27 = vadd.f32 1.0, %v4548_v26 }
 0xcba   :  { %4549 = vrcp.f32 %v725_v27 }
 0xcc4   :  { %v4550_v28 = vpop.eup %4549 }
 0xcc5   :  { %v733_v36 = vmul.f32 %v4550_v28, %v731_v33 }
 0xd28   :  { %v736_v30 = vpop.permute.xlu1 %735 }
 0xd29   :  { %v738_v31 = vmul.f32 %v4550_v28, %v736_v30 }
 0xd2b   :  { %740 = vrot.lane.b32.xlu1 %v738_v31, %s4790_s16 }
 0xd9d   :  { %v741_v37 = vpop.permute.xlu1 %740 }
 0xd9e   :  { %v5062_v38 = vadd.f32 %v741_v37, %v733_v36 }
 0xda0   :  { %4551 = vtanh.f32 %v5062_v38 }
 0xdaa   :  { %v4552_v32 = vpop.eup %4551 }
 0xdab   :  { %746 = vrot.lane.b32.xlu0 %v4552_v32, %s4784_s13 }
 0xe1d   :  { %v747_v39 = vpop.permute.xlu0 %746 }
 0xe1e   :  { %v749_v40 = vmul.f32 %v4550_v28, %v747_v39 }
 0xe20   :  { %v755_v41 = vpack.c.bf16 %v749_v40, %v749_v40 }
 0xe22   :  { %v763_v23 = vrot.slane %v755_v41, %v4939_v35 }
 0xe24   :  { %v770_v42 = vrot.slane %v763_v23, %v4939_v35 }
 0xe26   :  { %771 = vrot.lane.b32.xlu1 %v770_v42, %s4784_s13 }
 0xe2a   :  { %488 = vrot.lane.b32.xlu1 %v4996_v29, %s4792_s17 }
 0xe98   :  { %v772_v48 = vpop.permute.xlu1 %771 }
 0xe99   :  { %774 = vst.msk [vmem:[#allocation2] sm:$0x1] %vm361_vm6, %v772_v48 }
 0xe9c   :  { %v489_v29 = vpop.permute.xlu1 %488 }
 0xe9d   :  { %491 = vst.msk [vmem:[#allocation3 + $0x4] sm:$0x3] %vm77_vm3, %v489_v29 }
 0xea0   :  { %v3779_v49 = vld.sshfl [vmem:[#allocation2] sm:$0x1 pattern:$0x75316420] }
 0xea1   :  { %v798_v50 = vrot.slane %v3779_v49, %v4939_v35 }
 0xea3   :  { %799 = vrot.lane.b32.xlu0 %v798_v50, %s4792_s17 }
 0xea4   :  { %v868_v51 = vld [vmem:[#allocation3 + $0x4] sm:$0x3] }
 0xea5   :  { %877 = vrot.lane.b32.xlu1 %v868_v51, %s4790_s16 }
 0xf15   :  { %v800_v52 = vpop.permute.xlu0 %799 }
 0xf16   :  { %4160 = vmatmul.mubr.msk.bf16.vlgmr.msra.gmra.mrb[8].mxu1 %vm263_vm5, %v800_v52 }
 0xf17   :  { %4179 = vmatprep.mubr.msk.bf16.mxu1 %vm4788_vm1, %v4787_v0  ;;  %v878_v4 = vpop.permute.xlu1 %877  ;;  %4172 = vmatpush3.bf16.msra.mxu1 %v4437_v44 }
 0xf18   :  { %4173 = vmatprep.subr.bf16.mxu1 %v4787_v0 }
 0xf1b   :  { %4174 = vmatpush3.bf16.msra.mxu1 %v4438_v45 }
 0xf1c   :  { %4175 = vmatprep.subr.bf16.mxu1 %v4787_v0 }
 0xf1f   :  { %4176 = vmatpush3.bf16.msra.mxu1 %v4439_v46 }
 0xf20   :  { %4177 = vmatprep.subr.bf16.mxu1 %v4787_v0 }
 0xf23   :  { %4178 = vmatpush3.bf16.msra.mxu1 %v4440_v47 }
 0xf24   :  { %4195 = vmatprep.subr.bf16.mxu1 %v4787_v0 }
 0xfe9   :  { %v862_v53 = vpop.f32.mrb[8].mxu1 }
 0xfea   :  { %v863_v54 = vadd.f32 %v4991_v12, %v862_v53  ;;  %v4161_v55 = vpop.f32.mrb[9].mxu1 }
 0xfeb   :  { %v865_v56 = vpop.f32.mrb[10].mxu1 }
 0xfec   :  { %4553 = vtanh.f32 %v863_v54  ;;  %v4162_v57 = vpop.f32.mrb[11].mxu1  ;;  %v3785_v60 = vmul.f32 -1.442695, %v863_v54 }
 0xfee   :  { %4555 = vpow2.f32 %v3785_v60 }
 0xff6   :  { %v4554_v58 = vpop.eup %4553 }
 0xff7   :  { %882 = vrot.lane.b32.xlu0 %v4554_v58, %s4784_s13 }
 0xff8   :  { %v4556_v61 = vpop.eup %4555 }
 0xff9   :  { %v872_v62 = vadd.f32 1.0, %v4556_v61 }
 0xffb   :  { %4557 = vrcp.f32 %v872_v62 }
0x1005   :  { %v4558_v63 = vpop.eup %4557 }
0x1006   :  { %v880_v5 = vmul.f32 %v4558_v63, %v878_v4 }
0x1069   :  { %v883_v1 = vpop.permute.xlu0 %882 }
0x106a   :  { %v885_v2 = vmul.f32 %v4558_v63, %v883_v1 }
0x106c   :  { %887 = vrot.lane.b32.xlu0 %v885_v2, %s4790_s16 }
0x10de   :  { %v888_v6 = vpop.permute.xlu0 %887 }
0x10df   :  { %v5098_v7 = vadd.f32 %v888_v6, %v880_v5 }
0x10e1   :  { %4559 = vtanh.f32 %v5098_v7 }
0x10eb   :  { %v4560_v8 = vpop.eup %4559 }
0x10ec   :  { %893 = vrot.lane.b32.xlu1 %v4560_v8, %s4784_s13 }
0x10f0   :  { %621 = vrot.lane.b32.xlu1 %v620_v9, %s4792_s17 }
0x115e   :  { %v894_v11 = vpop.permute.xlu1 %893 }
0x115f   :  { %v896_v13 = vmul.f32 %v4558_v63, %v894_v11 }
0x1161   :  { %v902_v14 = vpack.c.bf16 %v896_v13, %v896_v13 }
0x1162   :  { %v622_v3 = vpop.permute.xlu1 %621 }
0x1163   :  { %v910_v15 = vrot.slane %v902_v14, %v4939_v35  ;;  %624 = vst.msk [vmem:[#allocation3] sm:$0x3] %vm77_vm3, %v622_v3 }
0x1165   :  { %v917_v16 = vrot.slane %v910_v15, %v4939_v35 }
0x1167   :  { %918 = vrot.lane.b32.xlu0 %v917_v16, %s4792_s17  ;;  %v4441_v16 = vld [vmem:[%s5772_s2 + $0x20] sm:$0xff]  }
0x116a   :  { %v3791_v17 = vld.sshfl [vmem:[#allocation3] sm:$0x3 pattern:$0x76325410] }
0x116b   :  { %1002 = vrot.lane.b32.xlu1 %v3791_v17, %s4790_s16  ;;  %v4442_v17 = vld [vmem:[%s5772_s2 + $0x28] sm:$0xff]  }
0x11d9   :  { %v919_v18 = vpop.permute.xlu0 %918 }
0x11da   :  { %921 = vst.msk [vmem:[#allocation2] sm:$0x1] %vm511_vm7, %v919_v18  ;;  %v4443_v18 = vld [vmem:[%s5772_s2 + $0x30] sm:$0xff]  }
0x11dd   :  { %v1003_v39 = vpop.permute.xlu1 %1002 }
0x11e1   :  { %v925_v19 = vld [vmem:[#allocation2] sm:$0x1] }
0x11e2   :  { %4168 = vmatmul.mubr.msk.bf16.vlgmr.msra.gmra.mrb[12].mxu0 %vm115_vm2, %v925_v19  ;;  %v4444_v19 = vld [vmem:[%s5772_s2 + $0x38] sm:$0xff]  }
0x11e3   :  { %4191 = vmatprep.mubr.msk.bf16.mxu0 %vm4788_vm1, %v4787_v0  ;;  %4184 = vmatpush3.bf16.msra.mxu0 %v4441_v16  ;;  %v4447_v16 = vld [vmem:[%s5772_s2] sm:$0xff]  }
0x11e4   :  { %4185 = vmatprep.subr.bf16.mxu0 %v4787_v0 }
0x11e7   :  { %4186 = vmatpush3.bf16.msra.mxu0 %v4442_v17  ;;  %v4448_v17 = vld [vmem:[%s5772_s2 + $0x8] sm:$0xff]  }
0x11e8   :  { %4187 = vmatprep.subr.bf16.mxu0 %v4787_v0 }
0x11eb   :  { %4188 = vmatpush3.bf16.msra.mxu0 %v4443_v18  ;;  %v4449_v18 = vld [vmem:[%s5772_s2 + $0x10] sm:$0xff]  }
0x11ec   :  { %4189 = vmatprep.subr.bf16.mxu0 %v4787_v0 }
0x11ef   :  { %4190 = vmatpush3.bf16.msra.mxu0 %v4444_v19  ;;  %v4450_v19 = vld [vmem:[%s5772_s2 + $0x18] sm:$0xff]  }
0x11f0   :  { %4203 = vmatprep.subr.bf16.mxu0 %v4787_v0 }
0x12b5   :  { %v979_v22 = vpop.f32.mrb[12].mxu0 }
0x12b6   :  { %v985_v24 = vadd.f32 %v979_v22, %v924_v21  ;;  %v4169_v25 = vpop.f32.mrb[13].mxu0 }
0x12b7   :  { %v982_v26 = vpop.f32.mrb[14].mxu0 }
0x12b8   :  { %4561 = vtanh.f32 %v985_v24  ;;  %v4170_v27 = vpop.f32.mrb[15].mxu0  ;;  %v3790_v30 = vmul.f32 -1.442695, %v985_v24 }
0x12ba   :  { %4563 = vpow2.f32 %v3790_v30 }
0x12c2   :  { %v4562_v28 = vpop.eup %4561 }
0x12c3   :  { %1007 = vrot.lane.b32.xlu0 %v4562_v28, %s4784_s13 }
0x12c4   :  { %v4564_v31 = vpop.eup %4563 }
0x12c5   :  { %v990_v33 = vadd.f32 1.0, %v4564_v31 }
0x12c7   :  { %4565 = vrcp.f32 %v990_v33 }
0x12d1   :  { %v4566_v36 = vpop.eup %4565 }
0x12d2   :  { %v1005_v40 = vmul.f32 %v4566_v36, %v1003_v39 }
0x1335   :  { %v1008_v37 = vpop.permute.xlu0 %1007 }
0x1336   :  { %v1010_v32 = vmul.f32 %v4566_v36, %v1008_v37 }
0x1338   :  { %1012 = vrot.lane.b32.xlu0 %v1010_v32, %s4790_s16 }
0x13aa   :  { %v1013_v41 = vpop.permute.xlu0 %1012 }
0x13ab   :  { %v5127_v23 = vadd.f32 %v1013_v41, %v1005_v40 }
0x13ad   :  { %4567 = vtanh.f32 %v5127_v23 }
0x13b7   :  { %v4568_v42 = vpop.eup %4567 }
0x13b8   :  { %1018 = vrot.lane.b32.xlu1 %v4568_v42, %s4784_s13 }
0x13bc   :  { %751 = vrot.lane.b32.xlu1 %v5062_v38, %s4792_s17 }
0x142a   :  { %v1019_v48 = vpop.permute.xlu1 %1018 }
0x142b   :  { %v1021_v29 = vmul.f32 %v4566_v36, %v1019_v48  ;;  %v1029_v48 = vrot.slane %v5127_v23, %v5000_v34 }
0x142d   :  { %v1034_v38 = vpack.c.bf16 %v1021_v29, %v1021_v29  ;;  %v4445_v29 = vld [vmem:[%s5771_s1] sm:$0xff]  }
0x142e   :  { %v752_v49 = vpop.permute.xlu1 %751 }
0x142f   :  { %v1042_v50 = vrot.slane %v1034_v38, %v4939_v35  ;;  %754 = vst.msk [vmem:[#allocation3 + $0x2] sm:$0x3] %vm77_vm3, %v752_v49  ;;  %v4446_v38 = vld [vmem:[%s5771_s1 + $0x8] sm:$0xff]  }
0x1431   :  { %v1049_v51 = vrot.slane %v1042_v50, %v4939_v35 }
0x1433   :  { %1050 = vrot.lane.b32.xlu0 %v1049_v51, %s4790_s16 }
0x1436   :  { %v1130_v52 = vld [vmem:[#allocation3 + $0x2] sm:$0x3] }
0x1437   :  { %1139 = vrot.lane.b32.xlu1 %v1130_v52, %s4790_s16 }
0x14a5   :  { %v1051_v53 = vpop.permute.xlu0 %1050 }
0x14a6   :  { %1053 = vst.msk [vmem:[#allocation2] sm:$0x1] %vm228_vm4, %v1051_v53 }
0x14a9   :  { %v1140_v6 = vpop.permute.xlu1 %1139 }
0x14ad   :  { %v1054_v54 = vld [vmem:[#allocation2] sm:$0x1] }
0x14ae   :  { %4180 = vmatmul.mubr.msk.bf16.vlgmr.msra.gmra.mrb[12].mxu1 %vm263_vm5, %v1054_v54 }
0x14af   :  { %4199 = vmatprep.mubr.msk.bf16.mxu1 %vm4788_vm1, %v4787_v0  ;;  %4196 = vmatpush3.bf16.msra.mxu1 %v4445_v29 }
0x14b0   :  { %4197 = vmatprep.subr.bf16.mxu1 %v4787_v0 }
0x14b3   :  { %4198 = vmatpush3.bf16.msra.mxu1 %v4446_v38 }
0x14b4   :  { %4215 = vmatprep.subr.bf16.mxu1 %v4787_v0 }
0x1581   :  { %v1124_v55 = vpop.f32.mrb[12].mxu1 }
0x1582   :  { %v1125_v56 = vadd.f32 %v4953_v43, %v1124_v55  ;;  %v4181_v57 = vpop.f32.mrb[13].mxu1 }
0x1583   :  { %v1127_v58 = vpop.f32.mrb[14].mxu1  ;;  %v3813_v57 = vld [vmem:[%s5770_s0 + $0x3] sm:$0x1] }
0x1584   :  { %4569 = vtanh.f32 %v1125_v56  ;;  %v4182_v60 = vpop.f32.mrb[15].mxu1  ;;  %v3797_v62 = vmul.f32 -1.442695, %v1125_v56  ;;  %v1333_v58 = vunpack.c.l.bf16 %v3813_v57 }
0x1586   :  { %4571 = vpow2.f32 %v3797_v62 }
0x158e   :  { %v4570_v61 = vpop.eup %4569 }
0x158f   :  { %1144 = vrot.lane.b32.xlu0 %v4570_v61, %s4784_s13 }
0x1590   :  { %v4572_v63 = vpop.eup %4571 }
0x1591   :  { %v1134_v1 = vadd.f32 1.0, %v4572_v63 }
0x1593   :  { %4573 = vrcp.f32 %v1134_v1 }
0x159d   :  { %v4574_v2 = vpop.eup %4573 }
0x159e   :  { %v1142_v8 = vmul.f32 %v4574_v2, %v1140_v6 }
0x1601   :  { %v1145_v4 = vpop.permute.xlu0 %1144 }
0x1602   :  { %v1147_v5 = vmul.f32 %v4574_v2, %v1145_v4 }
0x1604   :  { %1149 = vrot.lane.b32.xlu0 %v1147_v5, %s4790_s16 }
0x1676   :  { %v1150_v9 = vpop.permute.xlu0 %1149 }
0x1677   :  { %v5161_v10 = vadd.f32 %v1150_v9, %v1142_v8 }
0x1679   :  { %4575 = vtanh.f32 %v5161_v10 }
0x1683   :  { %v4576_v59 = vpop.eup %4575 }
0x1684   :  { %1155 = vrot.lane.b32.xlu1 %v4576_v59, %s4784_s13 }
0x16f6   :  { %v1156_v11 = vpop.permute.xlu1 %1155 }
0x16f7   :  { %v1158_v13 = vmul.f32 %v4574_v2, %v1156_v11 }
0x16f9   :  { %v1164_v14 = vpack.c.bf16 %v1158_v13, %v1158_v13 }
0x16fb   :  { %v1172_v3 = vrot.slane %v1164_v14, %v4939_v35 }
0x16fd   :  { %v1179_v15 = vrot.slane %v1172_v3, %v4939_v35 }
0x16ff   :  { %1180 = vrot.lane.b32.xlu0 %v1179_v15, %s4784_s13 }
0x1703   :  { %898 = vrot.lane.b32.xlu0 %v5098_v7, %s4792_s17 }
0x1771   :  { %v1181_v20 = vpop.permute.xlu0 %1180 }
0x1772   :  { %1183 = vst.msk [vmem:[#allocation2] sm:$0x1] %vm361_vm6, %v1181_v20 }
0x1775   :  { %v899_v7 = vpop.permute.xlu0 %898 }
0x1776   :  { %901 = vst.msk [vmem:[#allocation3 + $0x4] sm:$0x3] %vm77_vm3, %v899_v7 }
0x1779   :  { %v3806_v21 = vld.sshfl [vmem:[#allocation2] sm:$0x1 pattern:$0x75316420] }
0x177a   :  { %v1207_v22 = vrot.slane %v3806_v21, %v4939_v35 }
0x177c   :  { %1208 = vrot.lane.b32.xlu1 %v1207_v22, %s4792_s17 }
0x177d   :  { %v1277_v24 = vld [vmem:[#allocation3 + $0x4] sm:$0x3] }
0x177e   :  { %1286 = vrot.lane.b32.xlu0 %v1277_v24, %s4790_s16 }
0x17ee   :  { %v1209_v25 = vpop.permute.xlu1 %1208 }
0x17ef   :  { %4192 = vmatmul.mubr.msk.bf16.vlgmr.msra.gmra.mrb[16].mxu0 %vm263_vm5, %v1209_v25 }
0x17f0   :  { %4211 = vmatprep.mubr.msk.bf16.mxu0 %vm4788_vm1, %v4787_v0  ;;  %v1287_v42 = vpop.permute.xlu0 %1286  ;;  %4204 = vmatpush3.bf16.msra.mxu0 %v4447_v16 }
0x17f1   :  { %4205 = vmatprep.subr.bf16.mxu0 %v4787_v0 }
0x17f4   :  { %4206 = vmatpush3.bf16.msra.mxu0 %v4448_v17 }
0x17f5   :  { %4207 = vmatprep.subr.bf16.mxu0 %v4787_v0 }
0x17f8   :  { %4208 = vmatpush3.bf16.msra.mxu0 %v4449_v18 }
0x17f9   :  { %4209 = vmatprep.subr.bf16.mxu0 %v4787_v0 }
0x17fc   :  { %4210 = vmatpush3.bf16.msra.mxu0 %v4450_v19  ;;  %v4455_v19 = vld [vmem:[%s5771_s1] sm:$0xff]  }
0x17fd   :  { %4227 = vmatprep.subr.bf16.mxu0 %v4787_v0 }
0x18c2   :  { %v1271_v26 = vpop.f32.mrb[16].mxu0 }
0x18c3   :  { %v1272_v27 = vadd.f32 %v4991_v12, %v1271_v26  ;;  %v4193_v28 = vpop.f32.mrb[17].mxu0 }
0x18c4   :  { %v1274_v30 = vpop.f32.mrb[18].mxu0 }
0x18c5   :  { %4577 = vtanh.f32 %v1272_v27  ;;  %v4194_v31 = vpop.f32.mrb[19].mxu0  ;;  %v3812_v36 = vmul.f32 -1.442695, %v1272_v27 }
0x18c7   :  { %4579 = vpow2.f32 %v3812_v36 }
0x18cf   :  { %v4578_v33 = vpop.eup %4577 }
0x18d0   :  { %1291 = vrot.lane.b32.xlu1 %v4578_v33, %s4784_s13 }
0x18d1   :  { %v4580_v37 = vpop.eup %4579 }
0x18d2   :  { %v1281_v32 = vadd.f32 1.0, %v4580_v37 }
0x18d4   :  { %4581 = vrcp.f32 %v1281_v32 }
0x18de   :  { %v4582_v39 = vpop.eup %4581 }
0x18df   :  { %v1289_v44 = vmul.f32 %v4582_v39, %v1287_v42 }
0x1942   :  { %v1292_v40 = vpop.permute.xlu1 %1291 }
0x1943   :  { %v1294_v41 = vmul.f32 %v4582_v39, %v1292_v40 }
0x1945   :  { %1296 = vrot.lane.b32.xlu1 %v1294_v41, %s4790_s16 }
0x19b7   :  { %v1297_v45 = vpop.permute.xlu1 %1296 }
0x19b8   :  { %v5197_v46 = vadd.f32 %v1297_v45, %v1289_v44 }
0x19ba   :  { %4583 = vtanh.f32 %v5197_v46 }
0x19c4   :  { %v4584_v47 = vpop.eup %4583 }
0x19c5   :  { %1302 = vrot.lane.b32.xlu0 %v4584_v47, %s4784_s13 }
0x19c9   :  { %1030 = vrot.lane.b32.xlu0 %v1029_v48, %s4792_s17 }
0x1a37   :  { %v1303_v49 = vpop.permute.xlu0 %1302 }
0x1a38   :  { %v1305_v50 = vmul.f32 %v4582_v39, %v1303_v49 }
0x1a3a   :  { %v1311_v51 = vpack.c.bf16 %v1305_v50, %v1305_v50 }
0x1a3b   :  { %v1031_v23 = vpop.permute.xlu0 %1030 }
0x1a3c   :  { %v1319_v52 = vrot.slane %v1311_v51, %v4939_v35  ;;  %1033 = vst.msk [vmem:[#allocation3] sm:$0x3] %vm77_vm3, %v1031_v23 }
0x1a3e   :  { %v1326_v53 = vrot.slane %v1319_v52, %v4939_v35  ;;  %v4451_v52 = vld [vmem:[%s5772_s2 + $0x20] sm:$0xff]  }
0x1a40   :  { %1327 = vrot.lane.b32.xlu1 %v1326_v53, %s4792_s17  ;;  %v4452_v53 = vld [vmem:[%s5772_s2 + $0x28] sm:$0xff]  }
0x1a43   :  { %v3818_v54 = vld.sshfl [vmem:[#allocation3] sm:$0x3 pattern:$0x76325410] }
0x1a44   :  { %1411 = vrot.lane.b32.xlu0 %v3818_v54, %s4790_s16  ;;  %v4453_v54 = vld [vmem:[%s5772_s2 + $0x30] sm:$0xff]  }
0x1ab2   :  { %v1328_v55 = vpop.permute.xlu1 %1327 }
0x1ab3   :  { %1330 = vst.msk [vmem:[#allocation2] sm:$0x1] %vm511_vm7, %v1328_v55  ;;  %v4454_v55 = vld [vmem:[%s5772_s2 + $0x38] sm:$0xff]  }
0x1ab6   :  { %v1412_v11 = vpop.permute.xlu0 %1411 }
0x1aba   :  { %v1334_v56 = vld [vmem:[#allocation2] sm:$0x1] }
0x1abb   :  { %4200 = vmatmul.mubr.msk.bf16.vlgmr.msra.gmra.mrb[16].mxu1 %vm115_vm2, %v1334_v56 }
0x1abc   :  { %4223 = vmatprep.mubr.msk.bf16.mxu1 %vm4788_vm1, %v4787_v0  ;;  %4216 = vmatpush3.bf16.msra.mxu1 %v4451_v52  ;;  %v4459_v52 = vld [vmem:[%s5772_s2 + $0x10] sm:$0xff]  }
0x1abd   :  { %4217 = vmatprep.subr.bf16.mxu1 %v4787_v0 }
0x1ac0   :  { %4218 = vmatpush3.bf16.msra.mxu1 %v4452_v53  ;;  %v4460_v53 = vld [vmem:[%s5772_s2 + $0x18] sm:$0xff]  }
0x1ac1   :  { %4219 = vmatprep.subr.bf16.mxu1 %v4787_v0 }
0x1ac4   :  { %4220 = vmatpush3.bf16.msra.mxu1 %v4453_v54 }
0x1ac5   :  { %4221 = vmatprep.subr.bf16.mxu1 %v4787_v0 }
0x1ac8   :  { %4222 = vmatpush3.bf16.msra.mxu1 %v4454_v55 }
0x1ac9   :  { %4235 = vmatprep.subr.bf16.mxu1 %v4787_v0 }
0x1b8e   :  { %v1388_v60 = vpop.f32.mrb[16].mxu1 }
0x1b8f   :  { %v1394_v61 = vadd.f32 %v1388_v60, %v1333_v58  ;;  %v4201_v62 = vpop.f32.mrb[17].mxu1 }
0x1b90   :  { %v1391_v63 = vpop.f32.mrb[18].mxu1 }
0x1b91   :  { %4585 = vtanh.f32 %v1394_v61  ;;  %v4202_v1 = vpop.f32.mrb[19].mxu1  ;;  %v3817_v4 = vmul.f32 -1.442695, %v1394_v61 }
0x1b93   :  { %4587 = vpow2.f32 %v3817_v4 }
0x1b9b   :  { %v4586_v2 = vpop.eup %4585 }
0x1b9c   :  { %1416 = vrot.lane.b32.xlu1 %v4586_v2, %s4784_s13 }
0x1b9d   :  { %v4588_v5 = vpop.eup %4587 }
0x1b9e   :  { %v1399_v6 = vadd.f32 1.0, %v4588_v5 }
0x1ba0   :  { %4589 = vrcp.f32 %v1399_v6 }
0x1baa   :  { %v4590_v8 = vpop.eup %4589 }
0x1bab   :  { %v1414_v13 = vmul.f32 %v4590_v8, %v1412_v11 }
0x1c0e   :  { %v1417_v9 = vpop.permute.xlu1 %1416 }
0x1c0f   :  { %v1419_v59 = vmul.f32 %v4590_v8, %v1417_v9 }
0x1c11   :  { %1421 = vrot.lane.b32.xlu1 %v1419_v59, %s4790_s16 }
0x1c83   :  { %v1422_v14 = vpop.permute.xlu1 %1421 }
0x1c84   :  { %v5226_v3 = vadd.f32 %v1422_v14, %v1414_v13 }
0x1c86   :  { %4591 = vtanh.f32 %v5226_v3  ;;  %v1438_v18 = vrot.slane %v5226_v3, %v5000_v34 }
0x1c90   :  { %v4592_v15 = vpop.eup %4591 }
0x1c91   :  { %1427 = vrot.lane.b32.xlu0 %v4592_v15, %s4784_s13 }
0x1c95   :  { %1160 = vrot.lane.b32.xlu0 %v5161_v10, %s4792_s17 }
0x1d03   :  { %v1428_v20 = vpop.permute.xlu0 %1427 }
0x1d04   :  { %v1430_v7 = vmul.f32 %v4590_v8, %v1428_v20  ;;  %v4456_v20 = vld [vmem:[%s5771_s1 + $0x8] sm:$0xff]  }
0x1d06   :  { %v1443_v10 = vpack.c.bf16 %v1430_v7, %v1430_v7 }
0x1d07   :  { %v1161_v21 = vpop.permute.xlu0 %1160 }
0x1d08   :  { %v1451_v22 = vrot.slane %v1443_v10, %v4939_v35  ;;  %1163 = vst.msk [vmem:[#allocation3 + $0x2] sm:$0x3] %vm77_vm3, %v1161_v21 }
0x1d0a   :  { %v1458_v24 = vrot.slane %v1451_v22, %v4939_v35 }
0x1d0c   :  { %1459 = vrot.lane.b32.xlu1 %v1458_v24, %s4790_s16 }
0x1d0f   :  { %v1539_v25 = vld [vmem:[#allocation3 + $0x2] sm:$0x3] }
0x1d10   :  { %1548 = vrot.lane.b32.xlu0 %v1539_v25, %s4790_s16 }
0x1d7e   :  { %v1460_v26 = vpop.permute.xlu1 %1459 }
0x1d7f   :  { %1462 = vst.msk [vmem:[#allocation2] sm:$0x1] %vm228_vm4, %v1460_v26 }
0x1d82   :  { %v1549_v45 = vpop.permute.xlu0 %1548 }
0x1d86   :  { %v1463_v27 = vld [vmem:[#allocation2] sm:$0x1] }
0x1d87   :  { %4212 = vmatmul.mubr.msk.bf16.vlgmr.msra.gmra.mrb[20].mxu0 %vm263_vm5, %v1463_v27 }
0x1d88   :  { %4231 = vmatprep.mubr.msk.bf16.mxu0 %vm4788_vm1, %v4787_v0  ;;  %4228 = vmatpush3.bf16.msra.mxu0 %v4455_v19 }
0x1d89   :  { %4229 = vmatprep.subr.bf16.mxu0 %v4787_v0 }
0x1d8c   :  { %4230 = vmatpush3.bf16.msra.mxu0 %v4456_v20 }
0x1d8d   :  { %4247 = vmatprep.subr.bf16.mxu0 %v4787_v0 }
0x1e5a   :  { %v1533_v28 = vpop.f32.mrb[20].mxu0 }
0x1e5b   :  { %v1534_v30 = vadd.f32 %v4953_v43, %v1533_v28  ;;  %v4213_v31 = vpop.f32.mrb[21].mxu0  ;;  %v3840_v28 = vld [vmem:[%s5770_s0 + $0x4] sm:$0x1] }
0x1e5c   :  { %v1536_v33 = vpop.f32.mrb[22].mxu0 }
0x1e5d   :  { %4593 = vtanh.f32 %v1534_v30  ;;  %v4214_v36 = vpop.f32.mrb[23].mxu0  ;;  %v3824_v32 = vmul.f32 -1.442695, %v1534_v30  ;;  %v1742_v30 = vunpack.c.l.bf16 %v3840_v28 }
0x1e5f   :  { %4595 = vpow2.f32 %v3824_v32 }
0x1e67   :  { %v4594_v37 = vpop.eup %4593 }
0x1e68   :  { %1553 = vrot.lane.b32.xlu1 %v4594_v37, %s4784_s13 }
0x1e69   :  { %v4596_v39 = vpop.eup %4595 }
0x1e6a   :  { %v1543_v40 = vadd.f32 1.0, %v4596_v39 }
0x1e6c   :  { %4597 = vrcp.f32 %v1543_v40 }
0x1e76   :  { %v4598_v41 = vpop.eup %4597 }
0x1e77   :  { %v1551_v47 = vmul.f32 %v4598_v41, %v1549_v45 }
0x1eda   :  { %v1554_v42 = vpop.permute.xlu1 %1553 }
0x1edb   :  { %v1556_v44 = vmul.f32 %v4598_v41, %v1554_v42 }
0x1edd   :  { %1558 = vrot.lane.b32.xlu1 %v1556_v44, %s4790_s16 }
0x1f4f   :  { %v1559_v43 = vpop.permute.xlu1 %1558 }
0x1f50   :  { %v5260_v48 = vadd.f32 %v1559_v43, %v1551_v47 }
0x1f52   :  { %4599 = vtanh.f32 %v5260_v48 }
0x1f5c   :  { %v4600_v29 = vpop.eup %4599 }
0x1f5d   :  { %1564 = vrot.lane.b32.xlu0 %v4600_v29, %s4784_s13 }
0x1fcf   :  { %v1565_v38 = vpop.permute.xlu0 %1564 }
0x1fd0   :  { %v1567_v49 = vmul.f32 %v4598_v41, %v1565_v38 }
0x1fd2   :  { %v1573_v50 = vpack.c.bf16 %v1567_v49, %v1567_v49 }
0x1fd4   :  { %v1581_v51 = vrot.slane %v1573_v50, %v4939_v35 }
0x1fd6   :  { %v1588_v23 = vrot.slane %v1581_v51, %v4939_v35  ;;  %v4457_v51 = vld [vmem:[%s5772_s2] sm:$0xff]  }
0x1fd8   :  { %1589 = vrot.lane.b32.xlu1 %v1588_v23, %s4784_s13  ;;  %v4458_v23 = vld [vmem:[%s5772_s2 + $0x8] sm:$0xff]  }
0x1fdc   :  { %1307 = vrot.lane.b32.xlu1 %v5197_v46, %s4792_s17 }
0x204a   :  { %v1590_v56 = vpop.permute.xlu1 %1589 }
0x204b   :  { %1592 = vst.msk [vmem:[#allocation2] sm:$0x1] %vm361_vm6, %v1590_v56 }
0x204e   :  { %v1308_v46 = vpop.permute.xlu1 %1307 }
0x204f   :  { %1310 = vst.msk [vmem:[#allocation3 + $0x4] sm:$0x3] %vm77_vm3, %v1308_v46 }
0x2052   :  { %v3833_v57 = vld.sshfl [vmem:[#allocation2] sm:$0x1 pattern:$0x75316420] }
0x2053   :  { %v1616_v58 = vrot.slane %v3833_v57, %v4939_v35 }
0x2055   :  { %1617 = vrot.lane.b32.xlu0 %v1616_v58, %s4792_s17 }
0x2056   :  { %v1686_v60 = vld [vmem:[#allocation3 + $0x4] sm:$0x3] }
0x2057   :  { %1695 = vrot.lane.b32.xlu1 %v1686_v60, %s4790_s16 }
0x20c7   :  { %v1618_v61 = vpop.permute.xlu0 %1617 }
0x20c8   :  { %4224 = vmatmul.mubr.msk.bf16.vlgmr.msra.gmra.mrb[20].mxu1 %vm263_vm5, %v1618_v61 }
0x20c9   :  { %4243 = vmatprep.mubr.msk.bf16.mxu1 %vm4788_vm1, %v4787_v0  ;;  %v1696_v14 = vpop.permute.xlu1 %1695  ;;  %4236 = vmatpush3.bf16.msra.mxu1 %v4457_v51 }
0x20ca   :  { %4237 = vmatprep.subr.bf16.mxu1 %v4787_v0 }
0x20cd   :  { %4238 = vmatpush3.bf16.msra.mxu1 %v4458_v23 }
0x20ce   :  { %4239 = vmatprep.subr.bf16.mxu1 %v4787_v0 }
0x20d1   :  { %4240 = vmatpush3.bf16.msra.mxu1 %v4459_v52 }
0x20d2   :  { %4241 = vmatprep.subr.bf16.mxu1 %v4787_v0 }
0x20d5   :  { %4242 = vmatpush3.bf16.msra.mxu1 %v4460_v53 }
0x20d6   :  { %4259 = vmatprep.subr.bf16.mxu1 %v4787_v0 }
0x219b   :  { %v1680_v62 = vpop.f32.mrb[20].mxu1 }
0x219c   :  { %v1681_v63 = vadd.f32 %v4991_v12, %v1680_v62  ;;  %v4225_v1 = vpop.f32.mrb[21].mxu1 }
0x219d   :  { %v1683_v2 = vpop.f32.mrb[22].mxu1 }
0x219e   :  { %4601 = vtanh.f32 %v1681_v63  ;;  %v4226_v4 = vpop.f32.mrb[23].mxu1  ;;  %v3839_v6 = vmul.f32 -1.442695, %v1681_v63  ;;  %v5359_v63 = vld [vmem:[%s5773_s3] ss:$0 sm:$0xff] }
0x21a0   :  { %4603 = vpow2.f32 %v3839_v6 }
0x21a8   :  { %v4602_v5 = vpop.eup %4601 }
0x21a9   :  { %1700 = vrot.lane.b32.xlu0 %v4602_v5, %s4784_s13 }
0x21aa   :  { %v4604_v8 = vpop.eup %4603 }
0x21ab   :  { %v1690_v9 = vadd.f32 1.0, %v4604_v8 }
0x21ad   :  { %4605 = vrcp.f32 %v1690_v9 }
0x21b7   :  { %v4606_v59 = vpop.eup %4605 }
0x21b8   :  { %v1698_v15 = vmul.f32 %v4606_v59, %v1696_v14 }
0x221b   :  { %v1701_v11 = vpop.permute.xlu0 %1700 }
0x221c   :  { %v1703_v13 = vmul.f32 %v4606_v59, %v1701_v11 }
0x221e   :  { %1705 = vrot.lane.b32.xlu0 %v1703_v13, %s4790_s16 }
0x2290   :  { %v1706_v12 = vpop.permute.xlu0 %1705 }
0x2291   :  { %v5296_v16 = vadd.f32 %v1706_v12, %v1698_v15 }
0x2293   :  { %4607 = vtanh.f32 %v5296_v16 }
0x229d   :  { %v4608_v17 = vpop.eup %4607 }
0x229e   :  { %1711 = vrot.lane.b32.xlu1 %v4608_v17, %s4784_s13 }
0x22a2   :  { %1439 = vrot.lane.b32.xlu1 %v1438_v18, %s4792_s17 }
0x2310   :  { %v1712_v7 = vpop.permute.xlu1 %1711 }
0x2311   :  { %v1714_v10 = vmul.f32 %v4606_v59, %v1712_v7 }
0x2313   :  { %v1720_v21 = vpack.c.bf16 %v1714_v10, %v1714_v10 }
0x2314   :  { %v1440_v3 = vpop.permute.xlu1 %1439 }
0x2315   :  { %v1728_v22 = vrot.slane %v1720_v21, %v4939_v35  ;;  %1442 = vst.msk [vmem:[#allocation3] sm:$0x3] %vm77_vm3, %v1440_v3 }
0x2317   :  { %v1735_v24 = vrot.slane %v1728_v22, %v4939_v35  ;;  %v4461_v22 = vld [vmem:[%s5772_s2 + $0x20] sm:$0xff]  }
0x2319   :  { %1736 = vrot.lane.b32.xlu0 %v1735_v24, %s4792_s17  ;;  %v4462_v24 = vld [vmem:[%s5772_s2 + $0x28] sm:$0xff]  }
0x231c   :  { %v3845_v25 = vld.sshfl [vmem:[#allocation3] sm:$0x3 pattern:$0x76325410] }
0x231d   :  { %1820 = vrot.lane.b32.xlu1 %v3845_v25, %s4790_s16  ;;  %v4463_v25 = vld [vmem:[%s5772_s2 + $0x30] sm:$0xff]  }
0x238b   :  { %v1737_v26 = vpop.permute.xlu0 %1736 }
0x238c   :  { %1739 = vst.msk [vmem:[#allocation2] sm:$0x1] %vm511_vm7, %v1737_v26  ;;  %v4464_v26 = vld [vmem:[%s5772_s2 + $0x38] sm:$0xff]  }
0x238f   :  { %v1821_v43 = vpop.permute.xlu1 %1820 }
0x2393   :  { %v1743_v27 = vld [vmem:[#allocation2] sm:$0x1] }
0x2394   :  { %4232 = vmatmul.mubr.msk.bf16.vlgmr.msra.gmra.mrb[24].mxu0 %vm115_vm2, %v1743_v27 }
0x2395   :  { %4255 = vmatprep.mubr.msk.bf16.mxu0 %vm4788_vm1, %v4787_v0  ;;  %4248 = vmatpush3.bf16.msra.mxu0 %v4461_v22  ;;  %v4467_v22 = vld [vmem:[%s5772_s2] sm:$0xff]  }
0x2396   :  { %4249 = vmatprep.subr.bf16.mxu0 %v4787_v0 }
0x2399   :  { %4250 = vmatpush3.bf16.msra.mxu0 %v4462_v24  ;;  %v4468_v24 = vld [vmem:[%s5772_s2 + $0x8] sm:$0xff]  }
0x239a   :  { %4251 = vmatprep.subr.bf16.mxu0 %v4787_v0 }
0x239d   :  { %4252 = vmatpush3.bf16.msra.mxu0 %v4463_v25  ;;  %v4469_v25 = vld [vmem:[%s5772_s2 + $0x10] sm:$0xff]  }
0x239e   :  { %4253 = vmatprep.subr.bf16.mxu0 %v4787_v0 }
0x23a1   :  { %4254 = vmatpush3.bf16.msra.mxu0 %v4464_v26  ;;  %v4470_v26 = vld [vmem:[%s5772_s2 + $0x18] sm:$0xff]  }
0x23a2   :  { %4267 = vmatprep.subr.bf16.mxu0 %v4787_v0 }
0x2467   :  { %v1797_v31 = vpop.f32.mrb[24].mxu0 }
0x2468   :  { %v1803_v33 = vadd.f32 %v1797_v31, %v1742_v30  ;;  %v4233_v36 = vpop.f32.mrb[25].mxu0 }
0x2469   :  { %v1800_v37 = vpop.f32.mrb[26].mxu0 }
0x246a   :  { %4609 = vtanh.f32 %v1803_v33  ;;  %v4234_v32 = vpop.f32.mrb[27].mxu0  ;;  %v3844_v40 = vmul.f32 -1.442695, %v1803_v33  ;;  %v5400_v37 = vld [vmem:[%s5773_s3 + $0x1] ss:$0 sm:$0xff] }
0x246c   :  { %4611 = vpow2.f32 %v3844_v40 }
0x2474   :  { %v4610_v39 = vpop.eup %4609 }
0x2475   :  { %1825 = vrot.lane.b32.xlu0 %v4610_v39, %s4784_s13 }
0x2476   :  { %v4612_v41 = vpop.eup %4611 }
0x2477   :  { %v1808_v42 = vadd.f32 1.0, %v4612_v41 }
0x2479   :  { %4613 = vrcp.f32 %v1808_v42 }
0x2483   :  { %v4614_v44 = vpop.eup %4613 }
0x2484   :  { %v1823_v29 = vmul.f32 %v4614_v44, %v1821_v43 }
0x24e7   :  { %v1826_v45 = vpop.permute.xlu0 %1825 }
0x24e8   :  { %v1828_v47 = vmul.f32 %v4614_v44, %v1826_v45 }
0x24ea   :  { %1830 = vrot.lane.b32.xlu0 %v1828_v47, %s4790_s16 }
0x255c   :  { %v1831_v38 = vpop.permute.xlu0 %1830 }
0x255d   :  { %v5325_v49 = vadd.f32 %v1831_v38, %v1823_v29 }
0x255f   :  { %4615 = vtanh.f32 %v5325_v49 }
0x2569   :  { %v4616_v50 = vpop.eup %4615 }
0x256a   :  { %1836 = vrot.lane.b32.xlu1 %v4616_v50, %s4784_s13 }
0x256e   :  { %1569 = vrot.lane.b32.xlu1 %v5260_v48, %s4792_s17 }
0x25dc   :  { %v1837_v54 = vpop.permute.xlu1 %1836 }
0x25dd   :  { %v1839_v55 = vmul.f32 %v4614_v44, %v1837_v54  ;;  %v1847_v54 = vrot.slane %v5325_v49, %v5000_v34 }
0x25df   :  { %v1852_v48 = vpack.c.bf16 %v1839_v55, %v1839_v55  ;;  %v4465_v55 = vld [vmem:[%s5771_s1] sm:$0xff]  }
0x25e0   :  { %v1570_v56 = vpop.permute.xlu1 %1569 }
0x25e1   :  { %v1860_v46 = vrot.slane %v1852_v48, %v4939_v35  ;;  %1572 = vst.msk [vmem:[#allocation3 + $0x2] sm:$0x3] %vm77_vm3, %v1570_v56  ;;  %v4466_v48 = vld [vmem:[%s5771_s1 + $0x8] sm:$0xff]  }
0x25e3   :  { %v1867_v57 = vrot.slane %v1860_v46, %v4939_v35 }
0x25e5   :  { %1868 = vrot.lane.b32.xlu0 %v1867_v57, %s4790_s16 }
0x25e8   :  { %v1948_v58 = vld [vmem:[#allocation3 + $0x2] sm:$0x3] }
0x25e9   :  { %1957 = vrot.lane.b32.xlu1 %v1948_v58, %s4790_s16 }
0x2657   :  { %v1869_v60 = vpop.permute.xlu0 %1868 }
0x2658   :  { %1871 = vst.msk [vmem:[#allocation2] sm:$0x1] %vm228_vm4, %v1869_v60 }
0x265b   :  { %v1958_v15 = vpop.permute.xlu1 %1957 }
0x265f   :  { %v1872_v61 = vld [vmem:[#allocation2] sm:$0x1] }
0x2660   :  { %4244 = vmatmul.mubr.msk.bf16.vlgmr.msra.gmra.mrb[24].mxu1 %vm263_vm5, %v1872_v61 }
0x2661   :  { %4263 = vmatprep.mubr.msk.bf16.mxu1 %vm4788_vm1, %v4787_v0  ;;  %4260 = vmatpush3.bf16.msra.mxu1 %v4465_v55 }
0x2662   :  { %4261 = vmatprep.subr.bf16.mxu1 %v4787_v0 }
0x2665   :  { %4262 = vmatpush3.bf16.msra.mxu1 %v4466_v48 }
0x2666   :  { %4279 = vmatprep.subr.bf16.mxu1 %v4787_v0 }
0x2733   :  { %v1942_v62 = vpop.f32.mrb[24].mxu1 }
0x2734   :  { %v1943_v1 = vadd.f32 %v5359_v63, %v1942_v62  ;;  %v4245_v2 = vpop.f32.mrb[25].mxu1 }
0x2735   :  { %v1945_v4 = vpop.f32.mrb[26].mxu1  ;;  %v3867_v2 = vld [vmem:[%s5770_s0 + $0x5] sm:$0x1] }
0x2736   :  { %4617 = vtanh.f32 %v1943_v1  ;;  %v4246_v5 = vpop.f32.mrb[27].mxu1  ;;  %v3851_v8 = vmul.f32 -1.442695, %v1943_v1  ;;  %v2151_v4 = vunpack.c.l.bf16 %v3867_v2 }
0x2738   :  { %4619 = vpow2.f32 %v3851_v8 }
0x2740   :  { %v4618_v6 = vpop.eup %4617 }
0x2741   :  { %1962 = vrot.lane.b32.xlu0 %v4618_v6, %s4784_s13 }
0x2742   :  { %v4620_v9 = vpop.eup %4619 }
0x2743   :  { %v1952_v59 = vadd.f32 1.0, %v4620_v9 }
0x2745   :  { %4621 = vrcp.f32 %v1952_v59 }
0x274f   :  { %v4622_v11 = vpop.eup %4621 }
0x2750   :  { %v1960_v12 = vmul.f32 %v4622_v11, %v1958_v15 }
0x27b3   :  { %v1963_v13 = vpop.permute.xlu0 %1962 }
0x27b4   :  { %v1965_v14 = vmul.f32 %v4622_v11, %v1963_v13 }
0x27b6   :  { %1967 = vrot.lane.b32.xlu0 %v1965_v14, %s4790_s16 }
0x2828   :  { %v1968_v17 = vpop.permute.xlu0 %1967 }
0x2829   :  { %v5364_v18 = vadd.f32 %v1968_v17, %v1960_v12 }
0x282b   :  { %4623 = vtanh.f32 %v5364_v18 }
0x2835   :  { %v4624_v19 = vpop.eup %4623 }
0x2836   :  { %1973 = vrot.lane.b32.xlu1 %v4624_v19, %s4784_s13 }
0x28a8   :  { %v1974_v20 = vpop.permute.xlu1 %1973 }
0x28a9   :  { %v1976_v7 = vmul.f32 %v4622_v11, %v1974_v20 }
0x28ab   :  { %v1982_v10 = vpack.c.bf16 %v1976_v7, %v1976_v7 }
0x28ad   :  { %v1990_v21 = vrot.slane %v1982_v10, %v4939_v35 }
0x28af   :  { %v1997_v3 = vrot.slane %v1990_v21, %v4939_v35 }
0x28b1   :  { %1998 = vrot.lane.b32.xlu0 %v1997_v3, %s4784_s13 }
0x28b5   :  { %1716 = vrot.lane.b32.xlu0 %v5296_v16, %s4792_s17 }
0x2923   :  { %v1999_v27 = vpop.permute.xlu0 %1998 }
0x2924   :  { %2001 = vst.msk [vmem:[#allocation2] sm:$0x1] %vm361_vm6, %v1999_v27 }
0x2927   :  { %v1717_v16 = vpop.permute.xlu0 %1716 }
0x2928   :  { %1719 = vst.msk [vmem:[#allocation3 + $0x4] sm:$0x3] %vm77_vm3, %v1717_v16 }
0x292b   :  { %v3860_v28 = vld.sshfl [vmem:[#allocation2] sm:$0x1 pattern:$0x75316420] }
0x292c   :  { %v2025_v30 = vrot.slane %v3860_v28, %v4939_v35 }
0x292e   :  { %2026 = vrot.lane.b32.xlu1 %v2025_v30, %s4792_s17 }
0x292f   :  { %v2095_v31 = vld [vmem:[#allocation3 + $0x4] sm:$0x3] }
0x2930   :  { %2104 = vrot.lane.b32.xlu0 %v2095_v31, %s4790_s16 }
0x29a0   :  { %v2027_v33 = vpop.permute.xlu1 %2026 }
0x29a1   :  { %4256 = vmatmul.mubr.msk.bf16.vlgmr.msra.gmra.mrb[28].mxu0 %vm263_vm5, %v2027_v33 }
0x29a2   :  { %4275 = vmatprep.mubr.msk.bf16.mxu0 %vm4788_vm1, %v4787_v0  ;;  %v2105_v50 = vpop.permute.xlu0 %2104  ;;  %4268 = vmatpush3.bf16.msra.mxu0 %v4467_v22 }
0x29a3   :  { %4269 = vmatprep.subr.bf16.mxu0 %v4787_v0 }
0x29a6   :  { %4270 = vmatpush3.bf16.msra.mxu0 %v4468_v24 }
0x29a7   :  { %4271 = vmatprep.subr.bf16.mxu0 %v4787_v0 }
0x29aa   :  { %4272 = vmatpush3.bf16.msra.mxu0 %v4469_v25 }
0x29ab   :  { %4273 = vmatprep.subr.bf16.mxu0 %v4787_v0 }
0x29ae   :  { %4274 = vmatpush3.bf16.msra.mxu0 %v4470_v26 }
0x29af   :  { %4291 = vmatprep.subr.bf16.mxu0 %v4787_v0 }
0x2a74   :  { %v2089_v36 = vpop.f32.mrb[28].mxu0 }
0x2a75   :  { %v2090_v32 = vadd.f32 %v5400_v37, %v2089_v36  ;;  %v4257_v39 = vpop.f32.mrb[29].mxu0 }
0x2a76   :  { %v2092_v40 = vpop.f32.mrb[30].mxu0 }
0x2a77   :  { %4625 = vtanh.f32 %v2090_v32  ;;  %v4258_v41 = vpop.f32.mrb[31].mxu0  ;;  %v3866_v44 = vmul.f32 -1.442695, %v2090_v32 }
0x2a79   :  { %4627 = vpow2.f32 %v3866_v44 }
0x2a81   :  { %v4626_v42 = vpop.eup %4625 }
0x2a82   :  { %2109 = vrot.lane.b32.xlu1 %v4626_v42, %s4784_s13 }
0x2a83   :  { %v4628_v45 = vpop.eup %4627 }
0x2a84   :  { %v2099_v47 = vadd.f32 1.0, %v4628_v45 }
0x2a86   :  { %4629 = vrcp.f32 %v2099_v47 }
0x2a90   :  { %v4630_v43 = vpop.eup %4629 }
0x2a91   :  { %v2107_v51 = vmul.f32 %v4630_v43, %v2105_v50 }
0x2af4   :  { %v2110_v29 = vpop.permute.xlu1 %2109 }
0x2af5   :  { %v2112_v38 = vmul.f32 %v4630_v43, %v2110_v29 }
0x2af7   :  { %2114 = vrot.lane.b32.xlu1 %v2112_v38, %s4790_s16 }
0x2b69   :  { %v2115_v23 = vpop.permute.xlu1 %2114 }
0x2b6a   :  { %v5405_v52 = vadd.f32 %v2115_v23, %v2107_v51 }
0x2b6c   :  { %4631 = vtanh.f32 %v5405_v52 }
0x2b76   :  { %v4632_v53 = vpop.eup %4631 }
0x2b77   :  { %2120 = vrot.lane.b32.xlu0 %v4632_v53, %s4784_s13 }
0x2b7b   :  { %1848 = vrot.lane.b32.xlu0 %v1847_v54, %s4792_s17 }
0x2be9   :  { %v2121_v56 = vpop.permute.xlu0 %2120 }
0x2bea   :  { %v2123_v46 = vmul.f32 %v4630_v43, %v2121_v56 }
0x2bec   :  { %v2129_v57 = vpack.c.bf16 %v2123_v46, %v2123_v46 }
0x2bed   :  { %v1849_v49 = vpop.permute.xlu0 %1848 }
0x2bee   :  { %v2137_v58 = vrot.slane %v2129_v57, %v4939_v35  ;;  %1851 = vst.msk [vmem:[#allocation3] sm:$0x3] %vm77_vm3, %v1849_v49 }
0x2bf0   :  { %v2144_v60 = vrot.slane %v2137_v58, %v4939_v35 }
0x2bf2   :  { %2145 = vrot.lane.b32.xlu1 %v2144_v60, %s4792_s17  ;;  %v4471_v60 = vld [vmem:[%s5772_s2 + $0x20] sm:$0xff]  }
0x2bf5   :  { %v3872_v61 = vld.sshfl [vmem:[#allocation3] sm:$0x3 pattern:$0x76325410] }
0x2bf6   :  { %2229 = vrot.lane.b32.xlu0 %v3872_v61, %s4790_s16  ;;  %v4472_v61 = vld [vmem:[%s5772_s2 + $0x28] sm:$0xff]  }
0x2c64   :  { %v2146_v62 = vpop.permute.xlu1 %2145 }
0x2c65   :  { %2148 = vst.msk [vmem:[#allocation2] sm:$0x1] %vm511_vm7, %v2146_v62  ;;  %v4473_v62 = vld [vmem:[%s5772_s2 + $0x30] sm:$0xff]  }
0x2c68   :  { %v2230_v20 = vpop.permute.xlu0 %2229 }
0x2c6c   :  { %v2152_v1 = vld [vmem:[#allocation2] sm:$0x1] }
0x2c6d   :  { %4264 = vmatmul.mubr.msk.bf16.vlgmr.msra.gmra.mrb[28].mxu1 %vm115_vm2, %v2152_v1  ;;  %v4474_v1 = vld [vmem:[%s5772_s2 + $0x38] sm:$0xff]  }
0x2c6e   :  { %4287 = vmatprep.mubr.msk.bf16.mxu1 %vm4788_vm1, %v4787_v0  ;;  %4280 = vmatpush3.bf16.msra.mxu1 %v4471_v60  ;;  %v4477_v60 = vld [vmem:[%s5772_s2] sm:$0xff]  }
0x2c6f   :  { %4281 = vmatprep.subr.bf16.mxu1 %v4787_v0 }
0x2c72   :  { %4282 = vmatpush3.bf16.msra.mxu1 %v4472_v61  ;;  %v4478_v61 = vld [vmem:[%s5772_s2 + $0x8] sm:$0xff]  }
0x2c73   :  { %4283 = vmatprep.subr.bf16.mxu1 %v4787_v0 }
0x2c76   :  { %4284 = vmatpush3.bf16.msra.mxu1 %v4473_v62  ;;  %v4479_v62 = vld [vmem:[%s5772_s2 + $0x10] sm:$0xff]  }
0x2c77   :  { %4285 = vmatprep.subr.bf16.mxu1 %v4787_v0 }
0x2c7a   :  { %4286 = vmatpush3.bf16.msra.mxu1 %v4474_v1  ;;  %v4480_v1 = vld [vmem:[%s5772_s2 + $0x18] sm:$0xff]  }
0x2c7b   :  { %4299 = vmatprep.subr.bf16.mxu1 %v4787_v0 }
0x2d40   :  { %v2206_v5 = vpop.f32.mrb[28].mxu1 }
0x2d41   :  { %v2212_v6 = vadd.f32 %v2206_v5, %v2151_v4  ;;  %v4265_v8 = vpop.f32.mrb[29].mxu1 }
0x2d42   :  { %v2209_v9 = vpop.f32.mrb[30].mxu1 }
0x2d43   :  { %4633 = vtanh.f32 %v2212_v6  ;;  %v4266_v59 = vpop.f32.mrb[31].mxu1  ;;  %v3871_v13 = vmul.f32 -1.442695, %v2212_v6 }
0x2d45   :  { %4635 = vpow2.f32 %v3871_v13 }
0x2d4d   :  { %v4634_v11 = vpop.eup %4633 }
0x2d4e   :  { %2234 = vrot.lane.b32.xlu1 %v4634_v11, %s4784_s13 }
0x2d4f   :  { %v4636_v14 = vpop.eup %4635 }
0x2d50   :  { %v2217_v15 = vadd.f32 1.0, %v4636_v14 }
0x2d52   :  { %4637 = vrcp.f32 %v2217_v15 }
0x2d5c   :  { %v4638_v12 = vpop.eup %4637 }
0x2d5d   :  { %v2232_v7 = vmul.f32 %v4638_v12, %v2230_v20 }
0x2dc0   :  { %v2235_v17 = vpop.permute.xlu1 %2234 }
0x2dc1   :  { %v2237_v19 = vmul.f32 %v4638_v12, %v2235_v17 }
0x2dc3   :  { %2239 = vrot.lane.b32.xlu1 %v2237_v19, %s4790_s16 }
0x2e35   :  { %v2240_v10 = vpop.permute.xlu1 %2239 }
0x2e36   :  { %v5434_v21 = vadd.f32 %v2240_v10, %v2232_v7 }
0x2e38   :  { %4639 = vtanh.f32 %v5434_v21 }
0x2e42   :  { %v4640_v3 = vpop.eup %4639 }
0x2e43   :  { %2245 = vrot.lane.b32.xlu0 %v4640_v3, %s4784_s13 }
0x2e47   :  { %1978 = vrot.lane.b32.xlu0 %v5364_v18, %s4792_s17 }
0x2eb5   :  { %v2246_v27 = vpop.permute.xlu0 %2245 }
0x2eb6   :  { %v2248_v16 = vmul.f32 %v4638_v12, %v2246_v27  ;;  %v2256_v27 = vrot.slane %v5434_v21, %v5000_v34 }
0x2eb8   :  { %v2261_v18 = vpack.c.bf16 %v2248_v16, %v2248_v16  ;;  %v4475_v16 = vld [vmem:[%s5771_s1] sm:$0xff]  }
0x2eb9   :  { %v1979_v28 = vpop.permute.xlu0 %1978 }
0x2eba   :  { %v2269_v30 = vrot.slane %v2261_v18, %v4939_v35  ;;  %1981 = vst.msk [vmem:[#allocation3 + $0x2] sm:$0x3] %vm77_vm3, %v1979_v28  ;;  %v4476_v18 = vld [vmem:[%s5771_s1 + $0x8] sm:$0xff]  }
0x2ebc   :  { %v2276_v31 = vrot.slane %v2269_v30, %v4939_v35 }
0x2ebe   :  { %2277 = vrot.lane.b32.xlu1 %v2276_v31, %s4790_s16 }
0x2ec1   :  { %v2357_v33 = vld [vmem:[#allocation3 + $0x2] sm:$0x3] }
0x2ec2   :  { %2366 = vrot.lane.b32.xlu0 %v2357_v33, %s4790_s16 }
0x2f30   :  { %v2278_v36 = vpop.permute.xlu1 %2277 }
0x2f31   :  { %2280 = vst.msk [vmem:[#allocation2] sm:$0x1] %vm228_vm4, %v2278_v36 }
0x2f34   :  { %v2367_v23 = vpop.permute.xlu0 %2366 }
0x2f38   :  { %v2281_v32 = vld [vmem:[#allocation2] sm:$0x1] }
0x2f39   :  { %4276 = vmatmul.mubr.msk.bf16.vlgmr.msra.gmra.mrb[32].mxu0 %vm263_vm5, %v2281_v32 }
0x2f3a   :  { %4295 = vmatprep.mubr.msk.bf16.mxu0 %vm4788_vm1, %v4787_v0  ;;  %4292 = vmatpush3.bf16.msra.mxu0 %v4475_v16 }
0x2f3b   :  { %4293 = vmatprep.subr.bf16.mxu0 %v4787_v0 }
0x2f3e   :  { %4294 = vmatpush3.bf16.msra.mxu0 %v4476_v18 }
0x2f3f   :  { %4311 = vmatprep.subr.bf16.mxu0 %v4787_v0 }
0x300c   :  { %v2351_v39 = vpop.f32.mrb[32].mxu0 }
0x300d   :  { %v2352_v40 = vadd.f32 %v5359_v63, %v2351_v39  ;;  %v4277_v41 = vpop.f32.mrb[33].mxu0 }
0x300e   :  { %v2354_v42 = vpop.f32.mrb[34].mxu0  ;;  %v3894_v41 = vld [vmem:[%s5770_s0 + $0x6] sm:$0x1] }
0x300f   :  { %4641 = vtanh.f32 %v2352_v40  ;;  %v4278_v44 = vpop.f32.mrb[35].mxu0  ;;  %v3878_v47 = vmul.f32 -1.442695, %v2352_v40  ;;  %v2560_v42 = vunpack.c.l.bf16 %v3894_v41 }
0x3011   :  { %4643 = vpow2.f32 %v3878_v47 }
0x3019   :  { %v4642_v45 = vpop.eup %4641 }
0x301a   :  { %2371 = vrot.lane.b32.xlu1 %v4642_v45, %s4784_s13 }
0x301b   :  { %v4644_v43 = vpop.eup %4643 }
0x301c   :  { %v2361_v29 = vadd.f32 1.0, %v4644_v43 }
0x301e   :  { %4645 = vrcp.f32 %v2361_v29 }
0x3028   :  { %v4646_v38 = vpop.eup %4645 }
0x3029   :  { %v2369_v53 = vmul.f32 %v4646_v38, %v2367_v23 }
0x308c   :  { %v2372_v50 = vpop.permute.xlu1 %2371 }
0x308d   :  { %v2374_v51 = vmul.f32 %v4646_v38, %v2372_v50 }
0x308f   :  { %2376 = vrot.lane.b32.xlu1 %v2374_v51, %s4790_s16 }
0x3101   :  { %v2377_v54 = vpop.permute.xlu1 %2376 }
0x3102   :  { %v5468_v55 = vadd.f32 %v2377_v54, %v2369_v53 }
0x3104   :  { %4647 = vtanh.f32 %v5468_v55 }
0x310e   :  { %v4648_v48 = vpop.eup %4647 }
0x310f   :  { %2382 = vrot.lane.b32.xlu0 %v4648_v48, %s4784_s13 }
0x3181   :  { %v2383_v56 = vpop.permute.xlu0 %2382 }
0x3182   :  { %v2385_v46 = vmul.f32 %v4646_v38, %v2383_v56 }
0x3184   :  { %v2391_v57 = vpack.c.bf16 %v2385_v46, %v2385_v46 }
0x3186   :  { %v2399_v49 = vrot.slane %v2391_v57, %v4939_v35 }
0x3188   :  { %v2406_v58 = vrot.slane %v2399_v49, %v4939_v35 }
0x318a   :  { %2407 = vrot.lane.b32.xlu1 %v2406_v58, %s4784_s13 }
0x318e   :  { %2125 = vrot.lane.b32.xlu1 %v5405_v52, %s4792_s17 }
0x31fc   :  { %v2408_v2 = vpop.permute.xlu1 %2407 }
0x31fd   :  { %2410 = vst.msk [vmem:[#allocation2] sm:$0x1] %vm361_vm6, %v2408_v2 }
0x3200   :  { %v2126_v52 = vpop.permute.xlu1 %2125 }
0x3201   :  { %2128 = vst.msk [vmem:[#allocation3 + $0x4] sm:$0x3] %vm77_vm3, %v2126_v52 }
0x3204   :  { %v3887_v4 = vld.sshfl [vmem:[#allocation2] sm:$0x1 pattern:$0x75316420] }
0x3205   :  { %v2434_v5 = vrot.slane %v3887_v4, %v4939_v35 }
0x3207   :  { %2435 = vrot.lane.b32.xlu0 %v2434_v5, %s4792_s17 }
0x3208   :  { %v2504_v6 = vld [vmem:[#allocation3 + $0x4] sm:$0x3] }
0x3209   :  { %2513 = vrot.lane.b32.xlu1 %v2504_v6, %s4790_s16 }
0x3279   :  { %v2436_v8 = vpop.permute.xlu0 %2435 }
0x327a   :  { %4288 = vmatmul.mubr.msk.bf16.vlgmr.msra.gmra.mrb[32].mxu1 %vm263_vm5, %v2436_v8 }
0x327b   :  { %4307 = vmatprep.mubr.msk.bf16.mxu1 %vm4788_vm1, %v4787_v0  ;;  %v2514_v3 = vpop.permute.xlu1 %2513  ;;  %4300 = vmatpush3.bf16.msra.mxu1 %v4477_v60 }
0x327c   :  { %4301 = vmatprep.subr.bf16.mxu1 %v4787_v0 }
0x327f   :  { %4302 = vmatpush3.bf16.msra.mxu1 %v4478_v61 }
0x3280   :  { %4303 = vmatprep.subr.bf16.mxu1 %v4787_v0 }
0x3283   :  { %4304 = vmatpush3.bf16.msra.mxu1 %v4479_v62 }
0x3284   :  { %4305 = vmatprep.subr.bf16.mxu1 %v4787_v0 }
0x3287   :  { %4306 = vmatpush3.bf16.msra.mxu1 %v4480_v1 }
0x3288   :  { %4323 = vmatprep.subr.bf16.mxu1 %v4787_v0 }
0x334d   :  { %v2498_v9 = vpop.f32.mrb[32].mxu1 }
0x334e   :  { %v2499_v59 = vadd.f32 %v5400_v37, %v2498_v9  ;;  %v4289_v11 = vpop.f32.mrb[33].mxu1 }
0x334f   :  { %v2501_v13 = vpop.f32.mrb[34].mxu1 }
0x3350   :  { %4649 = vtanh.f32 %v2499_v59  ;;  %v4290_v14 = vpop.f32.mrb[35].mxu1  ;;  %v3893_v12 = vmul.f32 -1.442695, %v2499_v59 }
0x3352   :  { %4651 = vpow2.f32 %v3893_v12 }
0x335a   :  { %v4650_v15 = vpop.eup %4649 }
0x335b   :  { %2518 = vrot.lane.b32.xlu0 %v4650_v15, %s4784_s13 }
0x335c   :  { %v4652_v17 = vpop.eup %4651 }
0x335d   :  { %v2508_v19 = vadd.f32 1.0, %v4652_v17 }
0x335f   :  { %4653 = vrcp.f32 %v2508_v19 }
0x3369   :  { %v4654_v20 = vpop.eup %4653 }
0x336a   :  { %v2516_v22 = vmul.f32 %v4654_v20, %v2514_v3 }
0x33cd   :  { %v2519_v7 = vpop.permute.xlu0 %2518 }
0x33ce   :  { %v2521_v10 = vmul.f32 %v4654_v20, %v2519_v7 }
0x33d0   :  { %2523 = vrot.lane.b32.xlu0 %v2521_v10, %s4790_s16 }
0x3442   :  { %v2524_v24 = vpop.permute.xlu0 %2523 }
0x3443   :  { %v5504_v25 = vadd.f32 %v2524_v24, %v2516_v22 }
0x3445   :  { %4655 = vtanh.f32 %v5504_v25 }
0x344f   :  { %v4656_v26 = vpop.eup %4655 }
0x3450   :  { %2529 = vrot.lane.b32.xlu1 %v4656_v26, %s4784_s13 }
0x3454   :  { %2257 = vrot.lane.b32.xlu1 %v2256_v27, %s4792_s17 }
0x34c2   :  { %v2530_v28 = vpop.permute.xlu1 %2529 }
0x34c3   :  { %v2532_v30 = vmul.f32 %v4654_v20, %v2530_v28 }
0x34c5   :  { %v2538_v31 = vpack.c.bf16 %v2532_v30, %v2532_v30 }
0x34c6   :  { %v2258_v21 = vpop.permute.xlu1 %2257 }
0x34c7   :  { %v2546_v33 = vrot.slane %v2538_v31, %v4939_v35  ;;  %2260 = vst.msk [vmem:[#allocation3] sm:$0x3] %vm77_vm3, %v2258_v21 }
0x34c9   :  { %v2553_v36 = vrot.slane %v2546_v33, %v4939_v35 }
0x34cb   :  { %2554 = vrot.lane.b32.xlu0 %v2553_v36, %s4792_s17  ;;  %v4481_v36 = vld [vmem:[%s5772_s2 + $0x20] sm:$0xff]  }
0x34ce   :  { %v3899_v32 = vld.sshfl [vmem:[#allocation3] sm:$0x3 pattern:$0x76325410] }
0x34cf   :  { %2638 = vrot.lane.b32.xlu1 %v3899_v32, %s4790_s16  ;;  %v4482_v32 = vld [vmem:[%s5772_s2 + $0x28] sm:$0xff]  }
0x353d   :  { %v2555_v39 = vpop.permute.xlu0 %2554 }
0x353e   :  { %2557 = vst.msk [vmem:[#allocation2] sm:$0x1] %vm511_vm7, %v2555_v39  ;;  %v4483_v39 = vld [vmem:[%s5772_s2 + $0x30] sm:$0xff]  }
0x3541   :  { %v2639_v56 = vpop.permute.xlu1 %2638 }
0x3545   :  { %v2561_v40 = vld [vmem:[#allocation2] sm:$0x1] }
0x3546   :  { %4296 = vmatmul.mubr.msk.bf16.vlgmr.msra.gmra.mrb[36].mxu0 %vm115_vm2, %v2561_v40  ;;  %v4484_v40 = vld [vmem:[%s5772_s2 + $0x38] sm:$0xff]  }
0x3547   :  { %4319 = vmatprep.mubr.msk.bf16.mxu0 %vm4788_vm1, %v4787_v0  ;;  %4312 = vmatpush3.bf16.msra.mxu0 %v4481_v36  ;;  %v4487_v36 = vld [vmem:[%s5772_s2] sm:$0xff]  }
0x3548   :  { %4313 = vmatprep.subr.bf16.mxu0 %v4787_v0 }
0x354b   :  { %4314 = vmatpush3.bf16.msra.mxu0 %v4482_v32  ;;  %v4488_v32 = vld [vmem:[%s5772_s2 + $0x8] sm:$0xff]  }
0x354c   :  { %4315 = vmatprep.subr.bf16.mxu0 %v4787_v0 }
0x354f   :  { %4316 = vmatpush3.bf16.msra.mxu0 %v4483_v39  ;;  %v4489_v39 = vld [vmem:[%s5772_s2 + $0x10] sm:$0xff]  }
0x3550   :  { %4317 = vmatprep.subr.bf16.mxu0 %v4787_v0 }
0x3553   :  { %4318 = vmatpush3.bf16.msra.mxu0 %v4484_v40  ;;  %v4490_v40 = vld [vmem:[%s5772_s2 + $0x18] sm:$0xff]  }
0x3554   :  { %4331 = vmatprep.subr.bf16.mxu0 %v4787_v0 }
0x3619   :  { %v2615_v44 = vpop.f32.mrb[36].mxu0 }
0x361a   :  { %v2621_v45 = vadd.f32 %v2615_v44, %v2560_v42  ;;  %v4297_v47 = vpop.f32.mrb[37].mxu0 }
0x361b   :  { %v2618_v43 = vpop.f32.mrb[38].mxu0 }
0x361c   :  { %4657 = vtanh.f32 %v2621_v45  ;;  %v4298_v29 = vpop.f32.mrb[39].mxu0  ;;  %v3898_v50 = vmul.f32 -1.442695, %v2621_v45 }
0x361e   :  { %4659 = vpow2.f32 %v3898_v50 }
0x3626   :  { %v4658_v38 = vpop.eup %4657 }
0x3627   :  { %2643 = vrot.lane.b32.xlu0 %v4658_v38, %s4784_s13 }
0x3628   :  { %v4660_v51 = vpop.eup %4659 }
0x3629   :  { %v2626_v23 = vadd.f32 1.0, %v4660_v51 }
0x362b   :  { %4661 = vrcp.f32 %v2626_v23 }
0x3635   :  { %v4662_v53 = vpop.eup %4661 }
0x3636   :  { %v2641_v46 = vmul.f32 %v4662_v53, %v2639_v56 }
0x3699   :  { %v2644_v54 = vpop.permute.xlu0 %2643 }
0x369a   :  { %v2646_v48 = vmul.f32 %v4662_v53, %v2644_v54 }
0x369c   :  { %2648 = vrot.lane.b32.xlu0 %v2646_v48, %s4790_s16 }
0x370e   :  { %v2649_v57 = vpop.permute.xlu0 %2648 }
0x370f   :  { %v5533_v49 = vadd.f32 %v2649_v57, %v2641_v46 }
0x3711   :  { %4663 = vtanh.f32 %v5533_v49 }
0x371b   :  { %v4664_v58 = vpop.eup %4663 }
0x371c   :  { %2654 = vrot.lane.b32.xlu1 %v4664_v58, %s4784_s13 }
0x3720   :  { %2387 = vrot.lane.b32.xlu1 %v5468_v55, %s4792_s17 }
0x378e   :  { %v2655_v2 = vpop.permute.xlu1 %2654 }
0x378f   :  { %v2657_v52 = vmul.f32 %v4662_v53, %v2655_v2  ;;  %v2665_v2 = vrot.slane %v5533_v49, %v5000_v34 }
0x3791   :  { %v2670_v55 = vpack.c.bf16 %v2657_v52, %v2657_v52  ;;  %v4485_v52 = vld [vmem:[%s5771_s1] sm:$0xff]  }
0x3792   :  { %v2388_v4 = vpop.permute.xlu1 %2387 }
0x3793   :  { %v2678_v5 = vrot.slane %v2670_v55, %v4939_v35  ;;  %2390 = vst.msk [vmem:[#allocation3 + $0x2] sm:$0x3] %vm77_vm3, %v2388_v4  ;;  %v4486_v55 = vld [vmem:[%s5771_s1 + $0x8] sm:$0xff]  }
0x3795   :  { %v2685_v6 = vrot.slane %v2678_v5, %v4939_v35 }
0x3797   :  { %2686 = vrot.lane.b32.xlu0 %v2685_v6, %s4790_s16 }
0x379a   :  { %v2766_v8 = vld [vmem:[#allocation3 + $0x2] sm:$0x3] }
0x379b   :  { %2775 = vrot.lane.b32.xlu1 %v2766_v8, %s4790_s16 }
0x3809   :  { %v2687_v9 = vpop.permute.xlu0 %2686 }
0x380a   :  { %2689 = vst.msk [vmem:[#allocation2] sm:$0x1] %vm228_vm4, %v2687_v9 }
0x380d   :  { %v2776_v24 = vpop.permute.xlu1 %2775 }
0x3811   :  { %v2690_v59 = vld [vmem:[#allocation2] sm:$0x1] }
0x3812   :  { %4308 = vmatmul.mubr.msk.bf16.vlgmr.msra.gmra.mrb[36].mxu1 %vm263_vm5, %v2690_v59 }
0x3813   :  { %4327 = vmatprep.mubr.msk.bf16.mxu1 %vm4788_vm1, %v4787_v0  ;;  %4324 = vmatpush3.bf16.msra.mxu1 %v4485_v52 }
0x3814   :  { %4325 = vmatprep.subr.bf16.mxu1 %v4787_v0 }
0x3817   :  { %4326 = vmatpush3.bf16.msra.mxu1 %v4486_v55 }
0x3818   :  { %4343 = vmatprep.subr.bf16.mxu1 %v4787_v0 }
0x38e5   :  { %v2760_v11 = vpop.f32.mrb[36].mxu1 }
0x38e6   :  { %v2761_v13 = vadd.f32 %v5359_v63, %v2760_v11  ;;  %v4309_v14 = vpop.f32.mrb[37].mxu1 }
0x38e7   :  { %v2763_v15 = vpop.f32.mrb[38].mxu1  ;;  %v3921_v14 = vld [vmem:[%s5770_s0 + $0x7] sm:$0x1] }
0x38e8   :  { %4665 = vtanh.f32 %v2761_v13  ;;  %v4310_v12 = vpop.f32.mrb[39].mxu1  ;;  %v3905_v19 = vmul.f32 -1.442695, %v2761_v13  ;;  %v2969_v15 = vunpack.c.l.bf16 %v3921_v14 }
0x38ea   :  { %4667 = vpow2.f32 %v3905_v19 }
0x38f2   :  { %v4666_v17 = vpop.eup %4665 }
0x38f3   :  { %2780 = vrot.lane.b32.xlu0 %v4666_v17, %s4784_s13 }
0x38f4   :  { %v4668_v20 = vpop.eup %4667 }
0x38f5   :  { %v2770_v7 = vadd.f32 1.0, %v4668_v20 }
0x38f7   :  { %4669 = vrcp.f32 %v2770_v7 }
0x3901   :  { %v4670_v10 = vpop.eup %4669 }
0x3902   :  { %v2778_v26 = vmul.f32 %v4670_v10, %v2776_v24 }
0x3965   :  { %v2781_v3 = vpop.permute.xlu0 %2780 }
0x3966   :  { %v2783_v22 = vmul.f32 %v4670_v10, %v2781_v3 }
0x3968   :  { %2785 = vrot.lane.b32.xlu0 %v2783_v22, %s4790_s16 }
0x39da   :  { %v2786_v27 = vpop.permute.xlu0 %2785 }
0x39db   :  { %v5567_v16 = vadd.f32 %v2786_v27, %v2778_v26 }
0x39dd   :  { %4671 = vtanh.f32 %v5567_v16 }
0x39e7   :  { %v4672_v18 = vpop.eup %4671 }
0x39e8   :  { %2791 = vrot.lane.b32.xlu1 %v4672_v18, %s4784_s13 }
0x3a5a   :  { %v2792_v28 = vpop.permute.xlu1 %2791 }
0x3a5b   :  { %v2794_v30 = vmul.f32 %v4670_v10, %v2792_v28 }
0x3a5d   :  { %v2800_v31 = vpack.c.bf16 %v2794_v30, %v2794_v30 }
0x3a5f   :  { %v2808_v21 = vrot.slane %v2800_v31, %v4939_v35 }
0x3a61   :  { %v2815_v33 = vrot.slane %v2808_v21, %v4939_v35 }
0x3a63   :  { %2816 = vrot.lane.b32.xlu0 %v2815_v33, %s4784_s13 }
0x3a67   :  { %2534 = vrot.lane.b32.xlu0 %v5504_v25, %s4792_s17 }
0x3ad5   :  { %v2817_v41 = vpop.permute.xlu0 %2816 }
0x3ad6   :  { %2819 = vst.msk [vmem:[#allocation2] sm:$0x1] %vm361_vm6, %v2817_v41 }
0x3ad9   :  { %v2535_v25 = vpop.permute.xlu0 %2534 }
0x3ada   :  { %2537 = vst.msk [vmem:[#allocation3 + $0x4] sm:$0x3] %vm77_vm3, %v2535_v25 }
0x3add   :  { %v3914_v42 = vld.sshfl [vmem:[#allocation2] sm:$0x1 pattern:$0x75316420] }
0x3ade   :  { %v2843_v44 = vrot.slane %v3914_v42, %v4939_v35 }
0x3ae0   :  { %2844 = vrot.lane.b32.xlu1 %v2843_v44, %s4792_s17 }
0x3ae1   :  { %v2913_v45 = vld [vmem:[#allocation3 + $0x4] sm:$0x3] }
0x3ae2   :  { %2922 = vrot.lane.b32.xlu0 %v2913_v45, %s4790_s16 }
0x3b52   :  { %v2845_v47 = vpop.permute.xlu1 %2844 }
0x3b53   :  { %4320 = vmatmul.mubr.msk.bf16.vlgmr.msra.gmra.mrb[40].mxu0 %vm263_vm5, %v2845_v47 }
0x3b54   :  { %4339 = vmatprep.mubr.msk.bf16.mxu0 %vm4788_vm1, %v4787_v0  ;;  %v2923_v58 = vpop.permute.xlu0 %2922  ;;  %4332 = vmatpush3.bf16.msra.mxu0 %v4487_v36 }
0x3b55   :  { %4333 = vmatprep.subr.bf16.mxu0 %v4787_v0 }
0x3b58   :  { %4334 = vmatpush3.bf16.msra.mxu0 %v4488_v32 }
0x3b59   :  { %4335 = vmatprep.subr.bf16.mxu0 %v4787_v0 }
0x3b5c   :  { %4336 = vmatpush3.bf16.msra.mxu0 %v4489_v39 }
0x3b5d   :  { %4337 = vmatprep.subr.bf16.mxu0 %v4787_v0 }
0x3b60   :  { %4338 = vmatpush3.bf16.msra.mxu0 %v4490_v40 }
0x3b61   :  { %4355 = vmatprep.subr.bf16.mxu0 %v4787_v0 }
0x3c26   :  { %v2907_v43 = vpop.f32.mrb[40].mxu0 }
0x3c27   :  { %v2908_v29 = vadd.f32 %v5400_v37, %v2907_v43  ;;  %v4321_v38 = vpop.f32.mrb[41].mxu0 }
0x3c28   :  { %v2910_v50 = vpop.f32.mrb[42].mxu0 }
0x3c29   :  { %4673 = vtanh.f32 %v2908_v29  ;;  %v4322_v51 = vpop.f32.mrb[43].mxu0  ;;  %v3920_v53 = vmul.f32 -1.442695, %v2908_v29 }
0x3c2b   :  { %4675 = vpow2.f32 %v3920_v53 }
0x3c33   :  { %v4674_v23 = vpop.eup %4673 }
0x3c34   :  { %2927 = vrot.lane.b32.xlu1 %v4674_v23, %s4784_s13 }
0x3c35   :  { %v4676_v54 = vpop.eup %4675 }
0x3c36   :  { %v2917_v48 = vadd.f32 1.0, %v4676_v54 }
0x3c38   :  { %4677 = vrcp.f32 %v2917_v48 }
0x3c42   :  { %v4678_v56 = vpop.eup %4677 }
0x3c43   :  { %v2925_v60 = vmul.f32 %v4678_v56, %v2923_v58 }
0x3ca6   :  { %v2928_v46 = vpop.permute.xlu1 %2927 }
0x3ca7   :  { %v2930_v57 = vmul.f32 %v4678_v56, %v2928_v46 }
0x3ca9   :  { %2932 = vrot.lane.b32.xlu1 %v2930_v57, %s4790_s16 }
0x3d1b   :  { %v2933_v61 = vpop.permute.xlu1 %2932 }
0x3d1c   :  { %v5603_v62 = vadd.f32 %v2933_v61, %v2925_v60 }
0x3d1e   :  { %4679 = vtanh.f32 %v5603_v62 }
0x3d28   :  { %v4680_v1 = vpop.eup %4679 }
0x3d29   :  { %2938 = vrot.lane.b32.xlu0 %v4680_v1, %s4784_s13 }
0x3d2d   :  { %2666 = vrot.lane.b32.xlu0 %v2665_v2, %s4792_s17 }
0x3d9b   :  { %v2939_v4 = vpop.permute.xlu0 %2938 }
0x3d9c   :  { %v2941_v5 = vmul.f32 %v4678_v56, %v2939_v4 }
0x3d9e   :  { %v2947_v6 = vpack.c.bf16 %v2941_v5, %v2941_v5 }
0x3d9f   :  { %v2667_v49 = vpop.permute.xlu0 %2666 }
0x3da0   :  { %v2955_v8 = vrot.slane %v2947_v6, %v4939_v35  ;;  %2669 = vst.msk [vmem:[#allocation3] sm:$0x3] %vm77_vm3, %v2667_v49 }
0x3da2   :  { %v2962_v9 = vrot.slane %v2955_v8, %v4939_v35  ;;  %v4491_v8 = vld [vmem:[%s5772_s2 + $0x20] sm:$0xff]  }
0x3da4   :  { %2963 = vrot.lane.b32.xlu1 %v2962_v9, %s4792_s17  ;;  %v4492_v9 = vld [vmem:[%s5772_s2 + $0x28] sm:$0xff]  }
0x3da7   :  { %v3926_v59 = vld.sshfl [vmem:[#allocation3] sm:$0x3 pattern:$0x76325410] }
0x3da8   :  { %3047 = vrot.lane.b32.xlu0 %v3926_v59, %s4790_s16  ;;  %v4493_v59 = vld [vmem:[%s5772_s2 + $0x30] sm:$0xff]  }
0x3e16   :  { %v2964_v11 = vpop.permute.xlu1 %2963 }
0x3e17   :  { %2966 = vst.msk [vmem:[#allocation2] sm:$0x1] %vm511_vm7, %v2964_v11  ;;  %v4494_v11 = vld [vmem:[%s5772_s2 + $0x38] sm:$0xff]  }
0x3e1a   :  { %v3048_v28 = vpop.permute.xlu0 %3047 }
0x3e1e   :  { %v2970_v13 = vld [vmem:[#allocation2] sm:$0x1] }
0x3e1f   :  { %4328 = vmatmul.mubr.msk.bf16.vlgmr.msra.gmra.mrb[40].mxu1 %vm115_vm2, %v2970_v13 }
0x3e20   :  { %4351 = vmatprep.mubr.msk.bf16.mxu1 %vm4788_vm1, %v4787_v0  ;;  %4344 = vmatpush3.bf16.msra.mxu1 %v4491_v8 }
0x3e21   :  { %4345 = vmatprep.subr.bf16.mxu1 %v4787_v0 }
0x3e24   :  { %4346 = vmatpush3.bf16.msra.mxu1 %v4492_v9 }
0x3e25   :  { %4347 = vmatprep.subr.bf16.mxu1 %v4787_v0 }
0x3e28   :  { %4348 = vmatpush3.bf16.msra.mxu1 %v4493_v59 }
0x3e29   :  { %4349 = vmatprep.subr.bf16.mxu1 %v4787_v0 }
0x3e2c   :  { %4350 = vmatpush3.bf16.msra.mxu1 %v4494_v11  ;;  %v4511_v11 = vld [vmem:[#allocation7 + $0x30] sm:$0xff]  }
0x3e2d   :  { %4363 = vmatprep.subr.bf16.mxu1 %v4787_v0 }
0x3ef2   :  { %v3024_v12 = vpop.f32.mrb[40].mxu1 }
0x3ef3   :  { %v3030_v17 = vadd.f32 %v3024_v12, %v2969_v15  ;;  %v4329_v19 = vpop.f32.mrb[41].mxu1 }
0x3ef4   :  { %v3027_v20 = vpop.f32.mrb[42].mxu1 }
0x3ef5   :  { %4681 = vtanh.f32 %v3030_v17  ;;  %v4330_v7 = vpop.f32.mrb[43].mxu1  ;;  %v3925_v3 = vmul.f32 -1.442695, %v3030_v17 }
0x3ef7   :  { %4683 = vpow2.f32 %v3925_v3 }
0x3eff   :  { %v4682_v10 = vpop.eup %4681 }
0x3f00   :  { %3052 = vrot.lane.b32.xlu1 %v4682_v10, %s4784_s13 }
0x3f01   :  { %v4684_v22 = vpop.eup %4683 }
0x3f02   :  { %v3035_v24 = vadd.f32 1.0, %v4684_v22 }
0x3f04   :  { %4685 = vrcp.f32 %v3035_v24 }
0x3f0e   :  { %v4686_v26 = vpop.eup %4685 }
0x3f0f   :  { %v3050_v30 = vmul.f32 %v4686_v26, %v3048_v28 }
0x3f72   :  { %v3053_v27 = vpop.permute.xlu1 %3052 }
0x3f73   :  { %v3055_v18 = vmul.f32 %v4686_v26, %v3053_v27 }
0x3f75   :  { %3057 = vrot.lane.b32.xlu1 %v3055_v18, %s4790_s16 }
0x3fe7   :  { %v3058_v31 = vpop.permute.xlu1 %3057 }
0x3fe8   :  { %v5632_v21 = vadd.f32 %v3058_v31, %v3050_v30 }
0x3fea   :  { %4687 = vtanh.f32 %v5632_v21 }
0x3ff4   :  { %v4688_v33 = vpop.eup %4687 }
0x3ff5   :  { %3063 = vrot.lane.b32.xlu0 %v4688_v33, %s4784_s13 }
0x3ff9   :  { %2796 = vrot.lane.b32.xlu0 %v5567_v16, %s4792_s17 }
0x4067   :  { %v3064_v41 = vpop.permute.xlu0 %3063 }
0x4068   :  { %v3066_v25 = vmul.f32 %v4686_v26, %v3064_v41 }
0x406a   :  { %v3079_v16 = vpack.c.bf16 %v3066_v25, %v3066_v25 }
0x406b   :  { %v2797_v42 = vpop.permute.xlu0 %2796 }
0x406c   :  { %v3087_v44 = vrot.slane %v3079_v16, %v4939_v35  ;;  %2799 = vst.msk [vmem:[#allocation3 + $0x2] sm:$0x3] %vm77_vm3, %v2797_v42  ;;  %v4495_v42 = vld [vmem:[%s5774_s4] sm:$0xff]  }
0x406e   :  { %v3094_v45 = vrot.slane %v3087_v44, %v4939_v35  ;;  %v3074_v44 = vrot.slane %v5632_v21, %v5000_v34  ;;  %v4498_v34 = vld [vmem:[#allocation4 + $0x8] sm:$0xff]  }
0x4070   :  { %3095 = vrot.lane.b32.xlu1 %v3094_v45, %s4790_s16  ;;  %v4496_v45 = vld [vmem:[%s5774_s4 + $0x8] sm:$0xff]  }
0x4073   :  { %v3175_v47 = vld [vmem:[#allocation3 + $0x2] sm:$0x3] }
0x4074   :  { %3184 = vrot.lane.b32.xlu0 %v3175_v47, %s4790_s16 }
0x40e2   :  { %v3096_v43 = vpop.permute.xlu1 %3095 }
0x40e3   :  { %3098 = vst.msk [vmem:[#allocation2] sm:$0x1] %vm228_vm4, %v3096_v43  ;;  %v4497_v43 = vld [vmem:[#allocation4] sm:$0xff]  }
0x40e6   :  { %v3185_v61 = vpop.permute.xlu0 %3184 }
0x40ea   :  { %v3099_v29 = vld [vmem:[#allocation2] sm:$0x1] }
0x40eb   :  { %4340 = vmatmul.mubr.msk.bf16.vlgmr.msra.gmra.mrb[44].mxu0 %vm263_vm5, %v3099_v29 }
0x40ec   :  { %4359 = vmatprep.mubr.msk.bf16.mxu0 %vm4788_vm1, %v4787_v0  ;;  %4356 = vmatpush3.bf16.msra.mxu0 %v4495_v42 }
0x40ed   :  { %4357 = vmatprep.subr.bf16.mxu0 %v4787_v0 }
0x40f0   :  { %4358 = vmatpush3.bf16.msra.mxu0 %v4496_v45 }
0x40f1   :  { %4383 = vmatprep.subr.bf16.mxu0 %v4787_v0 }
0x41be   :  { %v3169_v38 = vpop.f32.mrb[44].mxu0 }
0x41bf   :  { %v3170_v50 = vadd.f32 %v5359_v63, %v3169_v38  ;;  %v4341_v51 = vpop.f32.mrb[45].mxu0 }
0x41c0   :  { %v3172_v23 = vpop.f32.mrb[46].mxu0 }
0x41c1   :  { %4689 = vtanh.f32 %v3170_v50  ;;  %v4342_v53 = vpop.f32.mrb[47].mxu0  ;;  %v3932_v48 = vmul.f32 -1.442695, %v3170_v50  ;;  %v4499_v50 = vld [vmem:[#allocation4 + $0x10] sm:$0xff]   ;;  %v4500_v23 = vld [vmem:[#allocation4 + $0x18] sm:$0xff]  }
0x41c2   :  { %v4501_v53 = vld [vmem:[#allocation4 + $0x20] sm:$0xff]  }
0x41c3   :  { %4691 = vpow2.f32 %v3932_v48 }
0x41cb   :  { %v4690_v54 = vpop.eup %4689 }
0x41cc   :  { %3189 = vrot.lane.b32.xlu1 %v4690_v54, %s4784_s13  ;;  %v4502_v54 = vld [vmem:[#allocation4 + $0x28] sm:$0xff]  }
0x41cd   :  { %v4692_v56 = vpop.eup %4691 }
0x41ce   :  { %v3179_v46 = vadd.f32 1.0, %v4692_v56  ;;  %v4503_v56 = vld [vmem:[#allocation4 + $0x30] sm:$0xff]  }
0x41d0   :  { %4693 = vrcp.f32 %v3179_v46  ;;  %v4504_v46 = vld [vmem:[#allocation4 + $0x38] sm:$0xff]  }
0x41da   :  { %v4694_v57 = vpop.eup %4693 }
0x41db   :  { %v3187_v1 = vmul.f32 %v4694_v57, %v3185_v61  ;;  %v4508_v61 = vld [vmem:[#allocation7 + $0x18] sm:$0xff]  }
0x423e   :  { %v3190_v58 = vpop.permute.xlu1 %3189 }
0x423f   :  { %v3192_v60 = vmul.f32 %v4694_v57, %v3190_v58  ;;  %v4506_v58 = vld [vmem:[#allocation7 + $0x8] sm:$0xff]  }
0x4241   :  { %3194 = vrot.lane.b32.xlu1 %v3192_v60, %s4790_s16  ;;  %v4507_v60 = vld [vmem:[#allocation7 + $0x10] sm:$0xff]  }
0x42b3   :  { %v3195_v63 = vpop.permute.xlu1 %3194 }
0x42b4   :  { %v5666_v2 = vadd.f32 %v3195_v63, %v3187_v1  ;;  %v4509_v1 = vld [vmem:[#allocation7 + $0x20] sm:$0xff]   ;;  %v4510_v63 = vld [vmem:[#allocation7 + $0x28] sm:$0xff]  }
0x42b6   :  { %4695 = vtanh.f32 %v5666_v2 }
0x42c0   :  { %v4696_v52 = vpop.eup %4695 }
0x42c1   :  { %3200 = vrot.lane.b32.xlu0 %v4696_v52, %s4784_s13 }
0x4333   :  { %v3201_v55 = vpop.permute.xlu0 %3200 }
0x4334   :  { %v3203_v4 = vmul.f32 %v4694_v57, %v3201_v55  ;;  %v4505_v57 = vld [vmem:[#allocation7] sm:$0xff]   ;;  %v3953_v55 = vld [vmem:[%s5776_s6] ss:$0 sm:$0xff] }
0x4336   :  { %v3209_v5 = vpack.c.bf16 %v3203_v4, %v3203_v4 }
0x4338   :  { %v3217_v6 = vrot.slane %v3209_v5, %v4939_v35 }
0x433a   :  { %v3224_v49 = vrot.slane %v3217_v6, %v4939_v35 }
0x433c   :  { %3225 = vrot.lane.b32.xlu1 %v3224_v49, %s4784_s13 }
0x4340   :  { %2943 = vrot.lane.b32.xlu1 %v5603_v62, %s4792_s17 }
0x43ae   :  { %v3226_v13 = vpop.permute.xlu1 %3225 }
0x43af   :  { %3228 = vst.msk [vmem:[#allocation2] sm:$0x1] %vm361_vm6, %v3226_v13  ;;  %v4512_v13 = vld [vmem:[#allocation7 + $0x38] sm:$0xff]  }
0x43b2   :  { %v2944_v62 = vpop.permute.xlu1 %2943 }
0x43b3   :  { %2946 = vst.msk [vmem:[#allocation3 + $0x4] sm:$0x3] %vm77_vm3, %v2944_v62  ;;  %v3962_v62 = vld [vmem:[%s5778_s8] ss:$0 sm:$0xff]  ;;  %s4794_s8 = smov [#allocation9]  }
0x43b6   :  { %v3941_v14 = vld.sshfl [vmem:[#allocation2] sm:$0x1 pattern:$0x75316420] }
0x43b7   :  { %v3252_v15 = vrot.slane %v3941_v14, %v4939_v35 }
0x43b9   :  { %3253 = vrot.lane.b32.xlu0 %v3252_v15, %s4792_s17  ;;  %v3963_v15 = vld [vmem:[%s5779_s9] ss:$0 sm:$0xff]  ;;  %s3720_s9 = sshll.u32 %s4794_s8, 4  ;;  %s3721_s9 = int_to_ptr.vmem [resolvable:$true] %s3720_s9 }
0x43ba   :  { %v3322_v12 = vld [vmem:[#allocation3 + $0x4] sm:$0x3]  ;;  %s4755_s25 = scalar_lea.vmem %s3721_s9, 32  ;;  %p4760_p3 = scmp.lt.s32.totalorder %s3721_s9, %s3721_s9 }
0x43bb   :  { %3331 = vrot.lane.b32.xlu1 %v3322_v12, %s4790_s16  ;;  %p4756_p2 = scmp.ne.s32.totalorder %s3721_s9, %s4755_s25  ;;  %p4761_p4 = scmp.lt.s32.totalorder %s4755_s25, %s4755_s25 }
0x43bd   :  { %p4762_p5 = por %p4761_p4, %p4760_p3 }
0x43bf   :  { %p4763_p6 = pnand %p4762_p5, %p4756_p2 }
0x442b   :  { %v3254_v17 = vpop.permute.xlu0 %3253 }
0x442c   :  { %4352 = vmatmul.mubr.msk.bf16.vlgmr.msra.gmra.mrb[44].mxu1 %vm263_vm5, %v3254_v17 }
0x442d   :  { %4379 = vmatprep.mubr.msk.bf16.mxu1 %vm4788_vm1, %v4787_v0  ;;  %v3332_v31 = vpop.permute.xlu1 %3331  ;;  %4364 = vmatpush3.bf16.msra.mxu1 %v4497_v43 }
0x442e   :  { %4365 = vmatprep.subr.bf16.mxu1 %v4787_v0 }
0x4431   :  { %4366 = vmatpush3.bf16.msra.mxu1 %v4498_v34 }
0x4432   :  { %4367 = vmatprep.subr.bf16.mxu1 %v4787_v0 }
0x4435   :  { %4368 = vmatpush3.bf16.msra.mxu1 %v4499_v50 }
0x4436   :  { %4369 = vmatprep.subr.bf16.mxu1 %v4787_v0 }
0x4439   :  { %4370 = vmatpush3.bf16.msra.mxu1 %v4500_v23 }
0x443a   :  { %4371 = vmatprep.subr.bf16.mxu1 %v4787_v0 }
0x443d   :  { %4372 = vmatpush3.bf16.msra.mxu1 %v4501_v53 }
0x443e   :  { %4373 = vmatprep.subr.bf16.mxu1 %v4787_v0 }
0x4441   :  { %4374 = vmatpush3.bf16.msra.mxu1 %v4502_v54 }
0x4442   :  { %4375 = vmatprep.subr.bf16.mxu1 %v4787_v0 }
0x4445   :  { %4376 = vmatpush3.bf16.msra.mxu1 %v4503_v56 }
0x4446   :  { %4377 = vmatprep.subr.bf16.mxu1 %v4787_v0 }
0x4449   :  { %4378 = vmatpush3.bf16.msra.mxu1 %v4504_v46 }
0x44ff   :  { %v3316_v19 = vpop.f32.mrb[44].mxu1 }
0x4500   :  { %v3317_v20 = vadd.f32 %v5400_v37, %v3316_v19  ;;  %v4353_v7 = vpop.f32.mrb[45].mxu1 }
0x4501   :  { %v3319_v10 = vpop.f32.mrb[46].mxu1 }
0x4502   :  { %4697 = vtanh.f32 %v3317_v20  ;;  %v4354_v3 = vpop.f32.mrb[47].mxu1  ;;  %v3947_v24 = vmul.f32 -1.442695, %v3317_v20 }
0x4504   :  { %4699 = vpow2.f32 %v3947_v24 }
0x450c   :  { %v4698_v22 = vpop.eup %4697 }
0x450d   :  { %3336 = vrot.lane.b32.xlu0 %v4698_v22, %s4784_s13 }
0x450e   :  { %v4700_v26 = vpop.eup %4699 }
0x450f   :  { %v3326_v27 = vadd.f32 1.0, %v4700_v26 }
0x4511   :  { %4701 = vrcp.f32 %v3326_v27 }
0x451b   :  { %v4702_v18 = vpop.eup %4701 }
0x451c   :  { %v3334_v33 = vmul.f32 %v4702_v18, %v3332_v31 }
0x457f   :  { %v3337_v28 = vpop.permute.xlu0 %3336 }
0x4580   :  { %v3339_v30 = vmul.f32 %v4702_v18, %v3337_v28 }
0x4582   :  { %3341 = vrot.lane.b32.xlu0 %v3339_v30, %s4790_s16 }
0x45f4   :  { %v3342_v37 = vpop.permute.xlu0 %3341 }
0x45f5   :  { %v3344_v36 = vadd.f32 %v3342_v37, %v3334_v33 }
0x45f7   :  { %4703 = vtanh.f32 %v3344_v36 }
0x4601   :  { %v4704_v32 = vpop.eup %4703 }
0x4602   :  { %3347 = vrot.lane.b32.xlu1 %v4704_v32, %s4784_s13 }
0x4674   :  { %v3348_v39 = vpop.permute.xlu1 %3347 }
0x4675   :  { %v3350_v40 = vmul.f32 %v4702_v18, %v3348_v39 }
0x4677   :  { %v3356_v41 = vpack.c.bf16 %v3350_v40, %v3350_v40 }
0x4679   :  { %v3364_v25 = vrot.slane %v3356_v41, %v4939_v35 }
0x467b   :  { %v3371_v16 = vrot.slane %v3364_v25, %v4939_v35 }
0x467d   :  { %3372 = vrot.lane.b32.xlu0 %v3371_v16, %s4792_s17 }
0x4681   :  { %3075 = vrot.lane.b32.xlu0 %v3074_v44, %s4792_s17 }
0x4685   :  { %3352 = vrot.lane.b32.xlu0 %v3344_v36, %s4792_s17 }
0x46ef   :  { %v3373_v47 = vpop.permute.xlu0 %3372 }
0x46f0   :  { %3375 = vst.msk [vmem:[#allocation2] sm:$0x1] %vm511_vm7, %v3373_v47 }
0x46f3   :  { %v3076_v29 = vpop.permute.xlu0 %3075 }
0x46f4   :  { %3078 = vst.msk [vmem:[#allocation3] sm:$0x3] %vm77_vm3, %v3076_v29 }
0x46f7   :  { %v3353_v21 = vpop.permute.xlu0 %3352  ;;  %v3948_v38 = vld.sshfl [vmem:[#allocation2] sm:$0x1 pattern:$0x75316420] }
0x46f8   :  { %3355 = vst.msk [vmem:[#allocation3 + $0x4] sm:$0x3] %vm77_vm3, %v3353_v21  ;;  %v3398_v51 = vrot.slane %v3948_v38, %v4939_v35 }
0x46fa   :  { %3399 = vrot.lane.b32.xlu1 %v3398_v51, %s4784_s13 }
0x46fe   :  { %3205 = vrot.lane.b32.xlu1 %v5666_v2, %s4792_s17  ;;  %v3952_v2 = vld [vmem:[%s5775_s5] ss:$0 sm:$0xff] }
0x476c   :  { %v3400_v35 = vpop.permute.xlu1 %3399 }
0x476d   :  { %4360 = vmatmul.mubr.msk.bf16.vlgmr.msra.gmra.mrb[48].mxu0 %vm115_vm2, %v3400_v35 }
0x476e   :  { %4399 = vmatprep.mubr.msk.bf16.mxu0 %vm4788_vm1, %v4787_v0  ;;  %4384 = vmatpush3.bf16.msra.mxu0 %v4505_v57 }
0x476f   :  { %4385 = vmatprep.subr.bf16.mxu0 %v4787_v0 }
0x4770   :  { %v3206_v48 = vpop.permute.xlu1 %3205 }
0x4771   :  { %3208 = vst.msk [vmem:[#allocation3 + $0x2] sm:$0x3] %vm77_vm3, %v3206_v48 }
0x4772   :  { %4386 = vmatpush3.bf16.msra.mxu0 %v4506_v58 }
0x4773   :  { %4387 = vmatprep.subr.bf16.mxu0 %v4787_v0 }
0x4776   :  { %4388 = vmatpush3.bf16.msra.mxu0 %v4507_v60 }
0x4777   :  { %4389 = vmatprep.subr.bf16.mxu0 %v4787_v0 }
0x477a   :  { %4390 = vmatpush3.bf16.msra.mxu0 %v4508_v61 }
0x477b   :  { %4391 = vmatprep.subr.bf16.mxu0 %v4787_v0 }
0x477e   :  { %4392 = vmatpush3.bf16.msra.mxu0 %v4509_v1 }
0x477f   :  { %4393 = vmatprep.subr.bf16.mxu0 %v4787_v0 }
0x4782   :  { %4394 = vmatpush3.bf16.msra.mxu0 %v4510_v63 }
0x4783   :  { %4395 = vmatprep.subr.bf16.mxu0 %v4787_v0 }
0x4786   :  { %4396 = vmatpush3.bf16.msra.mxu0 %v4511_v11 }
0x4787   :  { %4397 = vmatprep.subr.bf16.mxu0 %v4787_v0  ;;  %v3964_v0 = vld [vmem:[%s5781_s11] ss:$0 sm:$0xff] }
0x478a   :  { %4398 = vmatpush3.bf16.msra.mxu0 %v4512_v13 }
0x4840   :  { %v3450_v52 = vpop.f32.mrb[48].mxu0 }
0x4841   :  { %v3463_v4 = vmul.f32 %v3952_v2, %v3450_v52  ;;  %v4361_v5 = vpop.f32.mrb[49].mxu0 }
0x4842   :  { %v3453_v6 = vpop.f32.mrb[50].mxu0 }
0x4843   :  { %v3471_v49 = vadd.f32 %v3953_v55, %v3463_v4  ;;  %v4362_v8 = vpop.f32.mrb[51].mxu0 }
0x4845   :  { %v3472_v9 = vmax.f32 %v3471_v49, 0.0 }
0x4847   :  { %v3473_v59 = vpack.c.bf16 %v3472_v9, %v3472_v9 }
0x4849   :  { %4380 = vmatmul.mubr.bf16.vlgmr.msra.gmra.mrb[48].mxu1 %v3473_v59 }
0x491c   :  { %v3572_v14 = vpop.f32.mrb[48].mxu1 }
0x491d   :  { %v3585_v12 = vmul.f32 %v3962_v62, %v3572_v14  ;;  %v4381_v17 = vpop.f32.mrb[49].mxu1 }
0x491e   :  { %v3575_v19 = vpop.f32.mrb[50].mxu1 }
0x491f   :  { %v3593_v20 = vadd.f32 %v3963_v15, %v3585_v12  ;;  %v4382_v7 = vpop.f32.mrb[51].mxu1 }
0x4921   :  { %v3594_v10 = vmax.f32 %v3593_v20, 0.0 }
0x4923   :  { %v3595_v3 = vpack.c.bf16 %v3594_v10, %v3594_v10 }
0x4925   :  { %4400 = vmatmul.mubr.bf16.vlgmr.msra.gmra.mrb[52].mxu0 %v3595_v3 }
0x49f8   :  { %v3701_v22 = vpop.f32.mrb[52].mxu0 }
0x49f9   :  { %v3702_v24 = vadd.f32 %v3964_v0, %v3701_v22  ;;  %v4401_v26 = vpop.f32.mrb[53].mxu0 }
0x49fa   :  { %v3704_v27 = vpop.f32.mrb[54].mxu0 }
0x49fb   :  { %v3973_v18 = vmul.f32 -1.442695, %v3702_v24  ;;  %v4402_v28 = vpop.f32.mrb[55].mxu0 }
0x49fd   :  { %4705 = vpow2.f32 %v3973_v18 }
0x4a07   :  { %v4706_v30 = vpop.eup %4705 }
0x4a08   :  { %v3710_v31 = vadd.f32 1.0, %v4706_v30 }
0x4a0a   :  { %4707 = vrcp.f32 %v3710_v31 }
0x4a14   :  { %v4708_v33 = vpop.eup %4707 }
0x4a15   :  { %3713 = vst [vmem:[#allocation9] sm:$0x3] %v4708_v33 }
0x4a16   :  { %4766 = shalt.err (!%p4763_p6)
}
0x4a17   :  { %s4767_s27 = scalar_lea.hbm %s5782_s12, 32 }
0x4a18   :  { %p4768_p7 = scmp.ne.s32.totalorder %s5782_s12, %s4767_s27  ;;  %p4771_p8 = scmp.lt.u32.totalorder %s4767_s27, %s5782_s12 }
0x4a1a   :  { %p4773_p9 = pnand %p4771_p8, %p4768_p7 }
0x4a1c   :  { %4776 = shalt.err (!%p4773_p9)
}
0x4a1d   :  { %3723 = dma.vmem_to_hbm [thread:$0]  %s3721_s9, 32, %s5782_s12, [#allocation6]  }
0x4a1e   :  { %4781 = dma.done.wait [#allocation6], 32  }
0x4a1f   :  { %4782 = vsyncadd [#allocation6], 4294967264 }
0x4a20   :  { %3727 = vsyncpa [#allocation5], 1 }
0x4a21   :  { %3728 = vsyncpa [#allocation8], 1 }
0x4a22   :  { %3729 = vsyncpa [#allocation6], 1 }

</bundles_post_ra>
